<compile_context>
chip_gen: v6e
topology: v6e:2x2x1
jax: 0.10.0
libtpu: 0.0.40
codegen_flags: <defaults>
</compile_context>

<pallas_src>
import jax
import jax.numpy as jnp
import numpy as np
from jax.experimental import pallas as pl
from jax.experimental.pallas import tpu as pltpu

# ---------------- demo config (CharacterBERT-style, scaled down) --------------
B = 4                # batch
S = 40               # sequence length
L_CHAR = 8           # max characters per token (real CharacterCNN: 50)
C_CHAR = 16          # character embedding dim
CHAR_VOCAB = 64      # character vocabulary (index 0 = padding)
FILTERS = ((1, 32), (2, 32), (3, 64))     # (kernel width, num filters)
F_TOTAL = sum(n for _, n in FILTERS)      # 128
N_HIGHWAY = 2
HIDDEN = 128         # config.hidden_size
MAX_POS = 64         # config.max_position_embeddings
TYPE_VOCAB = 2       # config.type_vocab_size
LN_EPS = 1e-12

TN_MAX = 512                # max tokens per grid step
COMPUTE_DT = jnp.bfloat16   # MXU operand dtype (f32 accumulation everywhere)


# ------------------------------- Pallas kernel -------------------------------
def bert_char_emb_kernel(ids_ref, meta_ref,
                         sel_ref, gather_ref, toep_ref, convb_ref,
                         wh_ref, bh_ref, wp_ref, bp_ref,
                         pos_tbl_ref, type_tbl_ref,
                         gamma_ref, beta_ref, out_ref):
    # ids_ref : (TN, L_CHAR) int32 char ids
    # meta_ref: (TN, 2) int32   [position_id, token_type_id]
    # sel_ref : (L_CHAR, L_CHAR*CHAR_VOCAB) bf16 lane-replication selector
    # gather_ref: (L_CHAR*CHAR_VOCAB, L_CHAR*C_CHAR) bf16 block-diag char table
    # toep_ref: (L_CHAR*C_CHAR, L_CHAR*F_TOTAL) bf16 fused Toeplitz conv weight
    tn = ids_ref.shape[0]

    # ---- char-embedding lookup: lane-dense one-hot + single MXU gather -------
    # ids replicated per 64-lane group via a tiny selector matmul (exact in bf16
    # since char ids < 256), compared against (lane % vocab) built from iota.
    ids_rep = jnp.dot(ids_ref[...].astype(COMPUTE_DT), sel_ref[...],
                      preferred_element_type=jnp.float32)        # (TN, L*V), exact ints
    lane = jax.lax.broadcasted_iota(jnp.int32, (tn, L_CHAR * CHAR_VOCAB), 1)
    if CHAR_VOCAB & (CHAR_VOCAB - 1) == 0:
        sub = lane & (CHAR_VOCAB - 1)
    else:
        sub = lane % CHAR_VOCAB
    one_hot = (ids_rep == sub.astype(jnp.float32)).astype(COMPUTE_DT)   # (TN, 512)
    chars = jnp.dot(one_hot, gather_ref[...],
                    preferred_element_type=jnp.float32).astype(COMPUTE_DT)  # (TN, 128)

    # ---- CharacterCNN conv: ONE fused Toeplitz matmul --------------------------
    # Time block t occupies lanes [t*F_TOTAL, (t+1)*F_TOTAL) already in final
    # filter-concat order; invalid times (t >= l_out) duplicate the t=0 columns
    # so they never change the max.  Bias hoisted out of the time max.
    conv = jnp.dot(chars, toep_ref[...],
                   preferred_element_type=jnp.float32)           # (TN, L_CHAR*F_TOTAL)
    pooled = conv[:, 0:F_TOTAL]
    for t in range(1, L_CHAR):                                   # vreg-aligned slices
        pooled = jnp.maximum(pooled, conv[:, t * F_TOTAL:(t + 1) * F_TOTAL])
    token = jnp.maximum(pooled + convb_ref[...], 0.0)            # (TN, F_TOTAL) f32

    # ---- Highway layers: out = gate * x + (1 - gate) * relu(nonlinear) --------
    for layer in range(N_HIGHWAY):
        proj = jnp.dot(token.astype(COMPUTE_DT), wh_ref[layer],
                       preferred_element_type=jnp.float32) + bh_ref[layer]
        nonlinear = proj[:, :F_TOTAL]
        gate = jax.nn.sigmoid(proj[:, F_TOTAL:])
        token = gate * token + (1.0 - gate) * jnp.maximum(nonlinear, 0.0)

    # ---- projection to hidden size --------------------------------------------
    emb = jnp.dot(token.astype(COMPUTE_DT), wp_ref[...],
                  preferred_element_type=jnp.float32) + bp_ref[...]

    # ---- position embedding: in-kernel one-hot matmul against resident table --
    pos_iota = jax.lax.broadcasted_iota(jnp.int32, (tn, MAX_POS), 1)
    pos_oh = (meta_ref[:, 0:1] == pos_iota).astype(COMPUTE_DT)   # (TN, MAX_POS)
    emb = emb + jnp.dot(pos_oh, pos_tbl_ref[...],
                        preferred_element_type=jnp.float32)

    # ---- token-type embedding: tiny row select (type_vocab_size rows resident) -
    tt = meta_ref[:, 1:2]                                        # (TN, 1) int32
    type_emb = jnp.where(tt == 0, type_tbl_ref[0:1, :], 0.0)
    for v in range(1, TYPE_VOCAB):
        type_emb = jnp.where(tt == v, type_tbl_ref[v:v + 1, :], type_emb)
    emb = emb + type_emb

    # ---- LayerNorm(hidden_size, eps=1e-12) in f32 ------------------------------
    mean = jnp.mean(emb, axis=-1, keepdims=True)
    var = jnp.mean(jnp.square(emb - mean), axis=-1, keepdims=True)
    normed = (emb - mean) * jax.lax.rsqrt(var + LN_EPS)
    out_ref[...] = (normed * gamma_ref[...] + beta_ref[...]).astype(out_ref.dtype)


# ------------------------------ weight plumbing -------------------------------
def _round_up(x, m):
    return (x + m - 1) // m * m


def _choose_tn(n_tok):
    # Biggest tile up to TN_MAX, multiple of 8, but keep >= 2 grid steps so the
    # 'parallel' axis can split across both v7x TensorCores.
    half = _round_up(max(1, (n_tok + 1) // 2), 8)
    return int(max(8, min(TN_MAX, half)))


def _build_toeplitz(conv_w):
    """Fused conv weight (L_CHAR*C_CHAR, L_CHAR*F_TOTAL), bf16.

    Column block t holds all filters' outputs at time t, in filter-concat
    order.  Times >= l_out (per filter) duplicate that filter's t=0 columns so
    the subsequent max-over-time is unaffected.
    """
    k_rows = L_CHAR * C_CHAR
    time_blocks = []
    for t in range(L_CHAR):
        cols = []
        for (width, num), w in zip(FILTERS, conv_w):
            l_out = L_CHAR - width + 1
            t_eff = t if t < l_out else 0
            wf = w.reshape(width * C_CHAR, num)
            top = t_eff * C_CHAR
            bot = k_rows - top - width * C_CHAR
            cols.append(jnp.pad(wf, ((top, bot), (0, 0))))
        time_blocks.append(jnp.concatenate(cols, axis=1))        # (128, F_TOTAL)
    return jnp.concatenate(time_blocks, axis=1).astype(COMPUTE_DT)


# ------------------------------- wrapper (glue) -------------------------------
def bert_character_embeddings(input_ids, params,
                              token_type_ids=None, position_ids=None,
                              out_dtype=jnp.float32):
    bsz, seq, lc = input_ids.shape
    n_tok = bsz * seq
    tn = _choose_tn(n_tok)
    n_steps = pl.cdiv(n_tok, tn)
    n_pad = n_steps * tn

    # only int32 id streams go to HBM (chars + [pos, type]); clamp out-of-range
    # ids (a PyTorch embedding would raise instead).
    ids = jnp.clip(input_ids.reshape(n_tok, lc).astype(jnp.int32), 0, CHAR_VOCAB - 1)
    if position_ids is None:
        position_ids = jnp.broadcast_to(
            jnp.arange(seq, dtype=jnp.int32)[None, :], (bsz, seq))
    if token_type_ids is None:
        token_type_ids = jnp.zeros((bsz, seq), dtype=jnp.int32)
    pos_flat = jnp.clip(position_ids.reshape(n_tok).astype(jnp.int32), 0, MAX_POS - 1)
    typ_flat = jnp.clip(token_type_ids.reshape(n_tok).astype(jnp.int32), 0, TYPE_VOCAB - 1)
    meta = jnp.stack([pos_flat, typ_flat], axis=1)               # (n_tok, 2) int32

    pad = n_pad - n_tok
    if pad:
        ids = jnp.pad(ids, ((0, pad), (0, 0)))                   # char id 0 = padding
        meta = jnp.pad(meta, ((0, pad), (0, 0)))

    # resident (constant-index-map) weights -------------------------------------
    sel = (jnp.arange(L_CHAR * CHAR_VOCAB) // CHAR_VOCAB
           == jnp.arange(L_CHAR)[:, None]).astype(COMPUTE_DT)    # (8, 512)
    gather_tbl = jnp.kron(jnp.eye(L_CHAR, dtype=COMPUTE_DT),
                          params["char_table"].astype(COMPUTE_DT))   # (512, 128)
    toep_w = _build_toeplitz(params["conv_w"])                   # (128, 1024)
    conv_b_cat = jnp.concatenate(
        [b.reshape(1, -1) for b in params["conv_b"]], axis=1)    # (1, F_TOTAL) f32
    hw_w = params["hw_w"].astype(COMPUTE_DT)
    hw_b = params["hw_b"]
    proj_w = params["proj_w"].astype(COMPUTE_DT)
    proj_b = params["proj_b"]
    pos_tbl = params["pos_table"].astype(COMPUTE_DT)             # (MAX_POS, HIDDEN)
    type_tbl = params["type_table"]                              # (TYPE_VOCAB, HIDDEN) f32
    gamma, beta = params["ln_gamma"], params["ln_beta"]

    tok2 = lambda i: (i, 0)
    full2 = lambda i: (0, 0)
    full3 = lambda i: (0, 0, 0)

    weights = [sel, gather_tbl, toep_w, conv_b_cat, hw_w, hw_b,
               proj_w, proj_b, pos_tbl, type_tbl, gamma, beta]
    in_specs = [pl.BlockSpec((tn, L_CHAR), tok2),
                pl.BlockSpec((tn, 2), tok2)]
    in_specs += [pl.BlockSpec(w.shape, full3 if w.ndim == 3 else full2)
                 for w in weights]

    out = pl.pallas_call(
        bert_char_emb_kernel,
        out_shape=jax.ShapeDtypeStruct((n_pad, HIDDEN), out_dtype),
        grid=(n_steps,),
        in_specs=in_specs,
        out_specs=pl.BlockSpec((tn, HIDDEN), tok2),
        compiler_params=pltpu.CompilerParams(dimension_semantics=("parallel",)),
    )(ids, meta, *weights)

    return out[:n_tok].reshape(bsz, seq, HIDDEN)


# ------------------------- deterministic parameter init -----------------------
def init_params(key):
    ks = jax.random.split(key, 12)
    char_table = jax.random.normal(ks[0], (CHAR_VOCAB, C_CHAR), jnp.float32) * 0.5
    char_table = char_table.at[0].set(0.0)           # padding char row
    pos_table = jax.random.normal(ks[1], (MAX_POS, HIDDEN), jnp.float32) * 0.5
    type_table = jax.random.normal(ks[2], (TYPE_VOCAB, HIDDEN), jnp.float32) * 0.5

    conv_w, conv_b = [], []
    for i, (width, num) in enumerate(FILTERS):
        scale = 1.0 / np.sqrt(width * C_CHAR)
        conv_w.append(jax.random.normal(ks[3 + i], (width, C_CHAR, num), jnp.float32) * scale)
        conv_b.append(jax.random.normal(ks[6], (1, num), jnp.float32) * 0.1)

    hw_scale = 1.0 / np.sqrt(F_TOTAL)
    hw_w = jax.random.normal(ks[7], (N_HIGHWAY, F_TOTAL, 2 * F_TOTAL), jnp.float32) * hw_scale
    hw_b = jnp.zeros((N_HIGHWAY, 2 * F_TOTAL), jnp.float32)
    hw_b = hw_b.at[:, F_TOTAL:].set(1.0)             # Highway gate bias init = 1

    proj_w = jax.random.normal(ks[8], (F_TOTAL, HIDDEN), jnp.float32) * hw_scale
    proj_b = jnp.zeros((1, HIDDEN), jnp.float32)

    ln_gamma = jnp.ones((1, HIDDEN), jnp.float32)
    ln_beta = jnp.zeros((1, HIDDEN), jnp.float32)

    return dict(char_table=char_table, pos_table=pos_table, type_table=type_table,
                conv_w=conv_w, conv_b=conv_b, hw_w=hw_w, hw_b=hw_b,
                proj_w=proj_w, proj_b=proj_b, ln_gamma=ln_gamma, ln_beta=ln_beta)


# ------------------------------ pure-JAX reference ----------------------------
def reference(input_ids, params):
    bsz, seq, lc = input_ids.shape
    n_tok = bsz * seq
    x = params["char_table"][input_ids.reshape(n_tok, lc)]     # (N, L, C) f32
    convs = []
    for (w, b), (width, num) in zip(zip(params["conv_w"], params["conv_b"]), FILTERS):
        l_out = lc - width + 1
        cols = []
        for t in range(l_out):
            o = sum(x[:, t + k, :] @ w[k] for k in range(width)) + b[0]
            cols.append(o)
        out = jnp.stack(cols, axis=1)                          # (N, l_out, num)
        convs.append(jnp.maximum(jnp.max(out, axis=1), 0.0))
    token = jnp.concatenate(convs, axis=-1)
    for layer in range(N_HIGHWAY):
        proj = token @ params["hw_w"][layer] + params["hw_b"][layer]
        nonlinear, gate_logits = proj[:, :F_TOTAL], proj[:, F_TOTAL:]
        gate = jax.nn.sigmoid(gate_logits)
        token = gate * token + (1.0 - gate) * jnp.maximum(nonlinear, 0.0)
    emb = token @ params["proj_w"] + params["proj_b"][0]
    pos_ids = jnp.broadcast_to(jnp.arange(seq)[None, :], (bsz, seq)).reshape(n_tok)
    emb = emb + params["pos_table"][pos_ids] + params["type_table"][jnp.zeros(n_tok, jnp.int32)]
    mean = emb.mean(-1, keepdims=True)
    var = ((emb - mean) ** 2).mean(-1, keepdims=True)
    normed = (emb - mean) / jnp.sqrt(var + LN_EPS)
    out = normed * params["ln_gamma"][0] + params["ln_beta"][0]
    return out.reshape(bsz, seq, HIDDEN)


# ------------------------------------ main ------------------------------------
if __name__ == "__main__":
    key = jax.random.PRNGKey(0)
    k_ids, k_params = jax.random.split(key)
    input_ids = jax.random.randint(k_ids, (B, S, L_CHAR), 1, CHAR_VOCAB, dtype=jnp.int32)
    params = init_params(k_params)

    out = bert_character_embeddings(input_ids, params)
    out = jax.block_until_ready(out)
    assert out.shape == (B, S, HIDDEN) and out.dtype == jnp.float32

    ref = reference(input_ids, params)
    # tolerance covers bf16 matmul operands (f32 accumulation) vs. the f32 reference
    np.testing.assert_allclose(np.asarray(out), np.asarray(ref), rtol=3e-2, atol=3e-2)

    print("KERNEL_OK")
</pallas_src>

<mosaic_0001>
module attributes {stable_mosaic.version = 11 : i64} {
  func.func @bert_char_emb_kernel(%arg0: i32, %arg1: memref<80x8xi32, #tpu.memory_space<vmem>>, %arg2: memref<80x2xi32, #tpu.memory_space<vmem>>, %arg3: memref<8x512xbf16, #tpu.memory_space<vmem>>, %arg4: memref<512x128xbf16, #tpu.memory_space<vmem>>, %arg5: memref<128x1024xbf16, #tpu.memory_space<vmem>>, %arg6: memref<1x128xf32, #tpu.memory_space<vmem>>, %arg7: memref<2x128x256xbf16, #tpu.memory_space<vmem>>, %arg8: memref<2x256xf32, #tpu.memory_space<vmem>>, %arg9: memref<128x128xbf16, #tpu.memory_space<vmem>>, %arg10: memref<1x128xf32, #tpu.memory_space<vmem>>, %arg11: memref<64x128xbf16, #tpu.memory_space<vmem>>, %arg12: memref<2x128xf32, #tpu.memory_space<vmem>>, %arg13: memref<1x128xf32, #tpu.memory_space<vmem>>, %arg14: memref<1x128xf32, #tpu.memory_space<vmem>>, %arg15: memref<80x128xf32, #tpu.memory_space<vmem>>) attributes {dimension_semantics = [#tpu.dimension_semantics<parallel>], iteration_bounds = array<i64: 2>, scalar_prefetch = 0 : i64, scratch_operands = 0 : i64, tpu.core_type = #tpu.core_type<tc>, window_params = [{transform_indices = @transform_0, window_bounds = array<i64: 80, 8>}, {transform_indices = @transform_1, window_bounds = array<i64: 80, 2>}, {pipeline_mode = #tpu.pipeline_mode<synchronous>, transform_indices = @transform_2, window_bounds = array<i64: 8, 512>}, {pipeline_mode = #tpu.pipeline_mode<synchronous>, transform_indices = @transform_3, window_bounds = array<i64: 512, 128>}, {pipeline_mode = #tpu.pipeline_mode<synchronous>, transform_indices = @transform_4, window_bounds = array<i64: 128, 1024>}, {pipeline_mode = #tpu.pipeline_mode<synchronous>, transform_indices = @transform_5, window_bounds = array<i64: 1, 128>}, {pipeline_mode = #tpu.pipeline_mode<synchronous>, transform_indices = @transform_6, window_bounds = array<i64: 2, 128, 256>}, {pipeline_mode = #tpu.pipeline_mode<synchronous>, transform_indices = @transform_7, window_bounds = array<i64: 2, 256>}, {pipeline_mode = #tpu.pipeline_mode<synchronous>, transform_indices = @transform_8, window_bounds = array<i64: 128, 128>}, {pipeline_mode = #tpu.pipeline_mode<synchronous>, transform_indices = @transform_9, window_bounds = array<i64: 1, 128>}, {pipeline_mode = #tpu.pipeline_mode<synchronous>, transform_indices = @transform_10, window_bounds = array<i64: 64, 128>}, {pipeline_mode = #tpu.pipeline_mode<synchronous>, transform_indices = @transform_11, window_bounds = array<i64: 2, 128>}, {pipeline_mode = #tpu.pipeline_mode<synchronous>, transform_indices = @transform_12, window_bounds = array<i64: 1, 128>}, {pipeline_mode = #tpu.pipeline_mode<synchronous>, transform_indices = @transform_13, window_bounds = array<i64: 1, 128>}, {transform_indices = @transform_14, window_bounds = array<i64: 80, 128>}]} {
    %c0 = arith.constant 0 : index
    %c0_0 = arith.constant 0 : index
    %0 = vector.load %arg1[%c0, %c0_0] : memref<80x8xi32, #tpu.memory_space<vmem>>, vector<80x8xi32>
    %1 = arith.sitofp %0 : vector<80x8xi32> to vector<80x8xbf16>
    %c0_1 = arith.constant 0 : index
    %c0_2 = arith.constant 0 : index
    %2 = vector.load %arg3[%c0_1, %c0_2] : memref<8x512xbf16, #tpu.memory_space<vmem>>, vector<8x512xbf16>
    %cst = arith.constant dense<0.000000e+00> : vector<80x512xf32>
    %3 = tpu.matmul %1, %2, %cst {dimension_numbers = #tpu.dot_dimension_numbers<[1], [0], [0], [1], [0, 0, 1, 1], [], []>} : vector<80x8xbf16>, vector<8x512xbf16>, vector<80x512xf32> -> vector<80x512xf32>
    %4 = tpu.iota {dimensions = array<i32: 1>} : vector<80x512xi32>
    %c63_i32 = arith.constant 63 : i32
    %5 = vector.broadcast %c63_i32 : i32 to vector<80x512xi32>
    %6 = arith.andi %4, %5 : vector<80x512xi32>
    %7 = arith.sitofp %6 : vector<80x512xi32> to vector<80x512xf32>
    %8 = arith.cmpf oeq, %3, %7 : vector<80x512xf32>
    %9 = arith.extui %8 : vector<80x512xi1> to vector<80x512xi32>
    %10 = arith.sitofp %9 : vector<80x512xi32> to vector<80x512xf32>
    %11 = arith.truncf %10 : vector<80x512xf32> to vector<80x512xbf16>
    %c0_3 = arith.constant 0 : index
    %c0_4 = arith.constant 0 : index
    %12 = vector.load %arg4[%c0_3, %c0_4] : memref<512x128xbf16, #tpu.memory_space<vmem>>, vector<512x128xbf16>
    %cst_5 = arith.constant dense<0.000000e+00> : vector<80x128xf32>
    %13 = tpu.matmul %11, %12, %cst_5 {dimension_numbers = #tpu.dot_dimension_numbers<[1], [0], [0], [1], [0, 0, 1, 1], [], []>} : vector<80x512xbf16>, vector<512x128xbf16>, vector<80x128xf32> -> vector<80x128xf32>
    %14 = arith.truncf %13 : vector<80x128xf32> to vector<80x128xbf16>
    %c0_6 = arith.constant 0 : index
    %c0_7 = arith.constant 0 : index
    %15 = vector.load %arg5[%c0_6, %c0_7] : memref<128x1024xbf16, #tpu.memory_space<vmem>>, vector<128x1024xbf16>
    %cst_8 = arith.constant dense<0.000000e+00> : vector<80x1024xf32>
    %16 = tpu.matmul %14, %15, %cst_8 {dimension_numbers = #tpu.dot_dimension_numbers<[1], [0], [0], [1], [0, 0, 1, 1], [], []>} : vector<80x128xbf16>, vector<128x1024xbf16>, vector<80x1024xf32> -> vector<80x1024xf32>
    %17 = vector.extract_strided_slice %16 {offsets = [0, 0], sizes = [80, 128], strides = [1, 1]} : vector<80x1024xf32> to vector<80x128xf32>
    %18 = vector.extract_strided_slice %16 {offsets = [0, 128], sizes = [80, 128], strides = [1, 1]} : vector<80x1024xf32> to vector<80x128xf32>
    %19 = arith.maximumf %17, %18 : vector<80x128xf32>
    %20 = vector.extract_strided_slice %16 {offsets = [0, 256], sizes = [80, 128], strides = [1, 1]} : vector<80x1024xf32> to vector<80x128xf32>
    %21 = arith.maximumf %19, %20 : vector<80x128xf32>
    %22 = vector.extract_strided_slice %16 {offsets = [0, 384], sizes = [80, 128], strides = [1, 1]} : vector<80x1024xf32> to vector<80x128xf32>
    %23 = arith.maximumf %21, %22 : vector<80x128xf32>
    %24 = vector.extract_strided_slice %16 {offsets = [0, 512], sizes = [80, 128], strides = [1, 1]} : vector<80x1024xf32> to vector<80x128xf32>
    %25 = arith.maximumf %23, %24 : vector<80x128xf32>
    %26 = vector.extract_strided_slice %16 {offsets = [0, 640], sizes = [80, 128], strides = [1, 1]} : vector<80x1024xf32> to vector<80x128xf32>
    %27 = arith.maximumf %25, %26 : vector<80x128xf32>
    %28 = vector.extract_strided_slice %16 {offsets = [0, 768], sizes = [80, 128], strides = [1, 1]} : vector<80x1024xf32> to vector<80x128xf32>
    %29 = arith.maximumf %27, %28 : vector<80x128xf32>
    %30 = vector.extract_strided_slice %16 {offsets = [0, 896], sizes = [80, 128], strides = [1, 1]} : vector<80x1024xf32> to vector<80x128xf32>
    %31 = arith.maximumf %29, %30 : vector<80x128xf32>
    %c0_9 = arith.constant 0 : index
    %c0_10 = arith.constant 0 : index
    %32 = vector.load %arg6[%c0_9, %c0_10] : memref<1x128xf32, #tpu.memory_space<vmem>>, vector<1x128xf32>
    %33 = vector.broadcast %32 : vector<1x128xf32> to vector<80x128xf32>
    %34 = arith.addf %31, %33 : vector<80x128xf32>
    %cst_11 = arith.constant 0.000000e+00 : f32
    %35 = vector.broadcast %cst_11 : f32 to vector<80x128xf32>
    %36 = arith.maximumf %34, %35 : vector<80x128xf32>
    %37 = arith.truncf %36 : vector<80x128xf32> to vector<80x128xbf16>
    %c0_12 = arith.constant 0 : index
    %c0_13 = arith.constant 0 : index
    %c0_14 = arith.constant 0 : index
    %38 = vector.load %arg7[%c0_12, %c0_13, %c0_14] : memref<2x128x256xbf16, #tpu.memory_space<vmem>>, vector<1x128x256xbf16>
    %39 = vector.shape_cast %38 : vector<1x128x256xbf16> to vector<128x256xbf16>
    %cst_15 = arith.constant dense<0.000000e+00> : vector<80x256xf32>
    %40 = tpu.matmul %37, %39, %cst_15 {dimension_numbers = #tpu.dot_dimension_numbers<[1], [0], [0], [1], [0, 0, 1, 1], [], []>} : vector<80x128xbf16>, vector<128x256xbf16>, vector<80x256xf32> -> vector<80x256xf32>
    %c0_16 = arith.constant 0 : index
    %c0_17 = arith.constant 0 : index
    %41 = vector.load %arg8[%c0_16, %c0_17] : memref<2x256xf32, #tpu.memory_space<vmem>>, vector<1x256xf32>
    %42 = vector.shape_cast %41 : vector<1x256xf32> to vector<256xf32>
    %43 = vector.shape_cast %42 : vector<256xf32> to vector<1x256xf32>
    %44 = vector.broadcast %43 : vector<1x256xf32> to vector<80x256xf32>
    %45 = arith.addf %40, %44 : vector<80x256xf32>
    %46 = vector.extract_strided_slice %45 {offsets = [0, 0], sizes = [80, 128], strides = [1, 1]} : vector<80x256xf32> to vector<80x128xf32>
    %47 = vector.extract_strided_slice %45 {offsets = [0, 128], sizes = [80, 128], strides = [1, 1]} : vector<80x256xf32> to vector<80x128xf32>
    %48 = arith.negf %47 : vector<80x128xf32>
    %49 = math.exp %48 : vector<80x128xf32>
    %cst_18 = arith.constant 1.000000e+00 : f32
    %50 = vector.broadcast %cst_18 : f32 to vector<80x128xf32>
    %51 = arith.addf %50, %49 : vector<80x128xf32>
    %52 = arith.divf %50, %51 : vector<80x128xf32>
    %53 = arith.mulf %52, %36 : vector<80x128xf32>
    %cst_19 = arith.constant 1.000000e+00 : f32
    %54 = vector.broadcast %cst_19 : f32 to vector<80x128xf32>
    %55 = arith.subf %54, %52 : vector<80x128xf32>
    %cst_20 = arith.constant 0.000000e+00 : f32
    %56 = vector.broadcast %cst_20 : f32 to vector<80x128xf32>
    %57 = arith.maximumf %46, %56 : vector<80x128xf32>
    %58 = arith.mulf %55, %57 : vector<80x128xf32>
    %59 = arith.addf %53, %58 : vector<80x128xf32>
    %60 = arith.truncf %59 : vector<80x128xf32> to vector<80x128xbf16>
    %c1 = arith.constant 1 : index
    %c0_21 = arith.constant 0 : index
    %c0_22 = arith.constant 0 : index
    %61 = vector.load %arg7[%c1, %c0_21, %c0_22] : memref<2x128x256xbf16, #tpu.memory_space<vmem>>, vector<1x128x256xbf16>
    %62 = vector.shape_cast %61 : vector<1x128x256xbf16> to vector<128x256xbf16>
    %cst_23 = arith.constant dense<0.000000e+00> : vector<80x256xf32>
    %63 = tpu.matmul %60, %62, %cst_23 {dimension_numbers = #tpu.dot_dimension_numbers<[1], [0], [0], [1], [0, 0, 1, 1], [], []>} : vector<80x128xbf16>, vector<128x256xbf16>, vector<80x256xf32> -> vector<80x256xf32>
    %c1_24 = arith.constant 1 : index
    %c0_25 = arith.constant 0 : index
    %64 = vector.load %arg8[%c1_24, %c0_25] : memref<2x256xf32, #tpu.memory_space<vmem>>, vector<1x256xf32>
    %65 = vector.shape_cast %64 : vector<1x256xf32> to vector<256xf32>
    %66 = vector.shape_cast %65 : vector<256xf32> to vector<1x256xf32>
    %67 = vector.broadcast %66 : vector<1x256xf32> to vector<80x256xf32>
    %68 = arith.addf %63, %67 : vector<80x256xf32>
    %69 = vector.extract_strided_slice %68 {offsets = [0, 0], sizes = [80, 128], strides = [1, 1]} : vector<80x256xf32> to vector<80x128xf32>
    %70 = vector.extract_strided_slice %68 {offsets = [0, 128], sizes = [80, 128], strides = [1, 1]} : vector<80x256xf32> to vector<80x128xf32>
    %71 = arith.negf %70 : vector<80x128xf32>
    %72 = math.exp %71 : vector<80x128xf32>
    %cst_26 = arith.constant 1.000000e+00 : f32
    %73 = vector.broadcast %cst_26 : f32 to vector<80x128xf32>
    %74 = arith.addf %73, %72 : vector<80x128xf32>
    %75 = arith.divf %73, %74 : vector<80x128xf32>
    %76 = arith.mulf %75, %59 : vector<80x128xf32>
    %cst_27 = arith.constant 1.000000e+00 : f32
    %77 = vector.broadcast %cst_27 : f32 to vector<80x128xf32>
    %78 = arith.subf %77, %75 : vector<80x128xf32>
    %cst_28 = arith.constant 0.000000e+00 : f32
    %79 = vector.broadcast %cst_28 : f32 to vector<80x128xf32>
    %80 = arith.maximumf %69, %79 : vector<80x128xf32>
    %81 = arith.mulf %78, %80 : vector<80x128xf32>
    %82 = arith.addf %76, %81 : vector<80x128xf32>
    %83 = arith.truncf %82 : vector<80x128xf32> to vector<80x128xbf16>
    %c0_29 = arith.constant 0 : index
    %c0_30 = arith.constant 0 : index
    %84 = vector.load %arg9[%c0_29, %c0_30] : memref<128x128xbf16, #tpu.memory_space<vmem>>, vector<128x128xbf16>
    %cst_31 = arith.constant dense<0.000000e+00> : vector<80x128xf32>
    %85 = tpu.matmul %83, %84, %cst_31 {dimension_numbers = #tpu.dot_dimension_numbers<[1], [0], [0], [1], [0, 0, 1, 1], [], []>} : vector<80x128xbf16>, vector<128x128xbf16>, vector<80x128xf32> -> vector<80x128xf32>
    %c0_32 = arith.constant 0 : index
    %c0_33 = arith.constant 0 : index
    %86 = vector.load %arg10[%c0_32, %c0_33] : memref<1x128xf32, #tpu.memory_space<vmem>>, vector<1x128xf32>
    %87 = vector.broadcast %86 : vector<1x128xf32> to vector<80x128xf32>
    %88 = arith.addf %85, %87 : vector<80x128xf32>
    %89 = tpu.iota {dimensions = array<i32: 1>} : vector<80x64xi32>
    %c0_34 = arith.constant 0 : index
    %c0_35 = arith.constant 0 : index
    %90 = vector.load %arg2[%c0_34, %c0_35] : memref<80x2xi32, #tpu.memory_space<vmem>>, vector<80x1xi32>
    %91 = vector.broadcast %90 : vector<80x1xi32> to vector<80x64xi32>
    %92 = arith.cmpi eq, %91, %89 : vector<80x64xi32>
    %93 = arith.extui %92 : vector<80x64xi1> to vector<80x64xi32>
    %94 = arith.sitofp %93 : vector<80x64xi32> to vector<80x64xf32>
    %95 = arith.truncf %94 : vector<80x64xf32> to vector<80x64xbf16>
    %c0_36 = arith.constant 0 : index
    %c0_37 = arith.constant 0 : index
    %96 = vector.load %arg11[%c0_36, %c0_37] : memref<64x128xbf16, #tpu.memory_space<vmem>>, vector<64x128xbf16>
    %cst_38 = arith.constant dense<0.000000e+00> : vector<80x128xf32>
    %97 = tpu.matmul %95, %96, %cst_38 {dimension_numbers = #tpu.dot_dimension_numbers<[1], [0], [0], [1], [0, 0, 1, 1], [], []>} : vector<80x64xbf16>, vector<64x128xbf16>, vector<80x128xf32> -> vector<80x128xf32>
    %98 = arith.addf %88, %97 : vector<80x128xf32>
    %c0_39 = arith.constant 0 : index
    %c1_40 = arith.constant 1 : index
    %99 = vector.load %arg2[%c0_39, %c1_40] : memref<80x2xi32, #tpu.memory_space<vmem>>, vector<80x1xi32>
    %c0_i32 = arith.constant 0 : i32
    %100 = vector.broadcast %c0_i32 : i32 to vector<80x1xi32>
    %101 = arith.cmpi eq, %99, %100 : vector<80x1xi32>
    %c0_41 = arith.constant 0 : index
    %c0_42 = arith.constant 0 : index
    %102 = vector.load %arg12[%c0_41, %c0_42] : memref<2x128xf32, #tpu.memory_space<vmem>>, vector<1x128xf32>
    %cst_43 = arith.constant 0.000000e+00 : f32
    %103 = vector.shape_cast %101 : vector<80x1xi1> to vector<80x1xi1>
    %104 = vector.broadcast %103 : vector<80x1xi1> to vector<80x128xi1>
    %105 = vector.shape_cast %102 : vector<1x128xf32> to vector<1x128xf32>
    %106 = vector.broadcast %105 : vector<1x128xf32> to vector<80x128xf32>
    %107 = vector.broadcast %cst_43 : f32 to vector<80x128xf32>
    %108 = arith.select %104, %106, %107 : vector<80x128xi1>, vector<80x128xf32>
    %c1_i32 = arith.constant 1 : i32
    %109 = vector.broadcast %c1_i32 : i32 to vector<80x1xi32>
    %110 = arith.cmpi eq, %99, %109 : vector<80x1xi32>
    %c1_44 = arith.constant 1 : index
    %c0_45 = arith.constant 0 : index
    %111 = vector.load %arg12[%c1_44, %c0_45] : memref<2x128xf32, #tpu.memory_space<vmem>>, vector<1x128xf32>
    %112 = vector.shape_cast %110 : vector<80x1xi1> to vector<80x1xi1>
    %113 = vector.broadcast %112 : vector<80x1xi1> to vector<80x128xi1>
    %114 = vector.shape_cast %111 : vector<1x128xf32> to vector<1x128xf32>
    %115 = vector.broadcast %114 : vector<1x128xf32> to vector<80x128xf32>
    %116 = arith.select %113, %115, %108 : vector<80x128xi1>, vector<80x128xf32>
    %117 = arith.addf %98, %116 : vector<80x128xf32>
    %cst_46 = arith.constant dense<0.000000e+00> : vector<80xf32>
    %118 = vector.multi_reduction <add>, %117, %cst_46 [1] : vector<80x128xf32> to vector<80xf32>
    %119 = vector.shape_cast %118 : vector<80xf32> to vector<80x1xf32>
    %cst_47 = arith.constant 1.280000e+02 : f32
    %120 = vector.broadcast %cst_47 : f32 to vector<80x1xf32>
    %121 = arith.divf %119, %120 : vector<80x1xf32>
    %122 = vector.broadcast %121 : vector<80x1xf32> to vector<80x128xf32>
    %123 = arith.subf %117, %122 : vector<80x128xf32>
    %124 = arith.mulf %123, %123 : vector<80x128xf32>
    %cst_48 = arith.constant dense<0.000000e+00> : vector<80xf32>
    %125 = vector.multi_reduction <add>, %124, %cst_48 [1] : vector<80x128xf32> to vector<80xf32>
    %126 = vector.shape_cast %125 : vector<80xf32> to vector<80x1xf32>
    %cst_49 = arith.constant 1.280000e+02 : f32
    %127 = vector.broadcast %cst_49 : f32 to vector<80x1xf32>
    %128 = arith.divf %126, %127 : vector<80x1xf32>
    %129 = vector.broadcast %121 : vector<80x1xf32> to vector<80x128xf32>
    %130 = arith.subf %117, %129 : vector<80x128xf32>
    %cst_50 = arith.constant 9.99999996E-13 : f32
    %131 = vector.broadcast %cst_50 : f32 to vector<80x1xf32>
    %132 = arith.addf %128, %131 : vector<80x1xf32>
    %133 = math.rsqrt %132 : vector<80x1xf32>
    %134 = vector.broadcast %133 : vector<80x1xf32> to vector<80x128xf32>
    %135 = arith.mulf %130, %134 : vector<80x128xf32>
    %c0_51 = arith.constant 0 : index
    %c0_52 = arith.constant 0 : index
    %136 = vector.load %arg13[%c0_51, %c0_52] : memref<1x128xf32, #tpu.memory_space<vmem>>, vector<1x128xf32>
    %137 = vector.broadcast %136 : vector<1x128xf32> to vector<80x128xf32>
    %138 = arith.mulf %135, %137 : vector<80x128xf32>
    %c0_53 = arith.constant 0 : index
    %c0_54 = arith.constant 0 : index
    %139 = vector.load %arg14[%c0_53, %c0_54] : memref<1x128xf32, #tpu.memory_space<vmem>>, vector<1x128xf32>
    %140 = vector.broadcast %139 : vector<1x128xf32> to vector<80x128xf32>
    %141 = arith.addf %138, %140 : vector<80x128xf32>
    %c0_55 = arith.constant 0 : index
    %c0_56 = arith.constant 0 : index
    %142 = vector.load %arg15[%c0_55, %c0_56] : memref<80x128xf32, #tpu.memory_space<vmem>>, vector<80x128xf32>
    tpu.vector_store %arg15[%c0_55, %c0_56], %141 {strides = array<i32>} : memref<80x128xf32, #tpu.memory_space<vmem>>, vector<80x128xf32>,
    return
  }
  func.func @transform_0(%arg0: i32) -> (i32, i32) {
    %c0_i32 = arith.constant 0 : i32
    %c0_i32_0 = arith.constant 0 : i32
    return %arg0, %c0_i32 : i32, i32
  }
  func.func @transform_1(%arg0: i32) -> (i32, i32) {
    %c0_i32 = arith.constant 0 : i32
    %c0_i32_0 = arith.constant 0 : i32
    return %arg0, %c0_i32 : i32, i32
  }
  func.func @transform_2(%arg0: i32) -> (i32, i32) {
    %c0_i32 = arith.constant 0 : i32
    %c0_i32_0 = arith.constant 0 : i32
    %c0_i32_1 = arith.constant 0 : i32
    return %c0_i32, %c0_i32_0 : i32, i32
  }
  func.func @transform_3(%arg0: i32) -> (i32, i32) {
    %c0_i32 = arith.constant 0 : i32
    %c0_i32_0 = arith.constant 0 : i32
    %c0_i32_1 = arith.constant 0 : i32
    return %c0_i32, %c0_i32_0 : i32, i32
  }
  func.func @transform_4(%arg0: i32) -> (i32, i32) {
    %c0_i32 = arith.constant 0 : i32
    %c0_i32_0 = arith.constant 0 : i32
    %c0_i32_1 = arith.constant 0 : i32
    return %c0_i32, %c0_i32_0 : i32, i32
  }
  func.func @transform_5(%arg0: i32) -> (i32, i32) {
    %c0_i32 = arith.constant 0 : i32
    %c0_i32_0 = arith.constant 0 : i32
    %c0_i32_1 = arith.constant 0 : i32
    return %c0_i32, %c0_i32_0 : i32, i32
  }
  func.func @transform_6(%arg0: i32) -> (i32, i32, i32) {
    %c0_i32 = arith.constant 0 : i32
    %c0_i32_0 = arith.constant 0 : i32
    %c0_i32_1 = arith.constant 0 : i32
    %c0_i32_2 = arith.constant 0 : i32
    return %c0_i32, %c0_i32_0, %c0_i32_1 : i32, i32, i32
  }
  func.func @transform_7(%arg0: i32) -> (i32, i32) {
    %c0_i32 = arith.constant 0 : i32
    %c0_i32_0 = arith.constant 0 : i32
    %c0_i32_1 = arith.constant 0 : i32
    return %c0_i32, %c0_i32_0 : i32, i32
  }
  func.func @transform_8(%arg0: i32) -> (i32, i32) {
    %c0_i32 = arith.constant 0 : i32
    %c0_i32_0 = arith.constant 0 : i32
    %c0_i32_1 = arith.constant 0 : i32
    return %c0_i32, %c0_i32_0 : i32, i32
  }
  func.func @transform_9(%arg0: i32) -> (i32, i32) {
    %c0_i32 = arith.constant 0 : i32
    %c0_i32_0 = arith.constant 0 : i32
    %c0_i32_1 = arith.constant 0 : i32
    return %c0_i32, %c0_i32_0 : i32, i32
  }
  func.func @transform_10(%arg0: i32) -> (i32, i32) {
    %c0_i32 = arith.constant 0 : i32
    %c0_i32_0 = arith.constant 0 : i32
    %c0_i32_1 = arith.constant 0 : i32
    return %c0_i32, %c0_i32_0 : i32, i32
  }
  func.func @transform_11(%arg0: i32) -> (i32, i32) {
    %c0_i32 = arith.constant 0 : i32
    %c0_i32_0 = arith.constant 0 : i32
    %c0_i32_1 = arith.constant 0 : i32
    return %c0_i32, %c0_i32_0 : i32, i32
  }
  func.func @transform_12(%arg0: i32) -> (i32, i32) {
    %c0_i32 = arith.constant 0 : i32
    %c0_i32_0 = arith.constant 0 : i32
    %c0_i32_1 = arith.constant 0 : i32
    return %c0_i32, %c0_i32_0 : i32, i32
  }
  func.func @transform_13(%arg0: i32) -> (i32, i32) {
    %c0_i32 = arith.constant 0 : i32
    %c0_i32_0 = arith.constant 0 : i32
    %c0_i32_1 = arith.constant 0 : i32
    return %c0_i32, %c0_i32_0 : i32, i32
  }
  func.func @transform_14(%arg0: i32) -> (i32, i32) {
    %c0_i32 = arith.constant 0 : i32
    %c0_i32_0 = arith.constant 0 : i32
    return %arg0, %c0_i32 : i32, i32
  }
}

</mosaic_0001>

<bundles_post_ra>
// kernel: tpu_custom_call.1
= control target key start
LH: loop header
LB: loop body
LE: loop exit
PB: predicated region body
PF: predicated region fallthrough
CT: control target
= control target key end

     0   :  { %s5861_s0 = inlined_call_operand.vmem [shape: s32[160,8], index: 0, kind: input, shape index: {}]   ;;  %s5862_s1 = inlined_call_operand.vmem [shape: s32[160,2], index: 1, kind: input, shape index: {}]   ;;  %s5863_s2 = inlined_call_operand.hbm [shape: bf16[8,512], index: 2, kind: input, shape index: {}]   ;;  %s5864_s3 = inlined_call_operand.vmem [shape: bf16[512,128], index: 3, kind: input, shape index: {}]   ;;  %s5865_s4 = inlined_call_operand.hbm [shape: bf16[128,1024], index: 4, kind: input, shape index: {}]   ;;  %s5866_s5 = inlined_call_operand.hbm [shape: f32[1,128], index: 5, kind: input, shape index: {}]   ;;  %s5867_s6 = inlined_call_operand.hbm [shape: bf16[2,128,256], index: 6, kind: input, shape index: {}]   ;;  %s5868_s7 = inlined_call_operand.hbm [shape: f32[2,256], index: 7, kind: input, shape index: {}]   ;;  %s5869_s8 = inlined_call_operand.vmem [shape: bf16[128,128], index: 8, kind: input, shape index: {}]   ;;  %s5870_s9 = inlined_call_operand.hbm [shape: f32[1,128], index: 9, kind: input, shape index: {}]   ;;  %s5871_s10 = inlined_call_operand.vmem [shape: bf16[64,128], index: 10, kind: input, shape index: {}]   ;;  %s5872_s11 = inlined_call_operand.vmem [shape: f32[2,128], index: 11, kind: input, shape index: {}]   ;;  %s5873_s12 = inlined_call_operand.vmem [shape: f32[1,128], index: 12, kind: input, shape index: {}]   ;;  %s5874_s13 = inlined_call_operand.vmem [shape: f32[1,128], index: 13, kind: input, shape index: {}]   ;;  %s5875_s14 = inlined_call_operand.hbm [shape: f32[160,128], index: 14, kind: output, shape index: {}]  }
   0x1   :  { %5888 = sst [smem:[#allocation25_spill]] %s5875_s14 }
   0x2   :  { %19 = vsyncpa [#allocation3], 0 }
   0x3   :  { %20 = vsyncpa [#allocation6], 0 }
   0x4   :  { %21 = vsyncpa [#allocation9], 0 }
   0x5   :  { %22 = vsyncpa [#allocation12], 0 }
   0x6   :  { %23 = vsyncpa [#allocation4], 0 }
   0x7   :  { %25 = vsyncpa [#allocation4 + $0x1], 0  ;;  %s4725_s29 = smov 0   ;;  %s4727_s30 = smov 0  }
   0x8   :  { %s4729_s15 = smov 0   ;;  %s4731_s16 = smov 0  }
   0x9 LB: > { %5889 = sst [smem:[#allocation19_spill]] %s4618_s29  ;;  %s4746_s17 = sadd.s32 4294967295, %s4630_s16   ;;  %s4630_s16 = sphi %s4731_s16, %s5925_s16   ;;  %s4626_s15 = sphi %s4729_s15, %s5927_s15   ;;  %s4622_s30 = sphi %s4727_s30, %s5929_s30   ;;  %s4618_s29 = sphi %s4725_s29, %s5928_s29  }
   0xa   : > { %5890 = sst [smem:[#allocation20_spill]] %s4626_s15  ;;  %s3609_s18 = sadd.s32 4294967294, %s4630_s16  }
   0xb   : > { %5891 = sst [smem:[#allocation21_spill]] %s4630_s16  ;;  %s4750_s19 = sadd.s32 1, %s4630_s16  }
   0xc   : > { %5892 = sst [smem:[#allocation22_spill]] %s4750_s19  ;;  %s342_s20 = sadd.s32 1, %s4626_s15 }
   0xd   : > { %s339_s21 = ssub.s32 %s4630_s16, %s4750_s19  ;;  %p352_p0 = scmp.ne.s32.totalorder %s4626_s15, %s4622_s30 }
   0xe   : > { %p340_p1 = scmp.eq.s32.totalorder %s339_s21, 0  ;;  %p353_p2 = scmp.eq.s32.totalorder %s4746_s17, 1 }
   0xf   : > { %p358_p3 = scmp.ne.s32.totalorder %s4622_s30, %s4618_s29  ;;  %p359_p4 = scmp.eq.s32.totalorder %s3609_s18, 1 }
  0x10   : > { %s4761_s22 = scalar_select %p340_p1, %s4626_s15, %s342_s20  }
  0x11   : > { %p4763_p5 = por %p353_p2, %p352_p0  ;;  %p4767_p6 = por %p359_p4, %p358_p3 }
  0x12   : > { %5893 = sst [smem:[#allocation23_spill]] %s4761_s22  ;;  %p3610_p7 = scmp.ge.s32.totalorder %s4630_s16, 1 }
  0x13   : > { %s5894_s23 = scalar_select %p4763_p5, 1, 0 }
  0x14   : > { %s5895_s24 = scalar_select %p4767_p6, 1, 0 }
  0x15   : > { %p366_p8 = scmp.lt.s32.totalorder %s4630_s16, 3  ;;  %p5880_p9 = scmp.eq.s32.totalorder %s4746_s17, 0 }
  0x16   : > { %5896 = sst [smem:[#allocation24_spill]] %s5895_s24  ;;  %s4632_s26 = smov [#allocation5]  }
  0x17   : > { %p4774_p10 = pnand %p3610_p7, %p366_p8  ;;  %s392_s27 = sshll.u32 %s4632_s26, 4  ;;  %s393_s27 = int_to_ptr.vmem [resolvable:$true] %s392_s27 }
  0x18   : > { %s4633_s18 = smov [#allocation8]   ;;  %s4409_s22 = scalar_lea.vmem %s393_s27, 8192 }
  0x19   : > { %s5897_s25 = scalar_select %p4774_p10, 1, 0 }
  0x1a   : > { %p4113_p11 = pneg %p4774_p10  ;;  %s416_s20 = sshll.u32 %s4633_s18, 4  ;;  %s417_s20 = int_to_ptr.vmem [resolvable:$true] %s416_s20 }
  0x1b   : > { %p4410_p0 = scmp.ne.s32.totalorder %s393_s27, %s4409_s22  ;;  %p4417_p3 = scmp.lt.s32.totalorder %s393_s27, %s393_s27 }
  0x1c   : > { %p4782_p12 = pnand %p5880_p9, %p4113_p11  ;;  %p4418_p4 = scmp.lt.s32.totalorder %s4409_s22, %s4409_s22 }
  0x1e   : > { %p4788_p13 = pneg %p4782_p12  ;;  %p4419_p7 = por %p4418_p4, %p4417_p3 }
  0x20   : > { %p4412_p1 = pnand %p4410_p0, %p4788_p13 }
  0x22   : > { %p4413_p2 = pneg %p4412_p1 }
  0x24   : > { %p4420_p8 = pnand %p4419_p7, %p4413_p2 }
  0x26   : > { %4423 = shalt.err (!%p4420_p8)
}
  0x27   : > { %s4634_s26 = smov 512   ;;  %s4635_s18 = smov 32  }
  0x28   : > { %4119 = dma.hbm_to_vmem [thread:$0]  (!%p4782_p12), %s5865_s4, 8192, %s393_s27, [#allocation6], %s4634_s26, %s4634_s26, %s4635_s18  }
  0x29   : > { %s4435_s24 = scalar_lea.vmem %s417_s20, 4096  ;;  %p4443_p1 = scmp.lt.s32.totalorder %s417_s20, %s417_s20 }
  0x2a   : > { %p4436_p11 = scmp.ne.s32.totalorder %s417_s20, %s4435_s24  ;;  %p4444_p6 = scmp.lt.s32.totalorder %s4435_s24, %s4435_s24 }
  0x2c   : > { %p4438_p9 = pnand %p4436_p11, %p4788_p13  ;;  %p4445_p5 = por %p4444_p6, %p4443_p1 }
  0x2e   : > { %p4439_p0 = pneg %p4438_p9 }
  0x30   : > { %p4446_p3 = pnand %p4445_p5, %p4439_p0 }
  0x32   : > { %4449 = shalt.err (!%p4446_p3)
}
  0x33   : > { %s4636_s22 = smov 128   ;;  %s4637_s29 = smov 8  }
  0x34   : > { %4125 = dma.hbm_to_vmem [thread:$0]  (!%p4782_p12), %s5867_s6, 4096, %s417_s20, [#allocation9], %s4636_s22, %s4636_s22, %s4637_s29  }
  0x35   : > { %s4638_s15 = smov [#allocation2]   ;;  %s4639_s27 = smov [#allocation7]  }
  0x36   : > { %s379_s19 = sshll.u32 %s4638_s15, 4  ;;  %s406_s26 = sshll.u32 %s4639_s27, 4  ;;  %s380_s19 = int_to_ptr.vmem [resolvable:$true] %s379_s19  ;;  %s407_s26 = int_to_ptr.vmem [resolvable:$true] %s406_s26 }
  0x37   : > { %s4461_s18 = scalar_lea.vmem %s380_s19, 256  ;;  %p4469_p2 = scmp.lt.s32.totalorder %s380_s19, %s380_s19 }
  0x38   : > { %p4462_p9 = scmp.ne.s32.totalorder %s380_s19, %s4461_s18  ;;  %p4470_p4 = scmp.lt.s32.totalorder %s4461_s18, %s4461_s18 }
  0x3a   : > { %p4464_p5 = pnand %p4462_p9, %p4788_p13  ;;  %p4471_p7 = por %p4470_p4, %p4469_p2 }
  0x3c   : > { %p4465_p6 = pneg %p4464_p5 }
  0x3e   : > { %p4472_p8 = pnand %p4471_p7, %p4465_p6 }
  0x40   : > { %4475 = shalt.err (!%p4472_p8)
}
  0x41   : > { %4116 = dma.hbm_to_vmem [thread:$0]  (!%p4782_p12), %s5863_s2, 256, %s380_s19, [#allocation3]  }
  0x42   : > { %s4487_s16 = scalar_lea.vmem %s407_s26, 16  ;;  %s4494_s24 = scalar_lea.vmem %s407_s26, 32 }
  0x43   : > { %p4488_p11 = scmp.ne.s32.totalorder %s407_s26, %s4487_s16  ;;  %p4495_p3 = scmp.lt.s32.totalorder %s407_s26, %s407_s26 }
  0x44   : > { %p4496_p9 = scmp.lt.s32.totalorder %s4494_s24, %s4487_s16 }
  0x45   : > { %p4490_p0 = pnand %p4488_p11, %p4788_p13 }
  0x46   : > { %p4497_p5 = por %p4496_p9, %p4495_p3 }
  0x47   : > { %p4491_p1 = pneg %p4490_p0 }
  0x49   : > { %p4498_p10 = pnand %p4497_p5, %p4491_p1 }
  0x4b   : > { %4501 = shalt.err (!%p4498_p10)
}
  0x4c   : > { %4122 = dma.hbm_to_vmem [thread:$0]  (!%p4782_p12), %s5866_s5, 16, %s407_s26, [#allocation6]  }
  0x4d   : > { %s4640_s15 = smov [#allocation10]   ;;  %s4641_s27 = smov [#allocation11]  }
  0x4e   : > { %s430_s19 = sshll.u32 %s4640_s15, 4  ;;  %s444_s18 = sshll.u32 %s4641_s27, 4  ;;  %s431_s19 = int_to_ptr.vmem [resolvable:$true] %s430_s19  ;;  %s445_s18 = int_to_ptr.vmem [resolvable:$true] %s444_s18 }
  0x4f   : > { %s4513_s14 = scalar_lea.vmem %s431_s19, 64  ;;  %p4521_p7 = scmp.lt.s32.totalorder %s431_s19, %s431_s19 }
  0x50   : > { %p4514_p6 = scmp.ne.s32.totalorder %s431_s19, %s4513_s14  ;;  %p4522_p10 = scmp.lt.s32.totalorder %s4513_s14, %s4513_s14 }
  0x52   : > { %p4516_p2 = pnand %p4514_p6, %p4788_p13  ;;  %p4523_p8 = por %p4522_p10, %p4521_p7 }
  0x54   : > { %p4517_p4 = pneg %p4516_p2 }
  0x56   : > { %p4524_p11 = pnand %p4523_p8, %p4517_p4 }
  0x58   : > { %4527 = shalt.err (!%p4524_p11)
}
  0x59   : > { %4128 = dma.hbm_to_vmem [thread:$0]  (!%p4782_p12), %s5868_s7, 64, %s431_s19, [#allocation9]  }
  0x5a   : > { %s4539_s16 = scalar_lea.vmem %s445_s18, 16  ;;  %s4546_s24 = scalar_lea.vmem %s445_s18, 32 }
  0x5b   : > { %p4540_p0 = scmp.ne.s32.totalorder %s445_s18, %s4539_s16  ;;  %p4547_p9 = scmp.lt.s32.totalorder %s445_s18, %s445_s18 }
  0x5c   : > { %p4548_p5 = scmp.lt.s32.totalorder %s4546_s24, %s4539_s16 }
  0x5d   : > { %p4542_p1 = pnand %p4540_p0, %p4788_p13 }
  0x5e   : > { %p4549_p6 = por %p4548_p5, %p4547_p9 }
  0x5f   : > { %p4543_p3 = pneg %p4542_p1 }
  0x61   : > { %p4550_p2 = pnand %p4549_p6, %p4543_p3 }
  0x63   : > { %4553 = shalt.err (!%p4550_p2)
}
  0x64   : > { %4131 = dma.hbm_to_vmem [thread:$0]  (!%p4782_p12), %s5870_s9, 16, %s445_s18, [#allocation12]  }
  0x65   : > { %p5900_p4 = scmp.ne.s32.totalorder %s5897_s25, 0 }
  0x66   : > { %p5901_p7 = scmp.eq.s32.totalorder (!%p5900_p4), %s4746_s17, 0 }
  0x67   : > { %487 = sbr.rel (%p5900_p4) target bundleno = 1828 (0x724), region = 76 }
  0x6c   : > { %4597 = dma.done.wait (%p5901_p7), [#allocation3], 256   ;;  %p5902_p13 = pmov %p5901_p7 }
  0x6d   : > { %p5903_p10 = pmov %p5901_p7 }
  0x6e   : > { %4599 = vsyncadd (%p5902_p13), [#allocation3], 4294967040 }
  0x6f   : > { %4601 = dma.done.wait (%p5903_p10), [#allocation6], 8208   ;;  %p5904_p8 = pmov %p5901_p7 }
  0x70   : > { %p5905_p11 = pmov %p5901_p7 }
  0x71   : > { %4603 = vsyncadd (%p5904_p8), [#allocation6], 4294959088 }
  0x72   : > { %4605 = dma.done.wait (%p5905_p11), [#allocation9], 4160   ;;  %p5906_p12 = pmov %p5901_p7 }
  0x73   : > { %p5907_p0 = pmov %p5901_p7 }
  0x74   : > { %4607 = vsyncadd (%p5906_p12), [#allocation9], 4294963136 }
  0x75   : > { %4609 = dma.done.wait (%p5907_p0), [#allocation12], 16   ;;  %p5908_p1 = pmov %p5907_p0 }
  0x76   : > { %s558_s25 = smul.u32 10, %s4746_s17  ;;  %v4642_v0 = vmov 0   ;;  %v597_v1 = vld [vmem:[#allocation2] sm:$0xff]  ;;  %vm625_vm0 = vcmask 1043456   ;;  %v598_v2 = vld [vmem:[#allocation2 + $0x8] sm:$0xff]  ;;  %vm609_vm1 = vcmask 64512  }
  0x77   : > { %4611 = vsyncadd (%p5908_p1), [#allocation12], 4294967280  ;;  %670 = vmatprep.mubr.bf16.mxu0 %v4642_v0  ;;  %753 = vmatprep.mubr.bf16.mxu1 %v4642_v0  ;;  %v3628_v3 = vcombine.high %v597_v1, %v597_v1  ;;  %v3630_v4 = vcombine.high %v598_v2, %v598_v2  ;;  %v3627_v5 = vcombine.low %v597_v1, %v597_v1  ;;  %v4206_v16 = vld [vmem:[%s5864_s3 + $0x78] sm:$0xff]   ;;  %v4210_v22 = vld [vmem:[%s5864_s3 + $0x70] sm:$0xff]   ;;  %s3907_s26 = smul.u32 1280, %s4746_s17  ;;  %p5920_p5 = scmp.ne.s32.totalorder %s5894_s23, 0 }
  0x78   : > { %p559_p3 = scmp.lt.s32.totalorder %s558_s25, 19  ;;  %4198 = vset.pattern.permute.xlu0 %v4642_v0  ;;  %4199 = vset.pattern.permute.xlu1 %v4642_v0  ;;  %v3629_v6 = vcombine.low %v598_v2, %v598_v2  ;;  %v4207_v17 = vld [vmem:[%s5864_s3 + $0xf8] sm:$0xff]   ;;  %v4211_v23 = vld [vmem:[%s5864_s3 + $0xf0] sm:$0xff]   ;;  %v4214_v29 = vld [vmem:[%s5864_s3 + $0x68] sm:$0xff]  }
  0x79   : > { %3631 = vmatprep.subr.msk.bf16.mxu0 %vm625_vm0, %v3628_v3  ;;  %3637 = vmatprep.subr.msk.bf16.mxu1 %vm625_vm0, %v3630_v4  ;;  %v627_v11 = vsel %vm625_vm0, %v3627_v5, 0  ;;  %v4208_v18 = vld [vmem:[%s5864_s3 + $0x38] sm:$0xff]   ;;  %v4212_v26 = vld [vmem:[%s5864_s3 + $0x30] sm:$0xff]   ;;  %v4215_v30 = vld [vmem:[%s5864_s3 + $0xe8] sm:$0xff]  }
  0x7a   : > { %s5931_s25 = smov (!%p559_p3, %s558_s25), 19  ;;  %v633_v12 = vsel %vm625_vm0, %v3629_v6, 0  ;;  %653 = vmatpush1.bf16.msra.mxu0 %v627_v11  ;;  %v4209_v21 = vld [vmem:[%s5864_s3 + $0xb8] sm:$0xff]   ;;  %v4213_v28 = vld [vmem:[%s5864_s3 + $0xb0] sm:$0xff]   ;;  %v4216_v31 = vld [vmem:[%s5864_s3 + $0x28] sm:$0xff]   ;;  %v804_v11 = vlaneseq }
  0x7b   : > { %s3625_s28 = sshll.u32 %s5931_s25, 3  ;;  %736 = vmatpush1.bf16.msra.mxu1 %v633_v12  ;;  %3908 = vmatprep.subr.bf16.mxu0 %v4206_v16  ;;  %v4217_v34 = vld [vmem:[%s5864_s3 + $0xa8] sm:$0xff]   ;;  %v4218_v35 = vld [vmem:[%s5864_s3 + $0x60] sm:$0xff]   ;;  %v4222_v42 = vld [vmem:[%s5864_s3 + $0x58] sm:$0xff]   ;;  %s555_s25 = sand.u32 1, %s4622_s30  }
  0x7c   : > { %s4865_s19 = scalar_lea.vmem %s5861_s0, %s3625_s28  ;;  %3954 = vmatprep.subr.bf16.mxu1 %v4207_v17  ;;  %v4219_v36 = vld [vmem:[%s5864_s3 + $0xe0] sm:$0xff]   ;;  %v4223_v43 = vld [vmem:[%s5864_s3 + $0xd8] sm:$0xff]   ;;  %v4226_v48 = vld [vmem:[%s5864_s3 + $0x50] sm:$0xff]   ;;  %v4996_v12 = vand.u32 127, %v804_v11  ;;  %s568_s21 = scalar_lea.vmem %s5862_s1, %s3625_s28 }
  0x7d   : > { %v572_v7 = vld [vmem:[%s4865_s19] sm:$0xff]  ;;  %v573_v8 = vld [vmem:[%s4865_s19 + $0x8] sm:$0xff]  ;;  %v574_v13 = vld [vmem:[%s4865_s19 + $0x10] sm:$0xff]  ;;  %s4086_s28 = smul.u32 80, %s555_s25  ;;  %s5821_s17 = scalar_lea.sflag [#allocation4], %s555_s25 }
  0x7e   : > { %v582_v9 = vcvt.s32.f32 %v572_v7  ;;  %v583_v10 = vcvt.s32.f32 %v573_v8  ;;  %v575_v15 = vld [vmem:[%s4865_s19 + $0x18] sm:$0xff]  ;;  %v584_v19 = vcvt.s32.f32 %v574_v13  ;;  %v576_v24 = vld [vmem:[%s4865_s19 + $0x20] sm:$0xff]  ;;  %v577_v25 = vld [vmem:[%s4865_s19 + $0x28] sm:$0xff]  ;;  %v806_v13 = vadd.s32 128, %v4996_v12 }
  0x7f   : > { %v585_v20 = vcvt.s32.f32 %v575_v15  ;;  %v586_v32 = vcvt.s32.f32 %v576_v24  ;;  %v587_v33 = vcvt.s32.f32 %v577_v25  ;;  %v578_v37 = vld [vmem:[%s4865_s19 + $0x30] sm:$0xff]  ;;  %v579_v38 = vld [vmem:[%s4865_s19 + $0x38] sm:$0xff]  ;;  %v4220_v39 = vld [vmem:[%s5864_s3 + $0x20] sm:$0xff]   ;;  %v807_v15 = vadd.s32 256, %v4996_v12  ;;  %s5772_s29 = scalar_lea.vmem [#allocation13], %s4086_s28  ;;  %s4647_s28 = smov [#allocation13]  }
  0x80   : > { %v592_v14 = vpack.c.bf16 %v583_v10, %v582_v9  ;;  %v4221_v41 = vld [vmem:[%s5864_s3 + $0xa0] sm:$0xff]   ;;  %v4224_v44 = vld [vmem:[%s5864_s3 + $0x18] sm:$0xff]   ;;  %v588_v45 = vcvt.s32.f32 %v578_v37  ;;  %v589_v46 = vcvt.s32.f32 %v579_v38  ;;  %v4227_v49 = vld [vmem:[%s5864_s3 + $0xd0] sm:$0xff]   ;;  %v809_v16 = vand.u32 63, %v4996_v12  ;;  %s3475_s16 = sshll.u32 %s5772_s29, 4  ;;  %s4558_s15 = sshll.u32 %s4647_s28, 4  ;;  %s5815_s16 = int_to_ptr.vmem [resolvable:$true] %s3475_s16  ;;  %s4559_s15 = int_to_ptr.vmem [resolvable:$false] %s4558_s15 }
  0x81   : > { %v593_v27 = vpack.c.bf16 %v585_v20, %v584_v19  ;;  %v594_v40 = vpack.c.bf16 %v587_v33, %v586_v32  ;;  %v4225_v47 = vld [vmem:[%s5864_s3 + $0x98] sm:$0xff]   ;;  %v580_v50 = vld [vmem:[%s4865_s19 + $0x40] sm:$0xff]  ;;  %v581_v51 = vld [vmem:[%s4865_s19 + $0x48] sm:$0xff]  ;;  %v810_v17 = vand.u32 63, %v806_v13  ;;  %s5919_s19 = sld [smem:[#allocation25_spill]]  ;;  %s4560_s27 = scalar_lea.vmem %s4559_s15, 2560 }
  0x82   : > { %3632 = vmatmul.mubr.msk.bf16.vlgmr.msra.gmra.mxu0 %vm609_vm1, %v592_v14  ;;  %3638 = vmatmul.mubr.msk.bf16.vlgmr.msra.gmra.mxu1 %vm609_vm1, %v592_v14  ;;  %v4228_v52 = vld [vmem:[%s5864_s3 + $0x10] sm:$0xff]   ;;  %v595_v53 = vpack.c.bf16 %v589_v46, %v588_v45  ;;  %v4230_v55 = vld [vmem:[%s5864_s3 + $0x48] sm:$0xff]   ;;  %v590_v57 = vcvt.s32.f32 %v580_v50  ;;  %v591_v58 = vcvt.s32.f32 %v581_v51  ;;  %v4234_v62 = vld [vmem:[%s5864_s3 + $0x40] sm:$0xff]   ;;  %v808_v14 = vadd.s32 384, %v4996_v12  ;;  %p4561_p4 = scmp.lt.s32.totalorder %s5815_s16, %s4559_s15 }
  0x83   : > { %680 = vmatprep.mubr.bf16.mxu0 %v4642_v0  ;;  %763 = vmatprep.mubr.bf16.mxu1 %v4642_v0  ;;  %v4229_v54 = vld [vmem:[%s5864_s3 + $0x90] sm:$0xff]   ;;  %v4231_v56 = vld [vmem:[%s5864_s3 + $0xc8] sm:$0xff]   ;;  %v4235_v63 = vld [vmem:[%s5864_s3 + $0xc0] sm:$0xff]   ;;  %v5004_v25 = vcvt.s32.f32 %v810_v17 }
  0x84   : > { %3909 = vmatpush3.bf16.msra.mxu0 %v4208_v18  ;;  %3955 = vmatpush3.bf16.msra.mxu1 %v4209_v21  ;;  %v596_v59 = vpack.c.bf16 %v591_v58, %v590_v57  ;;  %v4232_v60 = vld [vmem:[%s5864_s3 + $0x8] sm:$0xff]   ;;  %v4236_v1 = vld [vmem:[%s5864_s3] sm:$0xff]   ;;  %v1420_v3 = vld [vmem:[#allocation5 + $0x1c0] sm:$0xff]  ;;  %v812_v20 = vand.u32 63, %v808_v14  ;;  %v811_v21 = vand.u32 63, %v807_v15 }
  0x85   : > { %3910 = vmatprep.subr.bf16.mxu0 %v4210_v22  ;;  %3956 = vmatprep.subr.bf16.mxu1 %v4211_v23  ;;  %v4233_v61 = vld [vmem:[%s5864_s3 + $0x88] sm:$0xff]   ;;  %v4237_v2 = vld [vmem:[%s5864_s3 + $0x80] sm:$0xff]   ;;  %v1424_v4 = vld [vmem:[#allocation5 + $0x1e0] sm:$0xff]  ;;  %v5002_v22 = vcvt.s32.f32 %v809_v16 }
  0x86   : > { %v4991_v5 = vld [vmem:[#allocation5 + $0x1c8] sm:$0xff]  ;;  %v3811_v6 = vcombine.low %v1420_v3, %v1424_v4  ;;  %v3812_v7 = vcombine.high %v1420_v3, %v1424_v4  ;;  %v1388_v4 = vld [vmem:[#allocation5 + $0xc0] sm:$0xff] }
  0x87   : > { %v1425_v8 = vld [vmem:[#allocation5 + $0x1e8] sm:$0xff]  ;;  %s5813_s22 = scalar_lea.hbm %s5919_s19, %s3907_s26 }
  0x88   : > { %3911 = vmatpush3.bf16.msra.mxu0 %v4212_v26  ;;  %3957 = vmatpush3.bf16.msra.mxu1 %v4213_v28  ;;  %v3813_v9 = vcombine.low %v4991_v5, %v1425_v8  ;;  %v3814_v10 = vcombine.high %v4991_v5, %v1425_v8  ;;  %v5006_v26 = vcvt.s32.f32 %v812_v20  ;;  %v1405_v46 = vld [vmem:[#allocation5 + $0x148] sm:$0xff]  ;;  %v1392_v5 = vld [vmem:[#allocation5 + $0xe0] sm:$0xff] }
  0x89   : > { %3912 = vmatprep.subr.bf16.mxu0 %v4214_v29  ;;  %3958 = vmatprep.subr.bf16.mxu1 %v4215_v30  ;;  %v5008_v29 = vcvt.s32.f32 %v811_v21  ;;  %v1412_v30 = vld [vmem:[#allocation5 + $0x180] sm:$0xff]  ;;  %v1389_v8 = vld [vmem:[#allocation5 + $0xc8] sm:$0xff]  ;;  %v3780_v16 = vcombine.high %v1388_v4, %v1392_v5 }
  0x8a   : > { %3633 = vmatmul.mubr.msk.bf16.gmra.mxu0 %vm609_vm1, %v593_v27  ;;  %3639 = vmatmul.mubr.msk.bf16.gmra.mxu1 %vm609_vm1, %v593_v27 }
  0x8b   : > { %690 = vmatprep.mubr.bf16.mxu0 %v4642_v0  ;;  %773 = vmatprep.mubr.bf16.mxu1 %v4642_v0 }
  0x8c   : > { %3913 = vmatpush3.bf16.msra.mxu0 %v4216_v31  ;;  %3959 = vmatpush3.bf16.msra.mxu1 %v4217_v34  ;;  %v1416_v31 = vld [vmem:[#allocation5 + $0x1a0] sm:$0xff]  ;;  %v1413_v34 = vld [vmem:[#allocation5 + $0x188] sm:$0xff] }
  0x8d   : > { %3914 = vmatprep.subr.bf16.mxu0 %v4218_v35  ;;  %3960 = vmatprep.subr.bf16.mxu1 %v4219_v36  ;;  %v1417_v35 = vld [vmem:[#allocation5 + $0x1a8] sm:$0xff] }
  0x8e   : > { %v3805_v51 = vcombine.low %v1413_v34, %v1417_v35 }
  0x90   : > { %3915 = vmatpush3.bf16.msra.mxu0 %v4220_v39  ;;  %3961 = vmatpush3.bf16.msra.mxu1 %v4221_v41  ;;  %v3804_v39 = vcombine.high %v1412_v30, %v1416_v31  ;;  %v3806_v41 = vcombine.high %v1413_v34, %v1417_v35 }
  0x91   : > { %3916 = vmatprep.subr.bf16.mxu0 %v4222_v42  ;;  %3962 = vmatprep.subr.bf16.mxu1 %v4223_v43  ;;  %v1404_v42 = vld [vmem:[#allocation5 + $0x140] sm:$0xff] }
  0x92   : > { %3634 = vmatmul.mubr.msk.bf16.gmra.mxu0 %vm609_vm1, %v594_v40  ;;  %3640 = vmatmul.mubr.msk.bf16.gmra.mxu1 %vm609_vm1, %v594_v40  ;;  %v4643_v40 = vmov 1.0|1.0   ;;  %v1408_v43 = vld [vmem:[#allocation5 + $0x160] sm:$0xff] }
  0x93   : > { %700 = vmatprep.mubr.bf16.mxu0 %v4642_v0  ;;  %783 = vmatprep.mubr.bf16.mxu1 %v4642_v0  ;;  %v3795_v58 = vcombine.low %v1404_v42, %v1408_v43 }
  0x94   : > { %3917 = vmatpush3.bf16.msra.mxu0 %v4224_v44  ;;  %3963 = vmatpush3.bf16.msra.mxu1 %v4225_v47  ;;  %v1409_v47 = vld [vmem:[#allocation5 + $0x168] sm:$0xff] }
  0x95   : > { %3918 = vmatprep.subr.bf16.mxu0 %v4226_v48  ;;  %3964 = vmatprep.subr.bf16.mxu1 %v4227_v49  ;;  %v3803_v48 = vcombine.low %v1412_v30, %v1416_v31 }
  0x98   : > { %3919 = vmatpush3.bf16.msra.mxu0 %v4228_v52  ;;  %3965 = vmatpush3.bf16.msra.mxu1 %v4229_v54  ;;  %v3796_v52 = vcombine.high %v1404_v42, %v1408_v43  ;;  %v1396_v54 = vld [vmem:[#allocation5 + $0x100] sm:$0xff] }
  0x99   : > { %3920 = vmatprep.subr.bf16.mxu0 %v4230_v55  ;;  %3966 = vmatprep.subr.bf16.mxu1 %v4231_v56  ;;  %v1400_v55 = vld [vmem:[#allocation5 + $0x120] sm:$0xff] }
  0x9a   : > { %3635 = vmatmul.mubr.msk.bf16.gmra.mxu0 %vm609_vm1, %v595_v53  ;;  %3641 = vmatmul.mubr.msk.bf16.gmra.mxu1 %vm609_vm1, %v595_v53  ;;  %v3798_v53 = vcombine.high %v1405_v46, %v1409_v47 }
  0x9b   : > { %710 = vmatprep.mubr.bf16.mxu0 %v4642_v0  ;;  %793 = vmatprep.mubr.bf16.mxu1 %v4642_v0 }
  0x9c   : > { %3921 = vmatpush3.bf16.msra.mxu0 %v4232_v60  ;;  %3967 = vmatpush3.bf16.msra.mxu1 %v4233_v61  ;;  %v1401_v60 = vld [vmem:[#allocation5 + $0x128] sm:$0xff] }
  0x9d   : > { %3922 = vmatprep.subr.bf16.mxu0 %v4234_v62  ;;  %3968 = vmatprep.subr.bf16.mxu1 %v4235_v63 }
  0xa0   : > { %3923 = vmatpush3.bf16.msra.mxu0 %v4236_v1  ;;  %3969 = vmatpush3.bf16.msra.mxu1 %v4237_v2  ;;  %v3797_v1 = vcombine.low %v1405_v46, %v1409_v47  ;;  %v3788_v2 = vcombine.high %v1396_v54, %v1400_v55 }
  0xa1   : > { %1748 = vmatprep.subr.bf16.mxu0 %v3812_v7  ;;  %1831 = vmatprep.subr.bf16.mxu1 %v3814_v10  ;;  %v3787_v10 = vcombine.low %v1396_v54, %v1400_v55 }
  0xa2   : > { %3636 = vmatmul.mubr.msk.bf16.gmra.mxu0 %vm609_vm1, %v596_v59  ;;  %3642 = vmatmul.mubr.msk.bf16.gmra.mxu1 %vm609_vm1, %v596_v59  ;;  %v1397_v59 = vld [vmem:[#allocation5 + $0x108] sm:$0xff] }
  0xa3   : > { %v3790_v3 = vcombine.high %v1397_v59, %v1401_v60  ;;  %v3789_v15 = vcombine.low %v1397_v59, %v1401_v60  ;;  %v1369_v60 = vld [vmem:[#allocation5 + $0x28] sm:$0xff] }
 0x142   : > { %v672_v18 = vpop.f32.mrf.mxu0  ;;  %v755_v19 = vpop.f32.mrf.mxu1 }
 0x143   : > { %vm817_vm3 = vcmp.eq.f32.partialorder %v672_v18, %v5002_v22  ;;  %vm819_vm11 = vcmp.eq.f32.partialorder %v755_v19, %v5008_v29  ;;  %v1380_v18 = vld [vmem:[#allocation5 + $0x80] sm:$0xff] }
 0x144   : > { %v674_v23 = vpop.f32.mrf.mxu0  ;;  %v757_v24 = vpop.f32.mrf.mxu1  ;;  %v1384_v19 = vld [vmem:[#allocation5 + $0xa0] sm:$0xff] }
 0x145   : > { %vm818_vm4 = vcmp.eq.f32.partialorder %v674_v23, %v5004_v25  ;;  %vm820_vm9 = vcmp.eq.f32.partialorder %v757_v24, %v5006_v26  ;;  %v3779_v23 = vcombine.low %v1388_v4, %v1392_v5  ;;  %v3772_v31 = vcombine.high %v1380_v18, %v1384_v19  ;;  %v1423_v5 = vld [vmem:[#allocation5 + $0x1d8] sm:$0xff] }
 0x146   : > { %v676_v27 = vpop.f32.mrf.mxu0  ;;  %v759_v28 = vpop.f32.mrf.mxu1  ;;  %v3771_v34 = vcombine.low %v1380_v18, %v1384_v19 }
 0x147   : > { %vm821_vm2 = vcmp.eq.f32.partialorder %v676_v27, %v5002_v22  ;;  %vm823_vm6 = vcmp.eq.f32.partialorder %v759_v28, %v5008_v29 }
 0x148   : > { %v678_v32 = vpop.f32.mrf.mxu0  ;;  %v761_v33 = vpop.f32.mrf.mxu1  ;;  %vm5013_vm5 = vmpackc.low %vm821_vm2, %vm817_vm3 }
 0x149   : > { %vm822_vm7 = vcmp.eq.f32.partialorder %v678_v32, %v5004_v25  ;;  %vm824_vm8 = vcmp.eq.f32.partialorder %v761_v33, %v5006_v26  ;;  %vm3737_vm13 = vmpackc.low %vm823_vm6, %vm819_vm11 }
 0x14a   : > { %vm3715_vm10 = vmpackc.low %vm822_vm7, %vm818_vm4  ;;  %v682_v37 = vpop.f32.mrf.mxu0  ;;  %v765_v38 = vpop.f32.mrf.mxu1 }
 0x14b   : > { %vm3735_vm12 = vmpackc.low %vm824_vm8, %vm820_vm9  ;;  %3716 = vmatprep.mubr.msk.bf16.mxu0 %vm3715_vm10, %v4643_v40  ;;  %vm825_vm15 = vcmp.eq.f32.partialorder %v682_v37, %v5002_v22  ;;  %vm827_vm7 = vcmp.eq.f32.partialorder %v765_v38, %v5008_v29 }
 0x14c   : > { %3736 = vmatprep.mubr.msk.bf16.mxu1 %vm3735_vm12, %v4643_v40  ;;  %v684_v44 = vpop.f32.mrf.mxu0  ;;  %v767_v45 = vpop.f32.mrf.mxu1  ;;  %3718 = vmatmul.mubr.msk.bf16.vlgmr.msra.gmra.mxu0 %vm5013_vm5, %v4643_v40 }
 0x14d   : > { %3738 = vmatmul.mubr.msk.bf16.vlgmr.msra.gmra.mxu1 %vm3737_vm13, %v4643_v40  ;;  %1749 = vmatpush1.bf16.msra.mxu0 %v3811_v6  ;;  %vm826_vm0 = vcmp.eq.f32.partialorder %v684_v44, %v5004_v25  ;;  %vm828_vm5 = vcmp.eq.f32.partialorder %v767_v45, %v5006_v26 }
 0x14e   : > { %v686_v49 = vpop.f32.mrf.mxu0  ;;  %v769_v50 = vpop.f32.mrf.mxu1  ;;  %1750 = vmatprep.subr.bf16.mxu0 %v3804_v39  ;;  %1832 = vmatpush1.bf16.msra.mxu1 %v3813_v9  ;;  %v1393_v9 = vld [vmem:[#allocation5 + $0xe8] sm:$0xff] }
 0x14f   : > { %vm829_vm14 = vcmp.eq.f32.partialorder %v686_v49, %v5002_v22  ;;  %1833 = vmatprep.subr.bf16.mxu1 %v3806_v41  ;;  %vm831_vm2 = vcmp.eq.f32.partialorder %v769_v50, %v5008_v29  ;;  %v3782_v17 = vcombine.high %v1389_v8, %v1393_v9  ;;  %v3781_v30 = vcombine.low %v1389_v8, %v1393_v9  ;;  %v1376_v50 = vld [vmem:[#allocation5 + $0x60] sm:$0xff] }
 0x150   : > { %v688_v56 = vpop.f32.mrf.mxu0  ;;  %v771_v57 = vpop.f32.mrf.mxu1  ;;  %vm5033_vm1 = vmpackc.low %vm829_vm14, %vm825_vm15 }
 0x151   : > { %vm830_vm3 = vcmp.eq.f32.partialorder %v688_v56, %v5004_v25  ;;  %vm832_vm4 = vcmp.eq.f32.partialorder %v771_v57, %v5006_v26  ;;  %1751 = vmatpush1.bf16.msra.mxu0 %v3803_v48  ;;  %vm3741_vm9 = vmpackc.low %vm831_vm2, %vm827_vm7  ;;  %v1368_v57 = vld [vmem:[#allocation5 + $0x20] sm:$0xff] }
 0x152   : > { %vm3719_vm6 = vmpackc.low %vm830_vm3, %vm826_vm0  ;;  %v692_v62 = vpop.f32.mrf.mxu0  ;;  %v775_v63 = vpop.f32.mrf.mxu1  ;;  %1752 = vmatprep.subr.bf16.mxu0 %v3796_v52  ;;  %1834 = vmatpush1.bf16.msra.mxu1 %v3805_v51  ;;  %v1373_v51 = vld [vmem:[#allocation5 + $0x48] sm:$0xff] }
 0x153   : > { %vm3739_vm8 = vmpackc.low %vm832_vm4, %vm828_vm5  ;;  %3720 = vmatprep.mubr.msk.bf16.mxu0 %vm3719_vm6, %v4643_v40  ;;  %1835 = vmatprep.subr.bf16.mxu1 %v3798_v53  ;;  %vm833_vm11 = vcmp.eq.f32.partialorder %v692_v62, %v5002_v22  ;;  %vm835_vm3 = vcmp.eq.f32.partialorder %v775_v63, %v5008_v29  ;;  %v1377_v53 = vld [vmem:[#allocation5 + $0x68] sm:$0xff] }
 0x154   : > { %3740 = vmatprep.mubr.msk.bf16.mxu1 %vm3739_vm8, %v4643_v40  ;;  %v694_v6 = vpop.f32.mrf.mxu0  ;;  %v777_v7 = vpop.f32.mrf.mxu1  ;;  %3722 = vmatmul.mubr.msk.bf16.gmra.mxu0 %vm5033_vm1, %v4643_v40  ;;  %v3765_v55 = vcombine.low %v1373_v51, %v1377_v53  ;;  %v3766_v56 = vcombine.high %v1373_v51, %v1377_v53 }
 0x155   : > { %3742 = vmatmul.mubr.msk.bf16.gmra.mxu1 %vm3741_vm9, %v4643_v40  ;;  %1753 = vmatpush1.bf16.msra.mxu0 %v3795_v58  ;;  %vm834_vm12 = vcmp.eq.f32.partialorder %v694_v6, %v5004_v25  ;;  %vm836_vm1 = vcmp.eq.f32.partialorder %v777_v7, %v5006_v26  ;;  %v1365_v58 = vld [vmem:[#allocation5 + $0x8] sm:$0xff]  ;;  %v1427_v6 = vld [vmem:[#allocation5 + $0x1f8] sm:$0xff] }
 0x156   : > { %v696_v13 = vpop.f32.mrf.mxu0  ;;  %v779_v14 = vpop.f32.mrf.mxu1  ;;  %1754 = vmatprep.subr.bf16.mxu0 %v3788_v2  ;;  %1836 = vmatpush1.bf16.msra.mxu1 %v3797_v1  ;;  %v3757_v62 = vcombine.low %v1365_v58, %v1369_v60  ;;  %v3758_v63 = vcombine.high %v1365_v58, %v1369_v60  ;;  %v1422_v1 = vld [vmem:[#allocation5 + $0x1d0] sm:$0xff]  ;;  %v3817_v7 = vcombine.low %v1423_v5, %v1427_v6  ;;  %v1403_v60 = vld [vmem:[#allocation5 + $0x138] sm:$0xff] }
 0x157   : > { %vm837_vm10 = vcmp.eq.f32.partialorder %v696_v13, %v5002_v22  ;;  %1837 = vmatprep.subr.bf16.mxu1 %v3790_v3  ;;  %vm839_vm14 = vcmp.eq.f32.partialorder %v779_v14, %v5008_v29  ;;  %v1426_v2 = vld [vmem:[#allocation5 + $0x1f0] sm:$0xff]  ;;  %v3818_v8 = vcombine.high %v1423_v5, %v1427_v6 }
 0x158   : > { %v698_v20 = vpop.f32.mrf.mxu0  ;;  %v781_v21 = vpop.f32.mrf.mxu1  ;;  %vm5053_vm13 = vmpackc.low %vm837_vm10, %vm833_vm11  ;;  %v3815_v3 = vcombine.low %v1422_v1, %v1426_v2  ;;  %v3816_v4 = vcombine.high %v1422_v1, %v1426_v2 }
 0x159   : > { %vm838_vm15 = vcmp.eq.f32.partialorder %v698_v20, %v5004_v25  ;;  %vm840_vm0 = vcmp.eq.f32.partialorder %v781_v21, %v5006_v26  ;;  %1755 = vmatpush1.bf16.msra.mxu0 %v3787_v10  ;;  %vm3745_vm5 = vmpackc.low %vm839_vm14, %vm835_vm3 }
 0x15a   : > { %vm3723_vm2 = vmpackc.low %vm838_vm15, %vm834_vm12  ;;  %v702_v27 = vpop.f32.mrf.mxu0  ;;  %v785_v28 = vpop.f32.mrf.mxu1  ;;  %1756 = vmatprep.subr.bf16.mxu0 %v3780_v16  ;;  %1838 = vmatpush1.bf16.msra.mxu1 %v3789_v15 }
 0x15b   : > { %vm3743_vm4 = vmpackc.low %vm840_vm0, %vm836_vm1  ;;  %3724 = vmatprep.mubr.msk.bf16.mxu0 %vm3723_vm2, %v4643_v40  ;;  %1839 = vmatprep.subr.bf16.mxu1 %v3782_v17  ;;  %vm841_vm7 = vcmp.eq.f32.partialorder %v702_v27, %v5002_v22  ;;  %vm843_vm15 = vcmp.eq.f32.partialorder %v785_v28, %v5008_v29  ;;  %v1414_v28 = vld [vmem:[#allocation5 + $0x190] sm:$0xff] }
 0x15c   : > { %3744 = vmatprep.mubr.msk.bf16.mxu1 %vm3743_vm4, %v4643_v40  ;;  %v704_v32 = vpop.f32.mrf.mxu0  ;;  %v787_v33 = vpop.f32.mrf.mxu1  ;;  %3726 = vmatmul.mubr.msk.bf16.gmra.mxu0 %vm5053_vm13, %v4643_v40 }
 0x15d   : > { %3746 = vmatmul.mubr.msk.bf16.gmra.mxu1 %vm3745_vm5, %v4643_v40  ;;  %1757 = vmatpush1.bf16.msra.mxu0 %v3779_v23  ;;  %vm842_vm8 = vcmp.eq.f32.partialorder %v704_v32, %v5004_v25  ;;  %vm844_vm13 = vcmp.eq.f32.partialorder %v787_v33, %v5006_v26 }
 0x15e   : > { %v706_v35 = vpop.f32.mrf.mxu0  ;;  %v789_v36 = vpop.f32.mrf.mxu1  ;;  %1758 = vmatprep.subr.bf16.mxu0 %v3772_v31  ;;  %1840 = vmatpush1.bf16.msra.mxu1 %v3781_v30  ;;  %v1418_v30 = vld [vmem:[#allocation5 + $0x1b0] sm:$0xff] }
 0x15f   : > { %vm845_vm6 = vcmp.eq.f32.partialorder %v706_v35, %v5002_v22  ;;  %vm847_vm10 = vcmp.eq.f32.partialorder %v789_v36, %v5008_v29  ;;  %v1419_v35 = vld [vmem:[#allocation5 + $0x1b8] sm:$0xff]  ;;  %v3808_v39 = vcombine.high %v1414_v28, %v1418_v30 }
 0x160   : > { %v708_v37 = vpop.f32.mrf.mxu0  ;;  %v791_v38 = vpop.f32.mrf.mxu1  ;;  %vm5073_vm9 = vmpackc.low %vm845_vm6, %vm841_vm7 }
 0x161   : > { %vm846_vm11 = vcmp.eq.f32.partialorder %v708_v37, %v5004_v25  ;;  %vm848_vm12 = vcmp.eq.f32.partialorder %v791_v38, %v5006_v26  ;;  %1759 = vmatpush1.bf16.msra.mxu0 %v3771_v34  ;;  %vm3749_vm1 = vmpackc.low %vm847_vm10, %vm843_vm15  ;;  %v1415_v34 = vld [vmem:[#allocation5 + $0x198] sm:$0xff] }
 0x162   : > { %vm3727_vm14 = vmpackc.low %vm846_vm11, %vm842_vm8  ;;  %v712_v41 = vpop.f32.mrf.mxu0  ;;  %v795_v42 = vpop.f32.mrf.mxu1 }
 0x163   : > { %vm3747_vm0 = vmpackc.low %vm848_vm12, %vm844_vm13  ;;  %3728 = vmatprep.mubr.msk.bf16.mxu0 %vm3727_vm14, %v4643_v40  ;;  %vm849_vm3 = vcmp.eq.f32.partialorder %v712_v41, %v5002_v22  ;;  %vm851_vm11 = vcmp.eq.f32.partialorder %v795_v42, %v5008_v29  ;;  %v1406_v41 = vld [vmem:[#allocation5 + $0x150] sm:$0xff] }
 0x164   : > { %3748 = vmatprep.mubr.msk.bf16.mxu1 %vm3747_vm0, %v4643_v40  ;;  %v714_v43 = vpop.f32.mrf.mxu0  ;;  %v797_v44 = vpop.f32.mrf.mxu1  ;;  %3730 = vmatmul.mubr.msk.bf16.gmra.mxu0 %vm5073_vm9, %v4643_v40  ;;  %vm4645_vm0 = vmmov 0  }
 0x165   : > { %3750 = vmatmul.mubr.msk.bf16.gmra.mxu1 %vm3749_vm1, %v4643_v40  ;;  %vm850_vm4 = vcmp.eq.f32.partialorder %v714_v43, %v5004_v25  ;;  %vm852_vm9 = vcmp.eq.f32.partialorder %v797_v44, %v5006_v26  ;;  %v3810_v43 = vcombine.high %v1415_v34, %v1419_v35  ;;  %v1410_v44 = vld [vmem:[#allocation5 + $0x170] sm:$0xff]  ;;  %vm3047_vm1 = vcmask 523264  }
 0x166   : > { %v716_v45 = vpop.f32.mrf.mxu0  ;;  %v799_v46 = vpop.f32.mrf.mxu1 }
 0x167   : > { %vm853_vm2 = vcmp.eq.f32.partialorder %v716_v45, %v5002_v22  ;;  %vm855_vm6 = vcmp.eq.f32.partialorder %v799_v46, %v5008_v29  ;;  %v1381_v22 = vld [vmem:[#allocation5 + $0x88] sm:$0xff]  ;;  %v1372_v29 = vld [vmem:[#allocation5 + $0x40] sm:$0xff]  ;;  %v1407_v45 = vld [vmem:[#allocation5 + $0x158] sm:$0xff] }
 0x168   : > { %v718_v47 = vpop.f32.mrf.mxu0  ;;  %v801_v48 = vpop.f32.mrf.mxu1  ;;  %vm3733_vm5 = vmpackc.low %vm853_vm2, %vm849_vm3  ;;  %v3764_v52 = vcombine.high %v1372_v29, %v1376_v50  ;;  %v3763_v54 = vcombine.low %v1372_v29, %v1376_v50  ;;  %v1411_v46 = vld [vmem:[#allocation5 + $0x178] sm:$0xff]  ;;  %v3809_v29 = vcombine.low %v1415_v34, %v1419_v35 }
 0x169   : > { %vm854_vm7 = vcmp.eq.f32.partialorder %v718_v47, %v5004_v25  ;;  %vm856_vm8 = vcmp.eq.f32.partialorder %v801_v48, %v5006_v26  ;;  %vm3753_vm13 = vmpackc.low %vm855_vm6, %vm851_vm11  ;;  %v1385_v25 = vld [vmem:[#allocation5 + $0xa8] sm:$0xff]  ;;  %v3802_v53 = vcombine.high %v1407_v45, %v1411_v46  ;;  %v1383_v35 = vld [vmem:[#allocation5 + $0x98] sm:$0xff] }
 0x16a   : > { %vm3731_vm10 = vmpackc.low %vm854_vm7, %vm850_vm4  ;;  %v3774_v26 = vcombine.high %v1381_v22, %v1385_v25  ;;  %v3773_v49 = vcombine.low %v1381_v22, %v1385_v25  ;;  %1760 = vmatprep.subr.bf16.mxu0 %v3764_v52  ;;  %v3800_v52 = vcombine.high %v1406_v41, %v1410_v44 }
 0x16b   : > { %vm3751_vm12 = vmpackc.low %vm856_vm8, %vm852_vm9  ;;  %3732 = vmatprep.mubr.msk.bf16.mxu0 %vm3731_vm10, %v4643_v40  ;;  %1761 = vmatpush1.bf16.msra.mxu0 %v3763_v54 }
 0x16c   : > { %3752 = vmatprep.mubr.msk.bf16.mxu1 %vm3751_vm12, %v4643_v40  ;;  %3734 = vmatmul.mubr.msk.bf16.gmra.mxu0 %vm3733_vm5, %v4643_v40 }
 0x16d   : > { %3754 = vmatmul.mubr.msk.bf16.gmra.mxu1 %vm3753_vm13, %v4643_v40  ;;  %1780 = vmatprep.mubr.bf16.mxu0 %v4642_v0  ;;  %v1364_v40 = vld [vmem:[#allocation5] sm:$0xff] }
 0x16e   : > { %1863 = vmatprep.mubr.bf16.mxu1 %v4642_v0  ;;  %1841 = vmatprep.subr.bf16.mxu1 %v3774_v26  ;;  %v3756_v59 = vcombine.high %v1364_v40, %v1368_v57  ;;  %v3755_v61 = vcombine.low %v1364_v40, %v1368_v57 }
 0x16f   : > { %1842 = vmatpush1.bf16.msra.mxu1 %v3773_v49  ;;  %v3807_v49 = vcombine.low %v1414_v28, %v1418_v30  ;;  %v1386_v28 = vld [vmem:[#allocation5 + $0xb0] sm:$0xff] }
 0x170   : > { %1843 = vmatprep.subr.bf16.mxu1 %v3766_v56  ;;  %1762 = vmatprep.subr.bf16.mxu0 %v3756_v59  ;;  %v1402_v56 = vld [vmem:[#allocation5 + $0x130] sm:$0xff]  ;;  %v1399_v59 = vld [vmem:[#allocation5 + $0x118] sm:$0xff] }
 0x171   : > { %1763 = vmatpush1.bf16.msra.mxu0 %v3755_v61  ;;  %v3794_v6 = vcombine.high %v1399_v59, %v1403_v60 }
 0x172   : > { %1914 = vmatprep.subr.bf16.mxu0 %v3816_v4  ;;  %v1390_v4 = vld [vmem:[#allocation5 + $0xd0] sm:$0xff] }
 0x173   : > { %1844 = vmatpush1.bf16.msra.mxu1 %v3765_v55  ;;  %v1398_v55 = vld [vmem:[#allocation5 + $0x110] sm:$0xff] }
 0x174   : > { %1845 = vmatprep.subr.bf16.mxu1 %v3758_v63  ;;  %v3801_v63 = vcombine.low %v1407_v45, %v1411_v46  ;;  %v1378_v45 = vld [vmem:[#allocation5 + $0x70] sm:$0xff] }
 0x177   : > { %1846 = vmatpush1.bf16.msra.mxu1 %v3757_v62  ;;  %v3799_v62 = vcombine.low %v1406_v41, %v1410_v44  ;;  %v1374_v44 = vld [vmem:[#allocation5 + $0x50] sm:$0xff] }
 0x178   : > { %1997 = vmatprep.subr.bf16.mxu1 %v3818_v8  ;;  %v1391_v8 = vld [vmem:[#allocation5 + $0xd8] sm:$0xff] }
 0x20c   : > { %v3924_v9 = vpop.f32.mrf.mxu0 }
 0x20d   : > { %v3970_v10 = vpop.f32.mrf.mxu1 }
 0x20e   : > { %v3925_v13 = vpop.f32.mrf.mxu0 }
 0x20f   : > { %v3971_v14 = vpop.f32.mrf.mxu1  ;;  %v3926_v17 = vadd.f32 %v3925_v13, %v3924_v9  ;;  %v1395_v9 = vld [vmem:[#allocation5 + $0xf8] sm:$0xff] }
 0x210   : > { %v3927_v15 = vpop.f32.mrf.mxu0  ;;  %v3972_v18 = vadd.f32 %v3971_v14, %v3970_v10 }
 0x211   : > { %v3973_v16 = vpop.f32.mrf.mxu1 }
 0x212   : > { %v3928_v19 = vpop.f32.mrf.mxu0  ;;  %v1321_v31 = vadd.f32 %v3972_v18, %v3926_v17  ;;  %v3791_v17 = vcombine.low %v1398_v55, %v1402_v56  ;;  %v3793_v18 = vcombine.low %v1399_v59, %v1403_v60  ;;  %v1370_v59 = vld [vmem:[#allocation5 + $0x30] sm:$0xff] }
 0x213   : > { %v3929_v20 = vadd.f32 %v3928_v19, %v3927_v15  ;;  %v3974_v21 = vpop.f32.mrf.mxu1 }
 0x214   : > { %v3975_v23 = vadd.f32 %v3974_v21, %v3973_v16  ;;  %v3930_v24 = vpop.f32.mrf.mxu0 }
 0x215   : > { %v3976_v27 = vpop.f32.mrf.mxu1 }
 0x216   : > { %v1324_v32 = vadd.f32 %v3975_v23, %v3929_v20  ;;  %v3931_v33 = vpop.f32.mrf.mxu0  ;;  %v3786_v23 = vcombine.high %v1391_v8, %v1395_v9 }
 0x217   : > { %v3977_v36 = vpop.f32.mrf.mxu1  ;;  %v3932_v47 = vadd.f32 %v3931_v33, %v3930_v24 }
 0x218   : > { %v5102_v37 = vpack.c.bf16 %v1324_v32, %v1321_v31  ;;  %v3933_v38 = vpop.f32.mrf.mxu0  ;;  %v3978_v48 = vadd.f32 %v3977_v36, %v3976_v27  ;;  %v1382_v27 = vld [vmem:[#allocation5 + $0x90] sm:$0xff]  ;;  %v1387_v36 = vld [vmem:[#allocation5 + $0xb8] sm:$0xff] }
 0x219   : > { %v3979_v42 = vpop.f32.mrf.mxu1  ;;  %v3776_v41 = vcombine.high %v1382_v27, %v1386_v28 }
 0x21a   : > { %1781 = vmatmul.mubr.bf16.vlgmr.msra.gmra.mxu0 %v5102_v37  ;;  %1864 = vmatmul.mubr.bf16.vlgmr.msra.gmra.mxu1 %v5102_v37  ;;  %v3934_v22 = vpop.f32.mrf.mxu0  ;;  %v1329_v40 = vadd.f32 %v3978_v48, %v3932_v47 }
 0x21b   : > { %1915 = vmatpush1.bf16.msra.mxu0 %v3815_v3  ;;  %v3935_v25 = vadd.f32 %v3934_v22, %v3933_v38  ;;  %v3980_v26 = vpop.f32.mrf.mxu1  ;;  %1998 = vmatpush1.bf16.msra.mxu1 %v3817_v7  ;;  %v3792_v3 = vcombine.high %v1398_v55, %v1402_v56  ;;  %v1394_v7 = vld [vmem:[#allocation5 + $0xf0] sm:$0xff]  ;;  %v3778_v22 = vcombine.high %v1383_v35, %v1387_v36  ;;  %v1379_v55 = vld [vmem:[#allocation5 + $0x78] sm:$0xff] }
 0x21c   : > { %v3981_v50 = vadd.f32 %v3980_v26, %v3979_v42  ;;  %v3936_v51 = vpop.f32.mrf.mxu0  ;;  %1916 = vmatprep.subr.bf16.mxu0 %v3808_v39  ;;  %1790 = vmatprep.mubr.bf16.mxu0 %v4642_v0  ;;  %v3784_v21 = vcombine.high %v1390_v4, %v1394_v7  ;;  %v3783_v34 = vcombine.low %v1390_v4, %v1394_v7 }
 0x21d   : > { %v3982_v54 = vpop.f32.mrf.mxu1  ;;  %1873 = vmatprep.mubr.bf16.mxu1 %v4642_v0  ;;  %1999 = vmatprep.subr.bf16.mxu1 %v3810_v43  ;;  %v3785_v43 = vcombine.low %v1391_v8, %v1395_v9 }
 0x21e   : > { %v1332_v57 = vadd.f32 %v3981_v50, %v3935_v25  ;;  %v3937_v58 = vpop.f32.mrf.mxu0 }
 0x21f   : > { %v3983_v61 = vpop.f32.mrf.mxu1  ;;  %1917 = vmatpush1.bf16.msra.mxu0 %v3807_v49  ;;  %2000 = vmatpush1.bf16.msra.mxu1 %v3809_v29  ;;  %v3938_v10 = vadd.f32 %v3937_v58, %v3936_v51  ;;  %v3775_v49 = vcombine.low %v1382_v27, %v1386_v28  ;;  %v3768_v51 = vcombine.high %v1374_v44, %v1378_v45  ;;  %v1366_v58 = vld [vmem:[#allocation5 + $0x10] sm:$0xff] }
 0x220   : > { %v5108_v1 = vpack.c.bf16 %v1332_v57, %v1329_v40  ;;  %v3939_v2 = vpop.f32.mrf.mxu0  ;;  %1918 = vmatprep.subr.bf16.mxu0 %v3800_v52  ;;  %2001 = vmatprep.subr.bf16.mxu1 %v3802_v53  ;;  %v3984_v13 = vadd.f32 %v3983_v61, %v3982_v54  ;;  %v3777_v53 = vcombine.low %v1383_v35, %v1387_v36  ;;  %v1375_v54 = vld [vmem:[#allocation5 + $0x58] sm:$0xff]  ;;  %v4253_v35 = vld [vmem:[#allocation8 + $0x20] ss:$8 sps:$4 sm:$0xff]  }
 0x221   : > { %v3985_v5 = vpop.f32.mrf.mxu1  ;;  %v3767_v61 = vcombine.low %v1374_v44, %v1378_v45  ;;  %v3770_v4 = vcombine.high %v1375_v54, %v1379_v55  ;;  %v3760_v7 = vcombine.high %v1366_v58, %v1370_v59  ;;  %v4244_v27 = vld [vmem:[#allocation8 + $0x50] ss:$8 sps:$4 sm:$0xff]   ;;  %v4246_v28 = vld [vmem:[#allocation8 + $0x54] ss:$8 sps:$4 sm:$0xff]  }
 0x222   : > { %1791 = vmatmul.mubr.bf16.gmra.mxu0 %v5108_v1  ;;  %1874 = vmatmul.mubr.bf16.gmra.mxu1 %v5108_v1  ;;  %v3940_v14 = vpop.f32.mrf.mxu0  ;;  %v1337_v30 = vadd.f32 %v3984_v13, %v3938_v10  ;;  %v4258_v36 = vld [vmem:[#allocation8 + $0x14] ss:$8 sps:$4 sm:$0xff]  }
 0x223   : > { %v3941_v15 = vadd.f32 %v3940_v14, %v3939_v2  ;;  %v3986_v16 = vpop.f32.mrf.mxu1  ;;  %1919 = vmatpush1.bf16.msra.mxu0 %v3799_v62  ;;  %2002 = vmatpush1.bf16.msra.mxu1 %v3801_v63  ;;  %v1367_v62 = vld [vmem:[#allocation5 + $0x18] sm:$0xff] }
 0x224   : > { %v3987_v19 = vadd.f32 %v3986_v16, %v3985_v5  ;;  %v3942_v20 = vpop.f32.mrf.mxu0  ;;  %1920 = vmatprep.subr.bf16.mxu0 %v3792_v3  ;;  %1800 = vmatprep.mubr.bf16.mxu0 %v4642_v0  ;;  %v1371_v63 = vld [vmem:[#allocation5 + $0x38] sm:$0xff]  ;;  %v3759_v16 = vcombine.low %v1366_v58, %v1370_v59 }
 0x225   : > { %v3988_v24 = vpop.f32.mrf.mxu1  ;;  %1883 = vmatprep.mubr.bf16.mxu1 %v4642_v0  ;;  %2003 = vmatprep.subr.bf16.mxu1 %v3794_v6  ;;  %v3769_v6 = vcombine.low %v1375_v54, %v1379_v55  ;;  %v3762_v13 = vcombine.high %v1367_v62, %v1371_v63 }
 0x226   : > { %v1340_v31 = vadd.f32 %v3987_v19, %v3941_v15  ;;  %v3943_v32 = vpop.f32.mrf.mxu0 }
 0x227   : > { %v3989_v33 = vpop.f32.mrf.mxu1  ;;  %1921 = vmatpush1.bf16.msra.mxu0 %v3791_v17  ;;  %2004 = vmatpush1.bf16.msra.mxu1 %v3793_v18  ;;  %v3944_v46 = vadd.f32 %v3943_v32, %v3942_v20  ;;  %v3761_v18 = vcombine.low %v1367_v62, %v1371_v63  ;;  %v4252_v32 = vld [vmem:[#allocation8 + $0x34] ss:$8 sps:$4 sm:$0xff]  }
 0x228   : > { %v5114_v38 = vpack.c.bf16 %v1340_v31, %v1337_v30  ;;  %v3945_v39 = vpop.f32.mrf.mxu0  ;;  %1922 = vmatprep.subr.bf16.mxu0 %v3784_v21  ;;  %2005 = vmatprep.subr.bf16.mxu1 %v3786_v23  ;;  %v3990_v47 = vadd.f32 %v3989_v33, %v3988_v24  ;;  %v4241_v23 = vld [vmem:[#allocation8 + $0x60] ss:$8 sps:$4 sm:$0xff]   ;;  %v4243_v24 = vld [vmem:[#allocation8 + $0x64] ss:$8 sps:$4 sm:$0xff]   ;;  %v4250_v33 = vld [vmem:[#allocation8 + $0x30] ss:$8 sps:$4 sm:$0xff]  }
 0x229   : > { %v3991_v42 = vpop.f32.mrf.mxu1  ;;  %v4247_v30 = vld [vmem:[#allocation8 + $0x40] ss:$8 sps:$4 sm:$0xff]   ;;  %v4249_v31 = vld [vmem:[#allocation8 + $0x44] ss:$8 sps:$4 sm:$0xff]  }
 0x22a   : > { %1801 = vmatmul.mubr.bf16.gmra.mxu0 %v5114_v38  ;;  %1884 = vmatmul.mubr.bf16.gmra.mxu1 %v5114_v38  ;;  %v3946_v48 = vpop.f32.mrf.mxu0  ;;  %v1345_v56 = vadd.f32 %v3990_v47, %v3944_v46 }
 0x22b   : > { %v3947_v25 = vadd.f32 %v3946_v48, %v3945_v39  ;;  %v3992_v26 = vpop.f32.mrf.mxu1  ;;  %1923 = vmatpush1.bf16.msra.mxu0 %v3783_v34  ;;  %1810 = vmatprep.mubr.bf16.mxu0 %v4642_v0  ;;  %v4255_v34 = vld [vmem:[#allocation8 + $0x24] ss:$8 sps:$4 sm:$0xff]  }
 0x22c   : > { %v3993_v29 = vadd.f32 %v3992_v26, %v3991_v42  ;;  %v3948_v50 = vpop.f32.mrf.mxu0  ;;  %1893 = vmatprep.mubr.bf16.mxu1 %v4642_v0  ;;  %1924 = vmatprep.subr.bf16.mxu0 %v3776_v41  ;;  %v4261_v39 = vld [vmem:[#allocation8 + $0x4] ss:$8 sps:$4 sm:$0xff]   ;;  %v4259_v41 = vld [vmem:[#allocation8] ss:$8 sps:$4 sm:$0xff]  }
 0x22d   : > { %v3994_v52 = vpop.f32.mrf.mxu1  ;;  %2006 = vmatpush1.bf16.msra.mxu1 %v3785_v43 }
 0x22e   : > { %v1348_v40 = vadd.f32 %v3993_v29, %v3947_v25  ;;  %v3949_v57 = vpop.f32.mrf.mxu0  ;;  %2007 = vmatprep.subr.bf16.mxu1 %v3778_v22 }
 0x22f   : > { %v3995_v60 = vpop.f32.mrf.mxu1  ;;  %1925 = vmatpush1.bf16.msra.mxu0 %v3775_v49  ;;  %v3950_v8 = vadd.f32 %v3949_v57, %v3948_v50 }
 0x230   : > { %v1362_v2 = vpack.c.bf16 %v1348_v40, %v1345_v56  ;;  %v3951_v3 = vpop.f32.mrf.mxu0  ;;  %1926 = vmatprep.subr.bf16.mxu0 %v3768_v51  ;;  %v3996_v9 = vadd.f32 %v3995_v60, %v3994_v52 }
 0x231   : > { %v3997_v5 = vpop.f32.mrf.mxu1  ;;  %2008 = vmatpush1.bf16.msra.mxu1 %v3777_v53 }
 0x232   : > { %1811 = vmatmul.mubr.bf16.gmra.mxu0 %v1362_v2  ;;  %1894 = vmatmul.mubr.bf16.gmra.mxu1 %v1362_v2  ;;  %v3952_v10 = vpop.f32.mrf.mxu0  ;;  %v1353_v19 = vadd.f32 %v3996_v9, %v3950_v8 }
 0x233   : > { %v3953_v14 = vadd.f32 %v3952_v10, %v3951_v3  ;;  %v3998_v15 = vpop.f32.mrf.mxu1  ;;  %1927 = vmatpush1.bf16.msra.mxu0 %v3767_v61  ;;  %1820 = vmatprep.mubr.bf16.mxu0 %v4642_v0 }
 0x234   : > { %v3999_v17 = vadd.f32 %v3998_v15, %v3997_v5  ;;  %1903 = vmatprep.mubr.bf16.mxu1 %v4642_v0  ;;  %2009 = vmatprep.subr.bf16.mxu1 %v3770_v4 }
 0x235   : > { %2010 = vmatpush1.bf16.msra.mxu1 %v3769_v6  ;;  %1928 = vmatprep.subr.bf16.mxu0 %v3760_v7 }
 0x236   : > { %v1356_v20 = vadd.f32 %v3999_v17, %v3953_v14  ;;  %2011 = vmatprep.subr.bf16.mxu1 %v3762_v13 }
 0x237   : > { %1929 = vmatpush1.bf16.msra.mxu0 %v3759_v16 }
 0x238   : > { %v1363_v21 = vpack.c.bf16 %v1356_v20, %v1353_v19 }
 0x239   : > { %2012 = vmatpush1.bf16.msra.mxu1 %v3761_v18 }
 0x23a   : > { %1821 = vmatmul.mubr.bf16.gmra.mxu0 %v1363_v21  ;;  %1904 = vmatmul.mubr.bf16.gmra.mxu1 %v1363_v21 }
 0x23b   : > { %1946 = vmatprep.mubr.bf16.mxu0 %v4642_v0  ;;  %2029 = vmatprep.mubr.bf16.mxu1 %v4642_v0 }
 0x242   : > { %1947 = vmatmul.mubr.bf16.vlgmr.msra.gmra.mxu0 %v5102_v37  ;;  %2030 = vmatmul.mubr.bf16.vlgmr.msra.gmra.mxu1 %v5102_v37  ;;  %v4238_v37 = vld [vmem:[#allocation8 + $0x70] ss:$8 sps:$4 sm:$0xff]  }
 0x243   : > { %1956 = vmatprep.mubr.bf16.mxu0 %v4642_v0  ;;  %2039 = vmatprep.mubr.bf16.mxu1 %v4642_v0 }
 0x24a   : > { %1957 = vmatmul.mubr.bf16.gmra.mxu0 %v5108_v1  ;;  %2040 = vmatmul.mubr.bf16.gmra.mxu1 %v5108_v1  ;;  %v4240_v1 = vld [vmem:[#allocation8 + $0x74] ss:$8 sps:$4 sm:$0xff]  }
 0x24b   : > { %1966 = vmatprep.mubr.bf16.mxu0 %v4642_v0  ;;  %2049 = vmatprep.mubr.bf16.mxu1 %v4642_v0 }
 0x24c   : > { %2290 = vmatprep.subr.bf16.mxu0 %v4240_v1 }
 0x24d   : > { %2291 = vmatpush1.bf16.msra.mxu0 %v4238_v37 }
 0x24e   : > { %2292 = vmatprep.subr.bf16.mxu0 %v4243_v24 }
 0x251   : > { %2293 = vmatpush1.bf16.msra.mxu0 %v4241_v23 }
 0x252   : > { %1967 = vmatmul.mubr.bf16.gmra.mxu0 %v5114_v38  ;;  %2050 = vmatmul.mubr.bf16.gmra.mxu1 %v5114_v38  ;;  %v4256_v38 = vld [vmem:[#allocation8 + $0x10] ss:$8 sps:$4 sm:$0xff]  }
 0x253   : > { %1976 = vmatprep.mubr.bf16.mxu0 %v4642_v0  ;;  %2059 = vmatprep.mubr.bf16.mxu1 %v4642_v0 }
 0x254   : > { %2294 = vmatprep.subr.bf16.mxu0 %v4246_v28 }
 0x255   : > { %2295 = vmatpush1.bf16.msra.mxu0 %v4244_v27 }
 0x256   : > { %2296 = vmatprep.subr.bf16.mxu0 %v4249_v31 }
 0x259   : > { %2297 = vmatpush1.bf16.msra.mxu0 %v4247_v30 }
 0x25a   : > { %1977 = vmatmul.mubr.bf16.gmra.mxu0 %v1362_v2  ;;  %2060 = vmatmul.mubr.bf16.gmra.mxu1 %v1362_v2 }
 0x25b   : > { %1986 = vmatprep.mubr.bf16.mxu0 %v4642_v0  ;;  %2069 = vmatprep.mubr.bf16.mxu1 %v4642_v0 }
 0x25c   : > { %2298 = vmatprep.subr.bf16.mxu0 %v4252_v32 }
 0x25d   : > { %2299 = vmatpush1.bf16.msra.mxu0 %v4250_v33 }
 0x25e   : > { %2300 = vmatprep.subr.bf16.mxu0 %v4255_v34 }
 0x261   : > { %2301 = vmatpush1.bf16.msra.mxu0 %v4253_v35 }
 0x262   : > { %1987 = vmatmul.mubr.bf16.gmra.mxu0 %v1363_v21  ;;  %2070 = vmatmul.mubr.bf16.gmra.mxu1 %v1363_v21 }
 0x263   : > { %2322 = vmatprep.mubr.bf16.mxu0 %v4642_v0  ;;  %2630 = vmatprep.mubr.bf16.mxu1 %v4642_v0 }
 0x264   : > { %2302 = vmatprep.subr.bf16.mxu0 %v4258_v36 }
 0x265   : > { %2303 = vmatpush1.bf16.msra.mxu0 %v4256_v38 }
 0x266   : > { %2304 = vmatprep.subr.bf16.mxu0 %v4261_v39 }
 0x269   : > { %2305 = vmatpush1.bf16.msra.mxu0 %v4259_v41 }
 0x2da   : > { %v1782_v42 = vpop.f32.mrf.mxu0  ;;  %v1865_v43 = vpop.f32.mrf.mxu1 }
 0x2dc   : > { %v1784_v44 = vpop.f32.mrf.mxu0  ;;  %v1867_v45 = vpop.f32.mrf.mxu1 }
 0x2dd   : > { %v2080_v7 = vmax.f32 %v1782_v42, %v1784_v44 }
 0x2de   : > { %v1786_v46 = vpop.f32.mrf.mxu0  ;;  %v1869_v47 = vpop.f32.mrf.mxu1 }
 0x2df   : > { %v2090_v14 = vmax.f32 %v2080_v7, %v1865_v43 }
 0x2e0   : > { %v1788_v48 = vpop.f32.mrf.mxu0  ;;  %v1871_v22 = vpop.f32.mrf.mxu1 }
 0x2e1   : > { %v2081_v15 = vmax.f32 %v1786_v46, %v1788_v48  ;;  %v2100_v20 = vmax.f32 %v2090_v14, %v1867_v45 }
 0x2e2   : > { %v1792_v25 = vpop.f32.mrf.mxu0  ;;  %v1875_v26 = vpop.f32.mrf.mxu1 }
 0x2e3   : > { %v2091_v21 = vmax.f32 %v2081_v15, %v1869_v47  ;;  %v5184_v47 = vld [vmem:[#allocation7] ss:$0 sm:$0xff] }
 0x2e4   : > { %v1794_v49 = vpop.f32.mrf.mxu0  ;;  %v1877_v29 = vpop.f32.mrf.mxu1 }
 0x2e5   : > { %v2082_v37 = vmax.f32 %v1792_v25, %v1794_v49  ;;  %v2101_v30 = vmax.f32 %v2091_v21, %v1871_v22 }
 0x2e6   : > { %v1796_v50 = vpop.f32.mrf.mxu0  ;;  %v1879_v51 = vpop.f32.mrf.mxu1 }
 0x2e7   : > { %v2092_v31 = vmax.f32 %v2082_v37, %v1875_v26 }
 0x2e8   : > { %v1798_v52 = vpop.f32.mrf.mxu0  ;;  %v5140_v53 = vpop.f32.mrf.mxu1 }
 0x2e9   : > { %v2083_v32 = vmax.f32 %v1796_v50, %v1798_v52  ;;  %v2102_v43 = vmax.f32 %v2092_v31, %v1877_v29 }
 0x2ea   : > { %v1802_v54 = vpop.f32.mrf.mxu0  ;;  %v1885_v55 = vpop.f32.mrf.mxu1 }
 0x2eb   : > { %v2093_v44 = vmax.f32 %v2083_v32, %v1879_v51 }
 0x2ec   : > { %v1804_v56 = vpop.f32.mrf.mxu0  ;;  %v5142_v40 = vpop.f32.mrf.mxu1 }
 0x2ed   : > { %v2084_v39 = vmax.f32 %v1802_v54, %v1804_v56  ;;  %v2103_v54 = vmax.f32 %v2093_v44, %v5140_v53 }
 0x2ee   : > { %v5144_v57 = vpop.f32.mrf.mxu0  ;;  %v5146_v58 = vpop.f32.mrf.mxu1 }
 0x2ef   : > { %v2094_v26 = vmax.f32 %v2084_v39, %v1885_v55 }
 0x2f0   : > { %v5148_v59 = vpop.f32.mrf.mxu0  ;;  %v5150_v60 = vpop.f32.mrf.mxu1 }
 0x2f1   : > { %v2085_v50 = vmax.f32 %v5144_v57, %v5148_v59  ;;  %v2104_v55 = vmax.f32 %v2094_v26, %v5142_v40 }
 0x2f2   : > { %v5152_v61 = vpop.f32.mrf.mxu0  ;;  %v5154_v62 = vpop.f32.mrf.mxu1 }
 0x2f3   : > { %v2095_v57 = vmax.f32 %v2085_v50, %v5146_v58 }
 0x2f4   : > { %v5156_v63 = vpop.f32.mrf.mxu0  ;;  %v5158_v2 = vpop.f32.mrf.mxu1 }
 0x2f5   : > { %v2086_v59 = vmax.f32 %v5152_v61, %v5156_v63 }
 0x2f6   : > { %v5160_v3 = vpop.f32.mrf.mxu0  ;;  %v5162_v4 = vpop.f32.mrf.mxu1 }
 0x2f8   : > { %v5164_v5 = vpop.f32.mrf.mxu0  ;;  %v5166_v6 = vpop.f32.mrf.mxu1 }
 0x2f9   : > { %v2087_v61 = vmax.f32 %v5160_v3, %v5164_v5 }
 0x2fa   : > { %v5168_v8 = vpop.f32.mrf.mxu0  ;;  %v5170_v9 = vpop.f32.mrf.mxu1 }
 0x2fb   : > { %v2097_v5 = vmax.f32 %v2087_v61, %v5162_v4 }
 0x2fc   : > { %v5172_v10 = vpop.f32.mrf.mxu0  ;;  %v5174_v13 = vpop.f32.mrf.mxu1 }
 0x2fe   : > { %v5176_v16 = vpop.f32.mrf.mxu0  ;;  %v5178_v17 = vpop.f32.mrf.mxu1 }
 0x300   : > { %v5180_v18 = vpop.f32.mrf.mxu0  ;;  %v5182_v19 = vpop.f32.mrf.mxu1 }
 0x302   : > { %v1948_v1 = vpop.f32.mrf.mxu0  ;;  %v2031_v23 = vpop.f32.mrf.mxu1 }
 0x303   : > { %v2110_v24 = vmax.f32 %v2100_v20, %v1948_v1 }
 0x304   : > { %v1950_v27 = vpop.f32.mrf.mxu0  ;;  %v2033_v28 = vpop.f32.mrf.mxu1 }
 0x305   : > { %v2120_v33 = vmax.f32 %v2110_v24, %v1950_v27 }
 0x306   : > { %v1952_v34 = vpop.f32.mrf.mxu0  ;;  %v2035_v35 = vpop.f32.mrf.mxu1 }
 0x307   : > { %v2130_v36 = vmax.f32 %v2120_v33, %v2031_v23  ;;  %v2111_v38 = vmax.f32 %v2101_v30, %v1952_v34  ;;  %v2096_v33 = vmax.f32 %v2086_v59, %v5154_v62 }
 0x308   : > { %v1954_v41 = vpop.f32.mrf.mxu0  ;;  %v2037_v42 = vpop.f32.mrf.mxu1 }
 0x309   : > { %v2140_v45 = vmax.f32 %v2130_v36, %v2033_v28  ;;  %v2121_v46 = vmax.f32 %v2111_v38, %v1954_v41  ;;  %v2106_v3 = vmax.f32 %v2096_v33, %v5158_v2 }
 0x30a   : > { %v1958_v48 = vpop.f32.mrf.mxu0  ;;  %v2041_v25 = vpop.f32.mrf.mxu1 }
 0x30b   : > { %v2131_v49 = vmax.f32 %v2121_v46, %v2035_v35  ;;  %v2112_v22 = vmax.f32 %v2102_v43, %v1958_v48  ;;  %v5190_v56 = vadd.f32 %v5184_v47, %v2140_v45  ;;  %v2105_v35 = vmax.f32 %v2095_v57, %v5150_v60 }
 0x30c   : > { %v1960_v52 = vpop.f32.mrf.mxu0  ;;  %v2043_v7 = vpop.f32.mrf.mxu1  ;;  %v2088_v60 = vmax.f32 %v5168_v8, %v5172_v10  ;;  %v2089_v8 = vmax.f32 %v5176_v16, %v5180_v18 }
 0x30d   : > { %v2141_v29 = vmax.f32 %v2131_v49, %v2037_v42  ;;  %v2122_v51 = vmax.f32 %v2112_v22, %v1960_v52  ;;  %v2167_v23 = vmax.f32 %v5190_v56, 0.0  ;;  %v4286_v56 = vld [vmem:[%s5871_s10 + $0x18] sm:$0xff]  }
 0x30e   : > { %v1962_v14 = vpop.f32.mrf.mxu0  ;;  %v2045_v15 = vpop.f32.mrf.mxu1  ;;  %v2098_v4 = vmax.f32 %v2088_v60, %v5170_v9  ;;  %v2099_v18 = vmax.f32 %v2089_v8, %v5178_v17  ;;  %v4267_v8 = vld [vmem:[#allocation8 + $0xe4] ss:$8 sps:$4 sm:$0xff]  }
 0x30f   : > { %v5193_v20 = vadd.f32 %v5184_v47, %v2141_v29  ;;  %v2132_v21 = vmax.f32 %v2122_v51, %v2041_v25  ;;  %v2113_v37 = vmax.f32 %v2103_v54, %v1962_v14  ;;  %v2107_v29 = vmax.f32 %v2097_v5, %v5166_v6 }
 0x310   : > { %v1964_v53 = vpop.f32.mrf.mxu0  ;;  %v2047_v1 = vpop.f32.mrf.mxu1  ;;  %v2108_v16 = vmax.f32 %v2098_v4, %v5174_v13  ;;  %v2109_v17 = vmax.f32 %v2099_v18, %v5182_v19  ;;  %v4262_v4 = vld [vmem:[#allocation8 + $0xf0] ss:$8 sps:$4 sm:$0xff]   ;;  %v4285_v18 = vld [vmem:[#allocation8 + $0x84] ss:$8 sps:$4 sm:$0xff]  }
 0x311   : > { %v2168_v24 = vmax.f32 %v5193_v20, 0.0  ;;  %v2142_v27 = vmax.f32 %v2132_v21, %v2043_v7  ;;  %v2123_v28 = vmax.f32 %v2113_v37, %v1964_v53 }
 0x312   : > { %v1968_v30 = vpop.f32.mrf.mxu0  ;;  %v2051_v31 = vpop.f32.mrf.mxu1 }
 0x313   : > { %v2177_v40 = vpack.c.bf16 %v2168_v24, %v2167_v23  ;;  %v2133_v32 = vmax.f32 %v2123_v28, %v2045_v15  ;;  %v2114_v58 = vmax.f32 %v2104_v55, %v1968_v30  ;;  %v5210_v36 = vadd.f32 %v5184_v47, %v2142_v27 }
 0x314   : > { %v1970_v63 = vpop.f32.mrf.mxu0  ;;  %v2053_v34 = vpop.f32.mrf.mxu1 }
 0x315   : > { %v2143_v38 = vmax.f32 %v2133_v32, %v2047_v1  ;;  %v2124_v39 = vmax.f32 %v2114_v58, %v1970_v63  ;;  %2323 = vmatmul.mubr.bf16.vlgmr.msra.gmra.mxu0 %v2177_v40  ;;  %v2169_v48 = vmax.f32 %v5210_v36, 0.0 }
 0x316   : > { %v1972_v41 = vpop.f32.mrf.mxu0  ;;  %v2055_v42 = vpop.f32.mrf.mxu1  ;;  %2332 = vmatprep.mubr.bf16.mxu0 %v4642_v0 }
 0x317   : > { %v5214_v43 = vadd.f32 %v5184_v47, %v2143_v38  ;;  %v2134_v62 = vmax.f32 %v2124_v39, %v2051_v31  ;;  %v2115_v44 = vmax.f32 %v2105_v35, %v1972_v41 }
 0x318   : > { %v1974_v45 = vpop.f32.mrf.mxu0  ;;  %v2057_v46 = vpop.f32.mrf.mxu1 }
 0x319   : > { %v2170_v25 = vmax.f32 %v5214_v43, 0.0  ;;  %v2144_v49 = vmax.f32 %v2134_v62, %v2053_v34  ;;  %v2125_v22 = vmax.f32 %v2115_v44, %v1974_v45 }
 0x31a   : > { %v1978_v26 = vpop.f32.mrf.mxu0  ;;  %v2061_v50 = vpop.f32.mrf.mxu1 }
 0x31b   : > { %v2135_v52 = vmax.f32 %v2125_v22, %v2055_v42  ;;  %v2116_v7 = vmax.f32 %v2106_v3, %v1978_v26  ;;  %v2178_v2 = vpack.c.bf16 %v2170_v25, %v2169_v48  ;;  %v5231_v51 = vadd.f32 %v5184_v47, %v2144_v49 }
 0x31c   : > { %v1980_v10 = vpop.f32.mrf.mxu0  ;;  %v2063_v54 = vpop.f32.mrf.mxu1 }
 0x31d   : > { %v2145_v14 = vmax.f32 %v2135_v52, %v2057_v46  ;;  %v2126_v15 = vmax.f32 %v2116_v7, %v1980_v10  ;;  %2333 = vmatmul.mubr.bf16.gmra.mxu0 %v2178_v2  ;;  %v2171_v53 = vmax.f32 %v5231_v51, 0.0  ;;  %v4264_v2 = vld [vmem:[#allocation8 + $0xf4] ss:$8 sps:$4 sm:$0xff]   ;;  %v4265_v10 = vld [vmem:[#allocation8 + $0xe0] ss:$8 sps:$4 sm:$0xff]  }
 0x31e   : > { %v1982_v21 = vpop.f32.mrf.mxu0  ;;  %v2065_v37 = vpop.f32.mrf.mxu1  ;;  %2342 = vmatprep.mubr.bf16.mxu0 %v4642_v0  ;;  %2598 = vmatprep.subr.bf16.mxu1 %v4264_v2 }
 0x31f   : > { %v5235_v55 = vadd.f32 %v5184_v47, %v2145_v14  ;;  %v2136_v9 = vmax.f32 %v2126_v15, %v2061_v50  ;;  %v2117_v57 = vmax.f32 %v2107_v29, %v1982_v21  ;;  %2599 = vmatpush1.bf16.msra.mxu1 %v4262_v4  ;;  %v4273_v29 = vld [vmem:[#allocation8 + $0xc4] ss:$8 sps:$4 sm:$0xff]   ;;  %v4271_v14 = vld [vmem:[#allocation8 + $0xc0] ss:$8 sps:$4 sm:$0xff]   ;;  %v4276_v15 = vld [vmem:[#allocation8 + $0xb4] ss:$8 sps:$4 sm:$0xff]  }
 0x320   : > { %v1984_v6 = vpop.f32.mrf.mxu0  ;;  %v2067_v59 = vpop.f32.mrf.mxu1  ;;  %2600 = vmatprep.subr.bf16.mxu1 %v4267_v8  ;;  %v4274_v21 = vld [vmem:[#allocation8 + $0xb0] ss:$8 sps:$4 sm:$0xff]  }
 0x321   : > { %v2172_v1 = vmax.f32 %v5235_v55, 0.0  ;;  %v2146_v27 = vmax.f32 %v2136_v9, %v2063_v54  ;;  %v2127_v28 = vmax.f32 %v2117_v57, %v1984_v6  ;;  %v4268_v54 = vld [vmem:[#allocation8 + $0xd0] ss:$8 sps:$4 sm:$0xff]   ;;  %v4277_v9 = vld [vmem:[#allocation8 + $0xa0] ss:$8 sps:$4 sm:$0xff]  }
 0x322   : > { %v1988_v30 = vpop.f32.mrf.mxu0  ;;  %v2071_v31 = vpop.f32.mrf.mxu1  ;;  %v4282_v57 = vld [vmem:[#allocation8 + $0x94] ss:$8 sps:$4 sm:$0xff]   ;;  %v4283_v6 = vld [vmem:[#allocation8 + $0x80] ss:$8 sps:$4 sm:$0xff]  }
 0x323   : > { %v2137_v40 = vmax.f32 %v2127_v28, %v2065_v37  ;;  %v2118_v32 = vmax.f32 %v2108_v16, %v1988_v30  ;;  %v2179_v58 = vpack.c.bf16 %v2172_v1, %v2171_v53  ;;  %v5247_v61 = vadd.f32 %v5184_v47, %v2146_v27  ;;  %2601 = vmatpush1.bf16.msra.mxu1 %v4265_v10  ;;  %v4279_v37 = vld [vmem:[#allocation8 + $0xa4] ss:$8 sps:$4 sm:$0xff]   ;;  %v4280_v16 = vld [vmem:[#allocation8 + $0x90] ss:$8 sps:$4 sm:$0xff]  }
 0x324   : > { %v1990_v13 = vpop.f32.mrf.mxu0  ;;  %v2073_v33 = vpop.f32.mrf.mxu1  ;;  %v5279_v27 = vld [vmem:[%s568_s21 + $0x10] sm:$0xff]  ;;  %v4644_v28 = vmov 0.0   ;;  %v5285_v30 = vld [vmem:[%s568_s21 + $0x8] sm:$0xff] }
 0x325   : > { %v2147_v63 = vmax.f32 %v2137_v40, %v2067_v59  ;;  %v2128_v34 = vmax.f32 %v2118_v32, %v1990_v13  ;;  %2343 = vmatmul.mubr.bf16.gmra.mxu0 %v2179_v58  ;;  %v2173_v44 = vmax.f32 %v5247_v61, 0.0  ;;  %v5277_v59 = vld [vmem:[%s568_s21] sm:$0xff]  ;;  %4022 = vmatprep.subr.bf16.mxu0 %v4644_v28  ;;  %v5291_v40 = vld [vmem:[%s568_s21 + $0x28] sm:$0xff]  ;;  %v5297_v58 = vld [vmem:[%s568_s21 + $0x38] sm:$0xff]  ;;  %vm3147_vm10 = vcmp.eq.s32.totalorder %v5285_v30, 0 }
 0x326   : > { %v1992_v35 = vpop.f32.mrf.mxu0  ;;  %2352 = vmatprep.mubr.bf16.mxu0 %v4642_v0  ;;  %v2075_v42 = vpop.f32.mrf.mxu1  ;;  %2951 = vperm.xlu0 %4198, %v5277_v59   ;;  %v5293_v32 = vld [vmem:[%s568_s21 + $0x20] sm:$0xff]  ;;  %v5299_v13 = vld [vmem:[%s568_s21 + $0x30] sm:$0xff]  ;;  %vm3146_vm11 = vcmp.eq.s32.totalorder %v5277_v59, 0  ;;  %vm3148_vm12 = vcmp.eq.s32.totalorder %v5279_v27, 0 }
 0x327   : > { %v5251_v38 = vadd.f32 %v5184_v47, %v2147_v63  ;;  %v2138_v39 = vmax.f32 %v2128_v34, %v2071_v31  ;;  %v2119_v41 = vmax.f32 %v2109_v17, %v1992_v35  ;;  %2957 = vperm.xlu1 %4199, %v5279_v27   ;;  %v5287_v31 = vld [vmem:[%s568_s21 + $0x18] sm:$0xff]  ;;  %v5305_v17 = vld [vmem:[%s568_s21 + $0x40] sm:$0xff]  ;;  %v5310_v63 = vshrl.u32 %v804_v11, 7  ;;  %v2198_v35 = vld [vmem:[#allocation10] ss:$2 sm:$0x3] }
 0x328   : > { %v1994_v62 = vpop.f32.mrf.mxu0  ;;  %v2077_v46 = vpop.f32.mrf.mxu1  ;;  %vm3149_vm13 = vcmp.eq.s32.totalorder %v5287_v31, 0 }
 0x329   : > { %v2174_v19 = vmax.f32 %v5251_v38, 0.0  ;;  %v2148_v3 = vmax.f32 %v2138_v39, %v2073_v33  ;;  %v2129_v5 = vmax.f32 %v2119_v41, %v1994_v62  ;;  %v5303_v33 = vld [vmem:[%s568_s21 + $0x48] sm:$0xff]  ;;  %v5887_v34 = vsub.s32 1, %v5310_v63  ;;  %s4554_s21 = scalar_lea.vmem %s5815_s16, 1280 }
 0x32a   : > { %2954 = vperm.xlu0 %4198, %v5285_v30   ;;  %p4555_p9 = scmp.ne.s32.totalorder %s5815_s16, %s4554_s21  ;;  %p4562_p7 = scmp.lt.s32.totalorder %s4560_s27, %s4554_s21 }
 0x32b   : > { %v2139_v60 = vmax.f32 %v2129_v5, %v2075_v42  ;;  %v2180_v45 = vpack.c.bf16 %v2174_v19, %v2173_v44  ;;  %v5260_v49 = vadd.f32 %v5184_v47, %v2148_v3  ;;  %2960 = vperm.xlu1 %4199, %v5287_v31   ;;  %v5315_v39 = vrot.slane %v2198_v35, %v5887_v34 }
 0x32c   : > { %p4556_p6 = pnand %p4555_p9, %p5920_p5  ;;  %p4563_p13 = por %p4562_p7, %p4561_p4 }
 0x32d   : > { %v2149_v22 = vmax.f32 %v2139_v60, %v2077_v46  ;;  %2353 = vmatmul.mubr.bf16.gmra.mxu0 %v2180_v45  ;;  %v2175_v50 = vmax.f32 %v5260_v49, 0.0 }
 0x32e   : > { %2362 = vmatprep.mubr.bf16.mxu0 %v4642_v0  ;;  %2963 = vperm.xlu0 %4198, %v5293_v32   ;;  %p4557_p2 = pneg %p4556_p6 }
 0x32f   : > { %v5264_v26 = vadd.f32 %v5184_v47, %v2149_v22  ;;  %v4270_v47 = vld [vmem:[#allocation8 + $0xd4] ss:$8 sps:$4 sm:$0xff]   ;;  %2966 = vperm.xlu1 %4199, %v5291_v40  }
 0x330   : > { %2602 = vmatprep.subr.bf16.mxu1 %v4270_v47  ;;  %p4564_p10 = pnand %p4563_p13, %p4557_p2 }
 0x331   : > { %v2176_v52 = vmax.f32 %v5264_v26, 0.0  ;;  %2603 = vmatpush1.bf16.msra.mxu1 %v4268_v54 }
 0x332   : > { %2604 = vmatprep.subr.bf16.mxu1 %v4273_v29  ;;  %2969 = vperm.xlu0 %4198, %v5299_v13  }
 0x333   : > { %v2181_v7 = vpack.c.bf16 %v2176_v52, %v2175_v50  ;;  %2972 = vperm.xlu1 %4199, %v5297_v58  }
 0x335   : > { %2363 = vmatmul.mubr.bf16.gmra.mxu0 %v2181_v7  ;;  %2605 = vmatpush1.bf16.msra.mxu1 %v4271_v14 }
 0x336   : > { %2606 = vmatprep.subr.bf16.mxu1 %v4276_v15  ;;  %2975 = vperm.xlu0 %4198, %v5305_v17  }
 0x337   : > { %2978 = vperm.xlu1 %4199, %v5303_v33   ;;  %4038 = vmatprep.mubr.msk.bf16.mxu0 %vm4645_vm0, %v4644_v28 }
 0x339   : > { %2607 = vmatpush1.bf16.msra.mxu1 %v4274_v21 }
 0x33a   : > { %2608 = vmatprep.subr.bf16.mxu1 %v4279_v37 }
 0x33d   : > { %2609 = vmatpush1.bf16.msra.mxu1 %v4277_v9 }
 0x33e   : > { %2610 = vmatprep.subr.bf16.mxu1 %v4282_v57 }
 0x341   : > { %2611 = vmatpush1.bf16.msra.mxu1 %v4280_v16 }
 0x342   : > { %2612 = vmatprep.subr.bf16.mxu1 %v4285_v18 }
 0x345   : > { %2613 = vmatpush1.bf16.msra.mxu1 %v4283_v6 }
 0x346   : > { %4058 = vmatprep.subr.bf16.mxu1 %v4644_v28 }
 0x3d5   : > { %v2324_v41 = vpop.f32.mrf.mxu0 }
 0x3d7   : > { %v2326_v42 = vpop.f32.mrf.mxu0 }
 0x3d8   : > { %v2327_v62 = vadd.f32 %v2326_v42, %v5315_v39 }
 0x3d9   : > { %v2328_v3 = vpop.f32.mrf.mxu0 }
 0x3da   : > { %v3836_v5 = vmul.f32 -1.442695, %v2327_v62 }
 0x3db   : > { %v2330_v60 = vpop.f32.mrf.mxu0 }
 0x3dc   : > { %4298 = vpow2.f32 %v3836_v5  ;;  %v2331_v45 = vadd.f32 %v2330_v60, %v5315_v39  ;;  %v5886_v60 = vsub.s32 0, %v5310_v63 }
 0x3dd   : > { %v5319_v46 = vpop.f32.mrf.mxu0 }
 0x3de   : > { %v3837_v11 = vmul.f32 -1.442695, %v2331_v45 }
 0x3df   : > { %v2336_v22 = vpop.f32.mrf.mxu0 }
 0x3e0   : > { %4300 = vpow2.f32 %v3837_v11  ;;  %v2337_v7 = vadd.f32 %v2336_v22, %v5315_v39 }
 0x3e1   : > { %v5322_v2 = vpop.f32.mrf.mxu0 }
 0x3e2   : > { %v3838_v4 = vmul.f32 -1.442695, %v2337_v7 }
 0x3e3   : > { %v2340_v8 = vpop.f32.mrf.mxu0 }
 0x3e4   : > { %4302 = vpow2.f32 %v3838_v4  ;;  %v2341_v10 = vadd.f32 %v2340_v8, %v5315_v39 }
 0x3e5   : > { %v5325_v47 = vpop.f32.mrf.mxu0 }
 0x3e6   : > { %v3839_v54 = vmul.f32 -1.442695, %v2341_v10  ;;  %v5339_v10 = vrot.slane %v2198_v35, %v5886_v60 }
 0x3e7   : > { %v2346_v29 = vpop.f32.mrf.mxu0 }
 0x3e8   : > { %4304 = vpow2.f32 %v3839_v54  ;;  %v2347_v14 = vadd.f32 %v2346_v29, %v5315_v39  ;;  %v2335_v60 = vadd.f32 %v5319_v46, %v5339_v10 }
 0x3e9   : > { %v4299_v15 = vpop.eup %4298  ;;  %v5328_v21 = vpop.f32.mrf.mxu0 }
 0x3ea   : > { %v2403_v37 = vadd.f32 1.0, %v4299_v15  ;;  %v3840_v9 = vmul.f32 -1.442695, %v2347_v14  ;;  %v2349_v36 = vadd.f32 %v5328_v21, %v5339_v10 }
 0x3eb   : > { %v2350_v57 = vpop.f32.mrf.mxu0 }
 0x3ec   : > { %4306 = vrcp.f32 %v2403_v37  ;;  %v2351_v16 = vadd.f32 %v2350_v57, %v5315_v39  ;;  %v2325_v57 = vadd.f32 %v2324_v41, %v5339_v10 }
 0x3ed   : > { %v4301_v18 = vpop.eup %4300  ;;  %4308 = vpow2.f32 %v3840_v9  ;;  %v5331_v6 = vpop.f32.mrf.mxu0 }
 0x3ee   : > { %v2404_v42 = vadd.f32 1.0, %v4301_v18  ;;  %v3841_v62 = vmul.f32 -1.442695, %v2351_v16  ;;  %v2355_v21 = vadd.f32 %v5331_v6, %v5339_v10 }
 0x3ef   : > { %v2356_v5 = vpop.f32.mrf.mxu0 }
 0x3f0   : > { %4310 = vrcp.f32 %v2404_v42  ;;  %v2357_v45 = vadd.f32 %v2356_v5, %v5315_v39 }
 0x3f1   : > { %v4303_v11 = vpop.eup %4302  ;;  %4312 = vpow2.f32 %v3841_v62  ;;  %v5335_v22 = vpop.f32.mrf.mxu0  ;;  %v2329_v62 = vadd.f32 %v2328_v3, %v5339_v10 }
 0x3f2   : > { %v2405_v7 = vadd.f32 1.0, %v4303_v11  ;;  %v3842_v4 = vmul.f32 -1.442695, %v2357_v45 }
 0x3f3   : > { %v2360_v8 = vpop.f32.mrf.mxu0 }
 0x3f4   : > { %4314 = vrcp.f32 %v2405_v7  ;;  %v2361_v54 = vadd.f32 %v2360_v8, %v5315_v39 }
 0x3f5   : > { %v4305_v29 = vpop.eup %4304  ;;  %4316 = vpow2.f32 %v3842_v4  ;;  %v5342_v14 = vpop.f32.mrf.mxu0  ;;  %v2453_v4 = vmax.f32 %v2325_v57, 0.0 }
 0x3f6   : > { %v2406_v15 = vadd.f32 1.0, %v4305_v29  ;;  %v3843_v37 = vmul.f32 -1.442695, %v2361_v54  ;;  %v2454_v29 = vmax.f32 %v2329_v62, 0.0  ;;  %v2339_v62 = vadd.f32 %v5322_v2, %v5339_v10 }
 0x3f7   : > { %v2366_v9 = vpop.f32.mrf.mxu0 }
 0x3f8   : > { %4318 = vrcp.f32 %v2406_v15  ;;  %v2367_v16 = vadd.f32 %v2366_v9, %v5315_v39 }
 0x3f9   : > { %v4307_v18 = vpop.eup %4306  ;;  %4320 = vpow2.f32 %v3843_v37  ;;  %v5346_v42 = vpop.f32.mrf.mxu0 }
 0x3fa   : > { %v4309_v35 = vpop.eup %4308  ;;  %v3844_v5 = vmul.f32 -1.442695, %v2367_v16  ;;  %v2443_v45 = vsub.f32 1.0, %v4307_v18  ;;  %v2433_v3 = vmul.f32 %v4307_v18, %v2167_v23  ;;  %v2455_v23 = vmax.f32 %v2335_v60, 0.0 }
 0x3fb   : > { %v2407_v11 = vadd.f32 1.0, %v4309_v35  ;;  %v2370_v7 = vpop.f32.mrf.mxu0  ;;  %v2456_v18 = vmax.f32 %v2339_v62, 0.0 }
 0x3fc   : > { %4322 = vpow2.f32 %v3844_v5  ;;  %v2371_v8 = vadd.f32 %v2370_v7, %v5315_v39  ;;  %v2463_v37 = vmul.f32 %v2453_v4, %v2443_v45 }
 0x3fd   : > { %v4311_v54 = vpop.eup %4310  ;;  %4324 = vrcp.f32 %v2407_v11 }
 0x3fe   : > { %v4313_v41 = vpop.eup %4312  ;;  %v3845_v15 = vmul.f32 -1.442695, %v2371_v8  ;;  %v2444_v9 = vsub.f32 1.0, %v4311_v54  ;;  %v2434_v57 = vmul.f32 %v4311_v54, %v2168_v24  ;;  %v5358_v5 = vadd.f32 %v2463_v37, %v2433_v3  ;;  %v4287_v8 = vld [vmem:[%s5871_s10 + $0x10] sm:$0xff]  }
 0x3ff   : > { %v2408_v34 = vadd.f32 1.0, %v4313_v41 }
 0x400   : > { %4326 = vpow2.f32 %v3845_v15  ;;  %v2464_v16 = vmul.f32 %v2454_v29, %v2444_v9  ;;  %v2345_v15 = vadd.f32 %v5325_v47, %v5339_v10 }
 0x401   : > { %v4315_v39 = vpop.eup %4314  ;;  %4328 = vrcp.f32 %v2408_v34 }
 0x402   : > { %v4317_v35 = vpop.eup %4316  ;;  %v5360_v45 = vadd.f32 %v2464_v16, %v2434_v57  ;;  %v2445_v46 = vsub.f32 1.0, %v4315_v39  ;;  %v2435_v60 = vmul.f32 %v4315_v39, %v2169_v48  ;;  %v2457_v47 = vmax.f32 %v2345_v15, 0.0 }
 0x403   : > { %v2409_v11 = vadd.f32 1.0, %v4317_v35  ;;  %v2458_v35 = vmax.f32 %v2349_v36, 0.0 }
 0x404   : > { %v2483_v20 = vpack.c.bf16 %v5360_v45, %v5358_v5  ;;  %v2465_v7 = vmul.f32 %v2455_v23, %v2445_v46 }
 0x405   : > { %v4319_v24 = vpop.eup %4318  ;;  %4330 = vrcp.f32 %v2409_v11 }
 0x406   : > { %v4321_v34 = vpop.eup %4320  ;;  %2631 = vmatmul.mubr.bf16.vlgmr.msra.gmra.mxu1 %v2483_v20  ;;  %v2446_v2 = vsub.f32 1.0, %v4319_v24  ;;  %v2436_v54 = vmul.f32 %v4319_v24, %v2170_v25  ;;  %v5378_v3 = vadd.f32 %v2465_v7, %v2435_v60  ;;  %v2359_v24 = vadd.f32 %v5335_v22, %v5339_v10 }
 0x407   : > { %v2410_v4 = vadd.f32 1.0, %v4321_v34  ;;  %2640 = vmatprep.mubr.bf16.mxu1 %v4642_v0  ;;  %4059 = vmatpush3.bf16.msra.mxu1 %v4286_v56  ;;  %v2459_v7 = vmax.f32 %v2355_v21, 0.0 }
 0x408   : > { %v2466_v41 = vmul.f32 %v2456_v18, %v2446_v2  ;;  %4060 = vmatprep.subr.bf16.mxu1 %v4644_v28  ;;  %v2460_v51 = vmax.f32 %v2359_v24, 0.0 }
 0x409   : > { %v4323_v29 = vpop.eup %4322  ;;  %4332 = vrcp.f32 %v2410_v4 }
 0x40a   : > { %v4325_v9 = vpop.eup %4324  ;;  %v2411_v37 = vadd.f32 1.0, %v4323_v29  ;;  %v5380_v57 = vadd.f32 %v2466_v41, %v2436_v54  ;;  %v2369_v41 = vadd.f32 %v5346_v42, %v5339_v10 }
 0x40b   : > { %v2447_v48 = vsub.f32 1.0, %v4325_v9  ;;  %4061 = vmatpush3.bf16.msra.mxu1 %v4287_v8  ;;  %v2437_v11 = vmul.f32 %v4325_v9, %v2171_v53 }
 0x40c   : > { %4334 = vrcp.f32 %v2411_v37  ;;  %v2484_v43 = vpack.c.bf16 %v5380_v57, %v5378_v3  ;;  %4062 = vmatprep.subr.bf16.mxu1 %v4644_v28 }
 0x40d   : > { %v4327_v25 = vpop.eup %4326  ;;  %v2467_v46 = vmul.f32 %v2457_v47, %v2447_v48  ;;  %v2462_v48 = vmax.f32 %v2369_v41, 0.0  ;;  %v2952_v47 = vpop.permute.xlu0 %2951 }
 0x40e   : > { %v4329_v16 = vpop.eup %4328  ;;  %v2412_v39 = vadd.f32 1.0, %v4327_v25  ;;  %2641 = vmatmul.mubr.bf16.gmra.mxu1 %v2484_v43  ;;  %vm2980_vm14 = vcmp.eq.s32.totalorder %v2952_v47, %v4996_v12 }
 0x40f   : > { %2650 = vmatprep.mubr.bf16.mxu1 %v4642_v0  ;;  %v2448_v62 = vsub.f32 1.0, %v4329_v16  ;;  %v2438_v56 = vmul.f32 %v4329_v16, %v2172_v1  ;;  %v5396_v34 = vadd.f32 %v2467_v46, %v2437_v11  ;;  %v2365_v1 = vadd.f32 %v5342_v14, %v5339_v10  ;;  %v4288_v16 = vld [vmem:[%s5871_s10 + $0x8] sm:$0xff]  }
 0x410   : > { %4336 = vrcp.f32 %v2412_v39  ;;  %4063 = vmatpush3.bf16.msra.mxu1 %v4288_v16  ;;  %v3881_v49 = vsel %vm2980_vm14, 1.0, %v4644_v28  ;;  %vm3150_vm14 = vcmp.eq.s32.totalorder %v5293_v32, 0 }
 0x411   : > { %v2468_v23 = vmul.f32 %v2458_v35, %v2448_v62  ;;  %v2461_v37 = vmax.f32 %v2365_v1, 0.0  ;;  %4064 = vmatprep.subr.bf16.mxu1 %v4644_v28  ;;  %v2955_v26 = vpop.permute.xlu0 %2954  ;;  %v2958_v35 = vpop.permute.xlu1 %2957 }
 0x412   : > { %v4331_v20 = vpop.eup %4330  ;;  %vm2981_vm15 = vcmp.eq.s32.totalorder %v2955_v26, %v4996_v12  ;;  %vm2982_vm2 = vcmp.eq.s32.totalorder %v2958_v35, %v4996_v12 }
 0x413   : > { %v5398_v18 = vadd.f32 %v2468_v23, %v2438_v56  ;;  %v2449_v2 = vsub.f32 1.0, %v4331_v20  ;;  %v2439_v8 = vmul.f32 %v4331_v20, %v2173_v44  ;;  %v3883_v46 = vsel %vm2982_vm2, 1.0, %v4644_v28  ;;  %v4290_v56 = vld [vmem:[%s5869_s8 + $0x38] sm:$0xff]   ;;  %v4291_v23 = vld [vmem:[%s5869_s8 + $0x30] sm:$0xff]  }
 0x414   : > { %4023 = vmatpush3.bf16.msra.mxu0 %v4290_v56  ;;  %vm3153_vm2 = vcmp.eq.s32.totalorder %v5297_v58, 0 }
 0x415   : > { %v2485_v6 = vpack.c.bf16 %v5398_v18, %v5396_v34  ;;  %v2469_v55 = vmul.f32 %v2459_v7, %v2449_v2  ;;  %v2961_v62 = vpop.permute.xlu1 %2960  ;;  %4024 = vmatprep.subr.bf16.mxu0 %v4644_v28  ;;  %v2964_v24 = vpop.permute.xlu0 %2963 }
 0x416   : > { %v4333_v4 = vpop.eup %4332  ;;  %vm2983_vm3 = vcmp.eq.s32.totalorder %v2961_v62, %v4996_v12  ;;  %vm2984_vm5 = vcmp.eq.s32.totalorder %v2964_v24, %v4996_v12 }
 0x417   : > { %2651 = vmatmul.mubr.bf16.gmra.mxu1 %v2485_v6  ;;  %v2450_v53 = vsub.f32 1.0, %v4333_v4  ;;  %v2440_v60 = vmul.f32 %v4333_v4, %v2174_v19  ;;  %v5411_v15 = vadd.f32 %v2469_v55, %v2439_v8  ;;  %v3884_v21 = vsel %vm2983_vm3, 1.0, %v4644_v28  ;;  %v4292_v4 = vld [vmem:[%s5869_s8 + $0x28] sm:$0xff]  }
 0x418   : > { %2660 = vmatprep.mubr.bf16.mxu1 %v4642_v0  ;;  %v3011_v11 = vpack.c.bf16 %v3884_v21, %v3883_v46  ;;  %4025 = vmatpush3.bf16.msra.mxu0 %v4291_v23  ;;  %v3885_v7 = vsel %vm2984_vm5, 1.0, %v4644_v28  ;;  %vm3154_vm3 = vcmp.eq.s32.totalorder %v5305_v17, 0  ;;  %vm3221_vm5 = vcmp.eq.s32.totalorder %v5277_v59, 1 }
 0x419   : > { %v4335_v22 = vpop.eup %4334  ;;  %v2470_v54 = vmul.f32 %v2460_v51, %v2450_v53  ;;  %v2967_v20 = vpop.permute.xlu1 %2966  ;;  %4026 = vmatprep.subr.bf16.mxu0 %v4644_v28  ;;  %v4293_v51 = vld [vmem:[%s5869_s8 + $0x20] sm:$0xff]   ;;  %v3165_v26 = vsel %vm3154_vm3, 1, %v4642_v0 }
 0x41a   : > { %v2451_v29 = vsub.f32 1.0, %v4335_v22  ;;  %v2441_v38 = vmul.f32 %v4335_v22, %v2175_v50  ;;  %v4289_v50 = vld [vmem:[%s5871_s10] sm:$0xff]   ;;  %vm2985_vm4 = vcmp.eq.s32.totalorder %v2967_v20, %v4996_v12  ;;  %v2970_v55 = vpop.permute.xlu0 %2969 }
 0x41b   : > { %v5413_v9 = vadd.f32 %v2470_v54, %v2440_v60  ;;  %4065 = vmatpush3.bf16.msra.mxu1 %v4289_v50  ;;  %v3886_v2 = vsel %vm2985_vm4, 1.0, %v4644_v28  ;;  %vm2986_vm7 = vcmp.eq.s32.totalorder %v2970_v55, %v4996_v12  ;;  %v4294_v60 = vld [vmem:[%s5869_s8 + $0x18] sm:$0xff]   ;;  %v4295_v54 = vld [vmem:[%s5869_s8 + $0x10] sm:$0xff]   ;;  %vm3155_vm4 = vcmp.eq.s32.totalorder %v5303_v33, 0 }
 0x41c   : > { %v2471_v44 = vmul.f32 %v2461_v37, %v2451_v29  ;;  %v3012_v6 = vpack.c.bf16 %v3886_v2, %v3885_v7  ;;  %4027 = vmatpush3.bf16.msra.mxu0 %v4292_v4  ;;  %v3887_v22 = vsel %vm2986_vm7, 1.0, %v4644_v28  ;;  %v3166_v50 = vsel %vm3155_vm4, 1, %v4642_v0 }
 0x41d   : > { %v4337_v14 = vpop.eup %4336  ;;  %v2486_v36 = vpack.c.bf16 %v5413_v9, %v5411_v15  ;;  %4028 = vmatprep.subr.bf16.mxu0 %v4644_v28  ;;  %v2973_v53 = vpop.permute.xlu1 %2972  ;;  %vm3223_vm7 = vcmp.eq.s32.totalorder %v5279_v27, 1 }
 0x41e   : > { %v2452_v61 = vsub.f32 1.0, %v4337_v14  ;;  %v2442_v19 = vmul.f32 %v4337_v14, %v2176_v52  ;;  %v5422_v42 = vadd.f32 %v2471_v44, %v2441_v38  ;;  %v3882_v52 = vsel %vm2981_vm15, 1.0, %v4644_v28  ;;  %v2976_v29 = vpop.permute.xlu0 %2975 }
 0x41f   : > { %2661 = vmatmul.mubr.bf16.gmra.mxu1 %v2486_v36  ;;  %v3010_v39 = vpack.c.bf16 %v3882_v52, %v3881_v49  ;;  %vm2987_vm6 = vcmp.eq.s32.totalorder %v2973_v53, %v4996_v12  ;;  %vm2988_vm9 = vcmp.eq.s32.totalorder %v2976_v29, %v4996_v12  ;;  %v3158_v44 = vsel %vm3147_vm10, 1, %v4642_v0 }
 0x420   : > { %2670 = vmatprep.mubr.bf16.mxu1 %v4642_v0  ;;  %v2472_v10 = vmul.f32 %v2462_v48, %v2452_v61  ;;  %4029 = vmatpush3.bf16.msra.mxu0 %v4293_v51  ;;  %v3888_v1 = vsel %vm2987_vm6, 1.0, %v4644_v28  ;;  %v3889_v14 = vsel %vm2988_vm9, 1.0, %v4644_v28  ;;  %v4296_v48 = vld [vmem:[%s5869_s8 + $0x8] sm:$0xff]   ;;  %v4646_v61 = vmov 1  }
 0x421   : > { %v3013_v8 = vpack.c.bf16 %v3888_v1, %v3887_v22  ;;  %4030 = vmatprep.subr.bf16.mxu0 %v4644_v28  ;;  %v2979_v41 = vpop.permute.xlu1 %2978  ;;  %4201 = vset.pattern.permute.xlu1 %v4646_v61  ;;  %v3157_v38 = vsel %vm3146_vm11, 1, %v4642_v0  ;;  %vm3151_vm15 = vcmp.eq.s32.totalorder %v5291_v40, 0  ;;  %v3164_v49 = vsel %vm3153_vm2, 1, %v4642_v0 }
 0x422   : > { %v5424_v43 = vadd.f32 %v2472_v10, %v2442_v19  ;;  %vm2989_vm8 = vcmp.eq.s32.totalorder %v2979_v41, %v4996_v12  ;;  %v4297_v12 = vld [vmem:[%s5869_s8] sm:$0xff]   ;;  %4200 = vset.pattern.permute.xlu0 %v4646_v61  ;;  %3171 = vperm.xlu1 %4201, %v3158_v44   ;;  %v3159_v19 = vsel %vm3148_vm12, 1, %v4642_v0  ;;  %v3160_v10 = vsel %vm3149_vm13, 1, %v4642_v0 }
 0x423   : > { %v3890_v37 = vsel %vm2989_vm8, 1.0, %v4644_v28  ;;  %3168 = vperm.xlu0 %4200, %v3157_v38   ;;  %v3162_v47 = vsel %vm3151_vm15, 1, %v4642_v0  ;;  %vm3222_vm6 = vcmp.eq.s32.totalorder %v5285_v30, 1  ;;  %v3232_v52 = vsel %vm3221_vm5, 1, %v4642_v0 }
 0x424   : > { %v2487_v25 = vpack.c.bf16 %v5424_v43, %v5422_v42  ;;  %4031 = vmatpush3.bf16.msra.mxu0 %v4294_v60  ;;  %v3014_v36 = vpack.c.bf16 %v3890_v37, %v3889_v14  ;;  %vm3224_vm8 = vcmp.eq.s32.totalorder %v5287_v31, 1  ;;  %v3234_v35 = vsel %vm3223_vm7, 1, %v4642_v0 }
 0x425   : > { %4032 = vmatprep.subr.bf16.mxu0 %v4644_v28  ;;  %v3235_v62 = vsel %vm3224_vm8, 1, %v4642_v0  ;;  %vm3225_vm9 = vcmp.eq.s32.totalorder %v5293_v32, 1  ;;  %vm3226_vm10 = vcmp.eq.s32.totalorder %v5291_v40, 1  ;;  %vm3227_vm11 = vcmp.eq.s32.totalorder %v5299_v13, 1 }
 0x426   : > { %3174 = vperm.xlu1 %4201, %v3159_v19   ;;  %v3236_v59 = vsel %vm3225_vm9, 1, %v4642_v0  ;;  %v3237_v30 = vsel %vm3226_vm10, 1, %v4642_v0  ;;  %vm3228_vm12 = vcmp.eq.s32.totalorder %v5297_v58, 1  ;;  %v3238_v27 = vsel %vm3227_vm11, 1, %v4642_v0 }
 0x427   : > { %2671 = vmatmul.mubr.bf16.gmra.mxu1 %v2487_v25  ;;  %3177 = vperm.xlu0 %4200, %v3160_v10   ;;  %v3161_v25 = vsel %vm3150_vm14, 1, %v4642_v0  ;;  %v3239_v31 = vsel %vm3228_vm12, 1, %v4642_v0  ;;  %vm3229_vm13 = vcmp.eq.s32.totalorder %v5305_v17, 1  ;;  %vm3230_vm14 = vcmp.eq.s32.totalorder %v5303_v33, 1 }
 0x428   : > { %4066 = vmatprep.mubr.msk.bf16.mxu1 %vm4645_vm0, %v4644_v28  ;;  %4033 = vmatpush3.bf16.msra.mxu0 %v4295_v54  ;;  %v3240_v40 = vsel %vm3229_vm13, 1, %v4642_v0  ;;  %v3241_v32 = vsel %vm3230_vm14, 1, %v4642_v0  ;;  %v5917_v58 = vsub.s32 1, %v5310_v63 }
 0x429   : > { %4034 = vmatprep.subr.bf16.mxu0 %v4644_v28 }
 0x42a   : > { %3180 = vperm.xlu1 %4201, %v3161_v25  }
 0x42b   : > { %3183 = vperm.xlu0 %4200, %v3162_v47  }
 0x42c   : > { %4035 = vmatpush3.bf16.msra.mxu0 %v4296_v48 }
 0x42d   : > { %4036 = vmatprep.subr.bf16.mxu0 %v4644_v28 }
 0x42f   : > { %4067 = vmatmul.mubr.msk.bf16.vlgmr.msra.gmra.mxu1 %vm3047_vm1, %v3010_v39  ;;  %3189 = vperm.xlu0 %4200, %v3164_v49   ;;  %v3233_v39 = vsel %vm3222_vm6, 1, %v4642_v0 }
 0x430   : > { %4070 = vmatprep.mubr.msk.bf16.mxu1 %vm4645_vm0, %v4644_v28  ;;  %4037 = vmatpush3.bf16.msra.mxu0 %v4297_v12 }
 0x433   : > { %3195 = vperm.xlu0 %4200, %v3166_v50  }
 0x437   : > { %4071 = vmatmul.mubr.msk.bf16.gmra.mxu1 %vm3047_vm1, %v3011_v11  ;;  %3246 = vperm.xlu0 %4200, %v3233_v39  }
 0x438   : > { %4074 = vmatprep.mubr.msk.bf16.mxu1 %vm4645_vm0, %v4644_v28 }
 0x43b   : > { %3252 = vperm.xlu0 %4200, %v3235_v62  }
 0x43f   : > { %4075 = vmatmul.mubr.msk.bf16.gmra.mxu1 %vm3047_vm1, %v3012_v6  ;;  %3258 = vperm.xlu0 %4200, %v3237_v30  }
 0x440   : > { %4078 = vmatprep.mubr.msk.bf16.mxu1 %vm4645_vm0, %v4644_v28 }
 0x443   : > { %3264 = vperm.xlu0 %4200, %v3239_v31  }
 0x447   : > { %4079 = vmatmul.mubr.msk.bf16.gmra.mxu1 %vm3047_vm1, %v3013_v8  ;;  %3270 = vperm.xlu0 %4200, %v3241_v32  }
 0x448   : > { %4082 = vmatprep.mubr.msk.bf16.mxu1 %vm4645_vm0, %v4644_v28 }
 0x44f   : > { %4083 = vmatmul.mubr.msk.bf16.gmra.mxu1 %vm3047_vm1, %v3014_v36  ;;  %vm3152_vm1 = vcmp.eq.s32.totalorder %v5299_v13, 0  ;;  %v2506_v13 = vld [vmem:[#allocation10 + $0x1] ss:$2 sm:$0x3] }
 0x450   : > { %v3163_v16 = vsel %vm3152_vm1, 1, %v4642_v0  ;;  %v5545_v46 = vrot.slane %v2506_v13, %v5917_v58 }
 0x451   : > { %3186 = vperm.xlu1 %4201, %v3163_v16   ;;  %v5918_v16 = vsub.s32 0, %v5310_v63 }
 0x453   : > { %v5568_v49 = vrot.slane %v2506_v13, %v5918_v16 }
 0x455   : > { %3192 = vperm.xlu1 %4201, %v3165_v26  }
 0x459   : > { %3243 = vperm.xlu1 %4201, %v3232_v52  }
 0x45d   : > { %3249 = vperm.xlu1 %4201, %v3234_v35  }
 0x461   : > { %3255 = vperm.xlu1 %4201, %v3236_v59  }
 0x465   : > { %3261 = vperm.xlu1 %4201, %v3238_v27  }
 0x469   : > { %3267 = vperm.xlu1 %4201, %v3240_v40  }
 0x4c6   : > { %v2632_v21 = vpop.f32.mrf.mxu1 }
 0x4c7   : > { %v2633_v59 = vadd.f32 %v2632_v21, %v5568_v49 }
 0x4c8   : > { %v2634_v11 = vpop.f32.mrf.mxu1 }
 0x4c9   : > { %v2635_v56 = vadd.f32 %v2634_v11, %v5545_v46 }
 0x4ca   : > { %v2636_v17 = vpop.f32.mrf.mxu1 }
 0x4cb   : > { %v3862_v23 = vmul.f32 -1.442695, %v2635_v56  ;;  %v2637_v40 = vadd.f32 %v2636_v17, %v5568_v49  ;;  %v2761_v56 = vmax.f32 %v2633_v59, 0.0 }
 0x4cc   : > { %v2638_v33 = vpop.f32.mrf.mxu1 }
 0x4cd   : > { %4338 = vpow2.f32 %v3862_v23  ;;  %v2639_v20 = vadd.f32 %v2638_v33, %v5545_v46 }
 0x4ce   : > { %v5549_v24 = vpop.f32.mrf.mxu1 }
 0x4cf   : > { %v3863_v0 = vmul.f32 -1.442695, %v2639_v20  ;;  %v2643_v17 = vadd.f32 %v5549_v24, %v5568_v49 }
 0x4d0   : > { %v2644_v2 = vpop.f32.mrf.mxu1 }
 0x4d1   : > { %4340 = vpow2.f32 %v3863_v0  ;;  %v2645_v7 = vadd.f32 %v2644_v2, %v5545_v46  ;;  %v2762_v0 = vmax.f32 %v2637_v40, 0.0 }
 0x4d2   : > { %v5552_v6 = vpop.f32.mrf.mxu1 }
 0x4d3   : > { %v3864_v4 = vmul.f32 -1.442695, %v2645_v7 }
 0x4d4   : > { %v2648_v51 = vpop.f32.mrf.mxu1 }
 0x4d5   : > { %4342 = vpow2.f32 %v3864_v4  ;;  %v2649_v53 = vadd.f32 %v2648_v51, %v5545_v46 }
 0x4d7   : > { %v3865_v55 = vmul.f32 -1.442695, %v2649_v53  ;;  %v5555_v1 = vpop.f32.mrf.mxu1 }
 0x4d9   : > { %4344 = vpow2.f32 %v3865_v55  ;;  %v2654_v22 = vpop.f32.mrf.mxu1 }
 0x4da   : > { %v4339_v8 = vpop.eup %4338  ;;  %v2655_v60 = vadd.f32 %v2654_v22, %v5545_v46 }
 0x4db   : > { %v2711_v54 = vadd.f32 1.0, %v4339_v8  ;;  %v5558_v41 = vpop.f32.mrf.mxu1 }
 0x4dc   : > { %v3866_v29 = vmul.f32 -1.442695, %v2655_v60  ;;  %v2647_v60 = vadd.f32 %v5552_v6, %v5568_v49 }
 0x4dd   : > { %4346 = vrcp.f32 %v2711_v54  ;;  %v2658_v37 = vpop.f32.mrf.mxu1 }
 0x4de   : > { %v4341_v14 = vpop.eup %4340  ;;  %4348 = vpow2.f32 %v3866_v29  ;;  %v2659_v36 = vadd.f32 %v2658_v37, %v5545_v46 }
 0x4df   : > { %v2712_v48 = vadd.f32 1.0, %v4341_v14  ;;  %v5561_v12 = vpop.f32.mrf.mxu1 }
 0x4e0   : > { %v3867_v61 = vmul.f32 -1.442695, %v2659_v36  ;;  %v2763_v36 = vmax.f32 %v2643_v17, 0.0 }
 0x4e1   : > { %4350 = vrcp.f32 %v2712_v48  ;;  %v2664_v44 = vpop.f32.mrf.mxu1 }
 0x4e2   : > { %v4343_v38 = vpop.eup %4342  ;;  %4352 = vpow2.f32 %v3867_v61  ;;  %v2665_v19 = vadd.f32 %v2664_v44, %v5545_v46 }
 0x4e3   : > { %v2713_v10 = vadd.f32 1.0, %v4343_v38  ;;  %v5564_v25 = vpop.f32.mrf.mxu1 }
 0x4e4   : > { %v3868_v47 = vmul.f32 -1.442695, %v2665_v19 }
 0x4e5   : > { %4354 = vrcp.f32 %v2713_v10  ;;  %v2668_v26 = vpop.f32.mrf.mxu1 }
 0x4e6   : > { %v4345_v50 = vpop.eup %4344  ;;  %4356 = vpow2.f32 %v3868_v47  ;;  %v2669_v52 = vadd.f32 %v2668_v26, %v5545_v46  ;;  %v2653_v47 = vadd.f32 %v5555_v1, %v5568_v49 }
 0x4e7   : > { %v2714_v39 = vadd.f32 1.0, %v4345_v50  ;;  %v5571_v35 = vpop.f32.mrf.mxu1 }
 0x4e8   : > { %v3869_v62 = vmul.f32 -1.442695, %v2669_v52 }
 0x4e9   : > { %4358 = vrcp.f32 %v2714_v39  ;;  %v2674_v30 = vpop.f32.mrf.mxu1  ;;  %v2657_v39 = vadd.f32 %v5558_v41, %v5568_v49 }
 0x4ea   : > { %v4347_v27 = vpop.eup %4346  ;;  %4360 = vpow2.f32 %v3869_v62  ;;  %v2675_v63 = vadd.f32 %v2674_v30, %v5545_v46 }
 0x4eb   : > { %v4349_v31 = vpop.eup %4348  ;;  %v5576_v32 = vpop.f32.mrf.mxu1  ;;  %v2751_v13 = vsub.f32 1.0, %v4347_v27  ;;  %v2741_v53 = vmul.f32 %v4347_v27, %v5358_v5  ;;  %v2764_v5 = vmax.f32 %v2647_v60, 0.0  ;;  %v2765_v27 = vmax.f32 %v2653_v47, 0.0 }
 0x4ec   : > { %v2715_v58 = vadd.f32 1.0, %v4349_v31  ;;  %v3870_v11 = vmul.f32 -1.442695, %v2675_v63 }
 0x4ed   : > { %v2678_v23 = vpop.f32.mrf.mxu1  ;;  %v2771_v7 = vmul.f32 %v2761_v56, %v2751_v13  ;;  %v2663_v13 = vadd.f32 %v5561_v12, %v5568_v49 }
 0x4ee   : > { %v4351_v33 = vpop.eup %4350  ;;  %4362 = vrcp.f32 %v2715_v58  ;;  %v2679_v21 = vadd.f32 %v2678_v23, %v5545_v46  ;;  %v2667_v23 = vadd.f32 %v5564_v25, %v5568_v49  ;;  %v2673_v25 = vadd.f32 %v5571_v35, %v5568_v49 }
 0x4ef   : > { %v4353_v20 = vpop.eup %4352  ;;  %4364 = vpow2.f32 %v3870_v11  ;;  %v2752_v2 = vsub.f32 1.0, %v4351_v33  ;;  %v2742_v55 = vmul.f32 %v4351_v33, %v5360_v45  ;;  %v2781_v54 = vadd.f32 %v2771_v7, %v2741_v53 }
 0x4f0   : > { %v2716_v4 = vadd.f32 1.0, %v4353_v20  ;;  %v3871_v51 = vmul.f32 -1.442695, %v2679_v21 }
 0x4f1   : > { %v2772_v22 = vmul.f32 %v2762_v0, %v2752_v2  ;;  %v2767_v0 = vmax.f32 %v2663_v13, 0.0 }
 0x4f2   : > { %v4355_v8 = vpop.eup %4354  ;;  %4366 = vrcp.f32 %v2716_v4  ;;  %v2768_v4 = vmax.f32 %v2667_v23, 0.0 }
 0x4f3   : > { %v4357_v46 = vpop.eup %4356  ;;  %4368 = vpow2.f32 %v3871_v51  ;;  %v2782_v29 = vadd.f32 %v2772_v22, %v2742_v55  ;;  %v2753_v37 = vsub.f32 1.0, %v4355_v8  ;;  %v2743_v6 = vmul.f32 %v4355_v8, %v5378_v3 }
 0x4f4   : > { %v2717_v14 = vadd.f32 1.0, %v4357_v46  ;;  %v2677_v8 = vadd.f32 %v5576_v32, %v5568_v49 }
 0x4f5   : > { %v2791_v48 = vpack.c.bf16 %v2782_v29, %v2781_v54  ;;  %v2773_v44 = vmul.f32 %v2763_v36, %v2753_v37  ;;  %v2769_v54 = vmax.f32 %v2673_v25, 0.0  ;;  %v3097_v37 = vpop.f32.mrf.mxu1 }
 0x4f6   : > { %v4359_v61 = vpop.eup %4358  ;;  %4370 = vrcp.f32 %v2717_v14  ;;  %v2770_v14 = vmax.f32 %v2677_v8, 0.0 }
 0x4f7   : > { %v4361_v24 = vpop.eup %4360  ;;  %4039 = vmatmul.mubr.bf16.vlgmr.msra.gmra.mxu0 %v2791_v48  ;;  %v2754_v45 = vsub.f32 1.0, %v4359_v61  ;;  %v2744_v19 = vmul.f32 %v4359_v61, %v5380_v57  ;;  %v2783_v26 = vadd.f32 %v2773_v44, %v2743_v6  ;;  %v2766_v57 = vmax.f32 %v2657_v39, 0.0  ;;  %v4068_v36 = vpop.f32.mrf.mxu1 }
 0x4f8   : > { %v2718_v38 = vadd.f32 1.0, %v4361_v24  ;;  %4042 = vmatprep.mubr.msk.bf16.mxu0 %vm4645_vm0, %v4644_v28 }
 0x4f9   : > { %v2774_v10 = vmul.f32 %v2764_v5, %v2754_v45  ;;  %v3100_v24 = vpop.f32.mrf.mxu1 }
 0x4fa   : > { %4372 = vrcp.f32 %v2718_v38 }
 0x4fb   : > { %v4363_v16 = vpop.eup %4362  ;;  %v2784_v50 = vadd.f32 %v2774_v10, %v2744_v19  ;;  %v4069_v45 = vpop.f32.mrf.mxu1 }
 0x4fc   : > { %v4365_v52 = vpop.eup %4364  ;;  %v2755_v62 = vsub.f32 1.0, %v4363_v16  ;;  %v2745_v41 = vmul.f32 %v4363_v16, %v5396_v34 }
 0x4fd   : > { %v2719_v59 = vadd.f32 1.0, %v4365_v52  ;;  %v2792_v30 = vpack.c.bf16 %v2784_v50, %v2783_v26  ;;  %v3105_v44 = vpop.f32.mrf.mxu1 }
 0x4fe   : > { %v2775_v31 = vmul.f32 %v2765_v27, %v2755_v62  ;;  %v3169_v27 = vpop.permute.xlu0 %3168 }
 0x4ff   : > { %v4367_v63 = vpop.eup %4366  ;;  %4374 = vrcp.f32 %v2719_v59  ;;  %4043 = vmatmul.mubr.bf16.gmra.mxu0 %v2792_v30  ;;  %v4072_v38 = vpop.f32.mrf.mxu1 }
 0x500   : > { %v4369_v3 = vpop.eup %4368  ;;  %4046 = vmatprep.mubr.msk.bf16.mxu0 %vm4645_vm0, %v4644_v28  ;;  %v2756_v1 = vsub.f32 1.0, %v4367_v63  ;;  %v2746_v58 = vmul.f32 %v4367_v63, %v5398_v18  ;;  %v2785_v33 = vadd.f32 %v2775_v31, %v2745_v41  ;;  %v3172_v30 = vpop.permute.xlu1 %3171  ;;  %v5638_v41 = vld [vmem:[%s5872_s11] ss:$0 sm:$0xff] }
 0x501   : > { %v2720_v40 = vadd.f32 1.0, %v4369_v3  ;;  %v5613_v6 = vpop.f32.mrf.mxu1  ;;  %vm3198_vm1 = vcmp.eq.s32.totalorder %v3172_v30, 1 }
 0x502   : > { %v2776_v11 = vmul.f32 %v2766_v57, %v2756_v1  ;;  %v3178_v3 = vpop.permute.xlu0 %3177 }
 0x503   : > { %v4371_v56 = vpop.eup %4370  ;;  %4376 = vrcp.f32 %v2720_v40  ;;  %v4073_v19 = vpop.f32.mrf.mxu1  ;;  %vm3200_vm5 = vcmp.eq.s32.totalorder %v3178_v3, 1 }
 0x504   : > { %v2786_v21 = vadd.f32 %v2776_v11, %v2746_v58  ;;  %v2757_v20 = vsub.f32 1.0, %v4371_v56  ;;  %v2747_v34 = vmul.f32 %v4371_v56, %v5411_v15  ;;  %v3175_v63 = vpop.permute.xlu1 %3174  ;;  %v5642_v56 = vld [vmem:[#allocation11] ss:$0 sm:$0xff] }
 0x505   : > { %vm3199_vm3 = vcmp.eq.s32.totalorder %v3175_v63, 1 }
 0x506   : > { %v2793_v2 = vpack.c.bf16 %v2786_v21, %v2785_v33  ;;  %v2777_v12 = vmul.f32 %v2767_v0, %v2757_v20  ;;  %v5627_v1 = vpop.permute.xlu0 %3183  ;;  %v5648_v33 = vld [vmem:[%s5872_s11 + $0x1] ss:$0 sm:$0xff]  ;;  %v3213_v8 = vsel %vm3199_vm3, %v5638_v41, 0.0 }
 0x507   : > { %v4373_v7 = vpop.eup %4372  ;;  %vm3202_vm9 = vcmp.eq.s32.totalorder %v5627_v1, 1 }
 0x508   : > { %4047 = vmatmul.mubr.bf16.gmra.mxu0 %v2793_v2  ;;  %v2758_v51 = vsub.f32 1.0, %v4373_v7  ;;  %v2748_v18 = vmul.f32 %v4373_v7, %v5413_v9  ;;  %v2787_v55 = vadd.f32 %v2777_v12, %v2747_v34  ;;  %v3181_v57 = vpop.permute.xlu1 %3180  ;;  %v3212_v12 = vsel %vm3198_vm1, %v5638_v41, 0.0 }
 0x509   : > { %4050 = vmatprep.mubr.msk.bf16.mxu0 %vm4645_vm0, %v4644_v28  ;;  %vm3201_vm7 = vcmp.eq.s32.totalorder %v3181_v57, 1 }
 0x50a   : > { %v2778_v17 = vmul.f32 %v2768_v4, %v2758_v51  ;;  %v5631_v40 = vpop.permute.xlu0 %3189  ;;  %v3215_v45 = vsel %vm3201_vm7, %v5638_v41, 0.0 }
 0x50b   : > { %vm3204_vm13 = vcmp.eq.s32.totalorder %v5631_v40, 1 }
 0x50c   : > { %v4375_v53 = vpop.eup %4374  ;;  %v2788_v22 = vadd.f32 %v2778_v17, %v2748_v18  ;;  %v5629_v31 = vpop.permute.xlu1 %3186 }
 0x50d   : > { %v2759_v60 = vsub.f32 1.0, %v4375_v53  ;;  %v2749_v35 = vmul.f32 %v4375_v53, %v5422_v42  ;;  %vm3203_vm11 = vcmp.eq.s32.totalorder %v5629_v31, 1 }
 0x50e   : > { %v2794_v46 = vpack.c.bf16 %v2788_v22, %v2787_v55  ;;  %v5640_v58 = vpop.permute.xlu0 %3195  ;;  %v3217_v3 = vsel %vm3203_vm11, %v5638_v41, 0.0 }
 0x50f   : > { %v2779_v9 = vmul.f32 %v2769_v54, %v2759_v60  ;;  %vm3206_vm1 = vcmp.eq.s32.totalorder %v5640_v58, 1 }
 0x510   : > { %v4377_v29 = vpop.eup %4376  ;;  %4051 = vmatmul.mubr.bf16.gmra.mxu0 %v2794_v46  ;;  %v5633_v13 = vpop.permute.xlu1 %3192 }
 0x511   : > { %4054 = vmatprep.mubr.msk.bf16.mxu0 %vm4645_vm0, %v4644_v28  ;;  %v2760_v15 = vsub.f32 1.0, %v4377_v29  ;;  %v2750_v48 = vmul.f32 %v4377_v29, %v5424_v43  ;;  %v2789_v49 = vadd.f32 %v2779_v9, %v2749_v35  ;;  %v5615_v28 = vpop.f32.mrf.mxu1  ;;  %vm3197_vm0 = vcmp.eq.s32.totalorder %v3169_v27, 1 }
 0x512   : > { %v3211_v23 = vsel %vm3197_vm0, %v5638_v41, 0.0  ;;  %v3247_v4 = vpop.permute.xlu0 %3246  ;;  %v3214_v9 = vsel %vm3200_vm5, %v5638_v41, 0.0  ;;  %vm3205_vm0 = vcmp.eq.s32.totalorder %v5633_v13, 1 }
 0x513   : > { %v2780_v61 = vmul.f32 %v2770_v14, %v2760_v15  ;;  %v4076_v10 = vpop.f32.mrf.mxu1  ;;  %vm3273_vm2 = vcmp.eq.s32.totalorder %v3247_v4, 1 }
 0x514   : > { %v3244_v11 = vpop.permute.xlu1 %3243  ;;  %v3287_v22 = vsel %vm3273_vm2, %v5648_v33, %v3212_v12 }
 0x515   : > { %v2790_v32 = vadd.f32 %v2780_v61, %v2750_v48  ;;  %v5617_v47 = vpop.f32.mrf.mxu1  ;;  %vm3272_vm15 = vcmp.eq.s32.totalorder %v3244_v11, 1 }
 0x516   : > { %v3286_v2 = vsel %vm3272_vm15, %v5648_v33, %v3211_v23 }
 0x517   : > { %v2795_v5 = vpack.c.bf16 %v2790_v32, %v2789_v49  ;;  %v4077_v42 = vpop.f32.mrf.mxu1 }
 0x518   : > { %v3250_v53 = vpop.permute.xlu1 %3249 }
 0x519   : > { %4055 = vmatmul.mubr.bf16.gmra.mxu0 %v2795_v5  ;;  %v5619_v16 = vpop.f32.mrf.mxu1  ;;  %vm3274_vm4 = vcmp.eq.s32.totalorder %v3250_v53, 1 }
 0x51a   : > { %v3288_v15 = vsel %vm3274_vm4, %v5648_v33, %v3213_v8 }
 0x51b   : > { %v4080_v43 = vpop.f32.mrf.mxu1 }
 0x51c   : > { %v3256_v49 = vpop.permute.xlu1 %3255  ;;  %v3216_v43 = vsel %vm3202_vm9, %v5638_v41, 0.0 }
 0x51d   : > { %v5621_v26 = vpop.f32.mrf.mxu1  ;;  %vm3276_vm8 = vcmp.eq.s32.totalorder %v3256_v49, 1 }
 0x51e   : > { %v3290_v42 = vsel %vm3276_vm8, %v5648_v33, %v3215_v45 }
 0x51f   : > { %v4081_v50 = vpop.f32.mrf.mxu1 }
 0x520   : > { %v3262_v27 = vpop.permute.xlu1 %3261 }
 0x521   : > { %v5623_v52 = vpop.f32.mrf.mxu1  ;;  %vm3278_vm12 = vcmp.eq.s32.totalorder %v3262_v27, 1 }
 0x523   : > { %v4084_v39 = vpop.f32.mrf.mxu1 }
 0x524   : > { %v3268_v4 = vpop.permute.xlu1 %3267 }
 0x525   : > { %v5625_v62 = vpop.f32.mrf.mxu1  ;;  %vm3280_vm15 = vcmp.eq.s32.totalorder %v3268_v4, 1 }
 0x527   : > { %v4085_v59 = vpop.f32.mrf.mxu1 }
 0x5b7   : > { %v2901_v21 = vpop.f32.mrf.mxu0 }
 0x5b8   : > { %v2902_v20 = vadd.f32 %v5642_v56, %v2901_v21  ;;  %v3292_v21 = vsel %vm3278_vm12, %v5648_v33, %v3217_v3 }
 0x5b9   : > { %v4040_v0 = vpop.f32.mrf.mxu0 }
 0x5ba   : > { %v3136_v7 = vadd.f32 %v3097_v37, %v2902_v20  ;;  %v3253_v37 = vpop.permute.xlu0 %3252  ;;  %v3218_v20 = vsel %vm3204_vm13, %v5638_v41, 0.0 }
 0x5bb   : > { %v2904_v51 = vpop.f32.mrf.mxu0  ;;  %vm3275_vm6 = vcmp.eq.s32.totalorder %v3253_v37, 1 }
 0x5bc   : > { %v2905_v34 = vadd.f32 %v5642_v56, %v2904_v51  ;;  %v5654_v18 = vadd.f32 %v3286_v2, %v3136_v7 }
 0x5bd   : > { %v4041_v17 = vpop.f32.mrf.mxu0 }
 0x5be   : > { %v3137_v25 = vadd.f32 %v3100_v24, %v2905_v34  ;;  %3306 = vadd.xlane.f32.xlu1 %v5654_v18  ;;  %v3289_v24 = vsel %vm3275_vm6, %v5648_v33, %v3214_v9  ;;  %v3259_v19 = vpop.permute.xlu0 %3258  ;;  %v3219_v34 = vsel %vm3205_vm0, %v5638_v41, 0.0 }
 0x5bf   : > { %v2909_v55 = vpop.f32.mrf.mxu0  ;;  %vm3277_vm10 = vcmp.eq.s32.totalorder %v3259_v19, 1 }
 0x5c0   : > { %v2910_v60 = vadd.f32 %v5642_v56, %v2909_v55  ;;  %v5660_v46 = vadd.f32 %v3287_v22, %v3137_v25  ;;  %v3291_v63 = vsel %vm3277_vm10, %v5648_v33, %v3216_v43  ;;  %v3220_v22 = vsel %vm3206_vm1, %v5638_v41, 0.0 }
 0x5c1   : > { %v4044_v54 = vpop.f32.mrf.mxu0 }
 0x5c2   : > { %v3138_v29 = vadd.f32 %v3105_v44, %v2910_v60  ;;  %3308 = vadd.xlane.f32.xlu0 %v5660_v46 }
 0x5c3   : > { %v2912_v14 = vpop.f32.mrf.mxu0 }
 0x5c4   : > { %v2913_v36 = vadd.f32 %v5642_v56, %v2912_v14  ;;  %v5666_v35 = vadd.f32 %v3288_v15, %v3138_v29 }
 0x5c5   : > { %v4045_v48 = vpop.f32.mrf.mxu0 }
 0x5c6   : > { %v3139_v61 = vadd.f32 %v5613_v6, %v2913_v36  ;;  %3310 = vadd.xlane.f32.xlu0 %v5666_v35 }
 0x5c8   : > { %v2917_v32 = vpop.f32.mrf.mxu0  ;;  %v5671_v5 = vadd.f32 %v3289_v24, %v3139_v61 }
 0x5c9   : > { %v2918_v44 = vadd.f32 %v5642_v56, %v2917_v32 }
 0x5ca   : > { %v4048_v38 = vpop.f32.mrf.mxu0  ;;  %3312 = vadd.xlane.f32.xlu1 %v5671_v5 }
 0x5cb   : > { %v3140_v6 = vadd.f32 %v5615_v28, %v2918_v44 }
 0x5cc   : > { %v2920_v10 = vpop.f32.mrf.mxu0 }
 0x5cd   : > { %v2921_v50 = vadd.f32 %v5642_v56, %v2920_v10  ;;  %v5681_v39 = vadd.f32 %v3290_v42, %v3140_v6 }
 0x5ce   : > { %v4049_v59 = vpop.f32.mrf.mxu0 }
 0x5cf   : > { %v3141_v30 = vadd.f32 %v5617_v47, %v2921_v50  ;;  %3314 = vadd.xlane.f32.xlu0 %v5681_v39  ;;  %v3265_v47 = vpop.permute.xlu0 %3264 }
 0x5d0   : > { %v2925_v28 = vpop.f32.mrf.mxu0  ;;  %vm3279_vm14 = vcmp.eq.s32.totalorder %v3265_v47, 1 }
 0x5d1   : > { %v2926_v57 = vadd.f32 %v5642_v56, %v2925_v28  ;;  %v5689_v1 = vadd.f32 %v3291_v63, %v3141_v30 }
 0x5d2   : > { %v4052_v11 = vpop.f32.mrf.mxu0 }
 0x5d3   : > { %v3142_v31 = vadd.f32 %v5619_v16, %v2926_v57  ;;  %3316 = vadd.xlane.f32.xlu1 %v5689_v1  ;;  %v3293_v16 = vsel %vm3279_vm14, %v5648_v33, %v3218_v20  ;;  %v3271_v25 = vpop.permute.xlu0 %3270 }
 0x5d4   : > { %v2928_v23 = vpop.f32.mrf.mxu0  ;;  %vm3281_vm2 = vcmp.eq.s32.totalorder %v3271_v25, 1 }
 0x5d5   : > { %v2929_v0 = vadd.f32 %v5642_v56, %v2928_v23  ;;  %v3302_v2 = vadd.f32 %v3292_v21, %v3142_v31  ;;  %v3295_v58 = vsel %vm3281_vm2, %v5648_v33, %v3220_v22  ;;  %v5767_v22 = vld [vmem:[%s5874_s13] ss:$0 sm:$0xff] }
 0x5d6   : > { %v4053_v7 = vpop.f32.mrf.mxu0 }
 0x5d7   : > { %v3143_v40 = vadd.f32 %v5621_v26, %v2929_v0  ;;  %3318 = vadd.xlane.f32.xlu0 %v3302_v2  ;;  %v3294_v26 = vsel %vm3280_vm15, %v5648_v33, %v3219_v34 }
 0x5d9   : > { %v2933_v51 = vpop.f32.mrf.mxu0  ;;  %v3303_v12 = vadd.f32 %v3293_v16, %v3143_v40 }
 0x5da   : > { %v2934_v17 = vadd.f32 %v5642_v56, %v2933_v51 }
 0x5db   : > { %v4056_v53 = vpop.f32.mrf.mxu0  ;;  %3320 = vadd.xlane.f32.xlu1 %v3303_v12 }
 0x5dc   : > { %v3144_v13 = vadd.f32 %v5623_v52, %v2934_v17 }
 0x5dd   : > { %v2936_v55 = vpop.f32.mrf.mxu0 }
 0x5de   : > { %v2937_v8 = vadd.f32 %v5642_v56, %v2936_v55  ;;  %v3304_v60 = vadd.f32 %v3294_v26, %v3144_v13  ;;  %v5761_v13 = vld [vmem:[%s5873_s12] ss:$0 sm:$0xff] }
 0x5df   : > { %v4057_v54 = vpop.f32.mrf.mxu0 }
 0x5e0   : > { %v3145_v29 = vadd.f32 %v5625_v62, %v2937_v8  ;;  %3322 = vadd.xlane.f32.xlu0 %v3304_v60 }
 0x5e2   : > { %v3305_v37 = vadd.f32 %v3295_v58, %v3145_v29 }
 0x5e4   : > { %3324 = vadd.xlane.f32.xlu1 %v3305_v37 }
 0x647   : > { %v3307_v14 = vpop.xlane.xlu1 %3306 }
 0x648   : > { %v3327_v15 = vmul.f32 0.0078125, %v3307_v14 }
 0x64a   : > { %v5710_v52 = vsub.f32 %v5654_v18, %v3327_v15 }
 0x64b   : > { %v3309_v9 = vpop.xlane.xlu0 %3308 }
 0x64c   : > { %v3328_v36 = vmul.f32 0.0078125, %v3309_v9  ;;  %v3347_v41 = vmul.f32 %v5710_v52, %v5710_v52 }
 0x64e   : > { %v5715_v56 = vsub.f32 %v5660_v46, %v3328_v36  ;;  %3357 = vadd.xlane.f32.xlu0 %v3347_v41 }
 0x64f   : > { %v3311_v62 = vpop.xlane.xlu0 %3310 }
 0x650   : > { %v3329_v48 = vmul.f32 0.0078125, %v3311_v62  ;;  %v3348_v33 = vmul.f32 %v5715_v56, %v5715_v56 }
 0x652   : > { %v5720_v61 = vsub.f32 %v5666_v35, %v3329_v48  ;;  %3359 = vadd.xlane.f32.xlu1 %v3348_v33 }
 0x653   : > { %v3313_v18 = vpop.xlane.xlu1 %3312 }
 0x654   : > { %v3330_v24 = vmul.f32 0.0078125, %v3313_v18  ;;  %v3349_v49 = vmul.f32 %v5720_v61, %v5720_v61 }
 0x656   : > { %v5725_v32 = vsub.f32 %v5671_v5, %v3330_v24  ;;  %3361 = vadd.xlane.f32.xlu0 %v3349_v49 }
 0x658   : > { %v3315_v46 = vpop.xlane.xlu0 %3314  ;;  %v3350_v45 = vmul.f32 %v5725_v32, %v5725_v32 }
 0x659   : > { %v3331_v44 = vmul.f32 0.0078125, %v3315_v46 }
 0x65a   : > { %3363 = vadd.xlane.f32.xlu1 %v3350_v45 }
 0x65b   : > { %v5730_v38 = vsub.f32 %v5681_v39, %v3331_v44 }
 0x65c   : > { %v3317_v35 = vpop.xlane.xlu1 %3316 }
 0x65d   : > { %v3332_v6 = vmul.f32 0.0078125, %v3317_v35  ;;  %v3351_v19 = vmul.f32 %v5730_v38, %v5730_v38 }
 0x65f   : > { %v5735_v10 = vsub.f32 %v5689_v1, %v3332_v6  ;;  %3365 = vadd.xlane.f32.xlu0 %v3351_v19 }
 0x660   : > { %v3319_v5 = vpop.xlane.xlu0 %3318 }
 0x661   : > { %v3333_v42 = vmul.f32 0.0078125, %v3319_v5  ;;  %v3352_v43 = vmul.f32 %v5735_v10, %v5735_v10 }
 0x663   : > { %v5739_v50 = vsub.f32 %v3302_v2, %v3333_v42  ;;  %3367 = vadd.xlane.f32.xlu1 %v3352_v43 }
 0x664   : > { %v3321_v59 = vpop.xlane.xlu1 %3320 }
 0x665   : > { %v3334_v39 = vmul.f32 0.0078125, %v3321_v59  ;;  %v3353_v30 = vmul.f32 %v5739_v50, %v5739_v50 }
 0x667   : > { %v5743_v27 = vsub.f32 %v3303_v12, %v3334_v39  ;;  %3369 = vadd.xlane.f32.xlu0 %v3353_v30 }
 0x669   : > { %v3323_v28 = vpop.xlane.xlu0 %3322  ;;  %v3354_v63 = vmul.f32 %v5743_v27, %v5743_v27 }
 0x66a   : > { %v3335_v3 = vmul.f32 0.0078125, %v3323_v28 }
 0x66b   : > { %3371 = vadd.xlane.f32.xlu1 %v3354_v63 }
 0x66c   : > { %v5747_v57 = vsub.f32 %v3304_v60, %v3335_v3 }
 0x66d   : > { %v3325_v1 = vpop.xlane.xlu1 %3324 }
 0x66e   : > { %v3336_v11 = vmul.f32 0.0078125, %v3325_v1  ;;  %v3355_v31 = vmul.f32 %v5747_v57, %v5747_v57 }
 0x670   : > { %v5751_v47 = vsub.f32 %v3305_v37, %v3336_v11  ;;  %3373 = vadd.xlane.f32.xlu0 %v3355_v31 }
 0x672   : > { %v3356_v23 = vmul.f32 %v5751_v47, %v5751_v47 }
 0x674   : > { %3375 = vadd.xlane.f32.xlu1 %v3356_v23 }
 0x6d7   : > { %v3358_v21 = vpop.xlane.xlu0 %3357 }
 0x6d8   : > { %v3377_v20 = vmul.f32 0.0078125, %v3358_v21 }
 0x6da   : > { %v3387_v0 = vadd.f32 1e-12, %v3377_v20 }
 0x6db   : > { %v3360_v2 = vpop.xlane.xlu1 %3359 }
 0x6dc   : > { %4378 = vrsqrt.f32 %v3387_v0  ;;  %v3378_v7 = vmul.f32 0.0078125, %v3360_v2 }
 0x6de   : > { %v3388_v4 = vadd.f32 1e-12, %v3378_v7 }
 0x6df   : > { %v3362_v40 = vpop.xlane.xlu0 %3361 }
 0x6e0   : > { %4380 = vrsqrt.f32 %v3388_v4  ;;  %v3379_v16 = vmul.f32 0.0078125, %v3362_v40 }
 0x6e2   : > { %v3389_v51 = vadd.f32 1e-12, %v3379_v16 }
 0x6e3   : > { %v3364_v12 = vpop.xlane.xlu1 %3363 }
 0x6e4   : > { %4382 = vrsqrt.f32 %v3389_v51  ;;  %v3380_v34 = vmul.f32 0.0078125, %v3364_v12 }
 0x6e6   : > { %v3390_v17 = vadd.f32 1e-12, %v3380_v34 }
 0x6e8   : > { %4384 = vrsqrt.f32 %v3390_v17  ;;  %v3366_v25 = vpop.xlane.xlu0 %3365 }
 0x6e9   : > { %v4379_v53 = vpop.eup %4378  ;;  %v3381_v55 = vmul.f32 0.0078125, %v3366_v25 }
 0x6ea   : > { %v3407_v26 = vmul.f32 %v4379_v53, %v5710_v52 }
 0x6eb   : > { %v3391_v8 = vadd.f32 1e-12, %v3381_v55 }
 0x6ec   : > { %v3424_v60 = vmul.f32 %v5761_v13, %v3407_v26  ;;  %v3368_v54 = vpop.xlane.xlu1 %3367 }
 0x6ed   : > { %v4381_v29 = vpop.eup %4380  ;;  %4386 = vrsqrt.f32 %v3391_v8  ;;  %v3382_v58 = vmul.f32 0.0078125, %v3368_v54 }
 0x6ee   : > { %v3441_v37 = vadd.f32 %v5767_v22, %v3424_v60  ;;  %v3408_v14 = vmul.f32 %v4381_v29, %v5715_v56 }
 0x6ef   : > { %v3392_v15 = vadd.f32 1e-12, %v3382_v58 }
 0x6f0   : > { %3451 = vst [vmem:[%s5772_s29] sm:$0xff] %v3441_v37  ;;  %v3425_v52 = vmul.f32 %v5761_v13, %v3408_v14  ;;  %v3370_v9 = vpop.xlane.xlu0 %3369 }
 0x6f1   : > { %v4383_v36 = vpop.eup %4382  ;;  %4388 = vrsqrt.f32 %v3392_v15  ;;  %v3383_v41 = vmul.f32 0.0078125, %v3370_v9 }
 0x6f2   : > { %v3442_v62 = vadd.f32 %v5767_v22, %v3425_v52  ;;  %v3409_v48 = vmul.f32 %v4383_v36, %v5720_v61 }
 0x6f3   : > { %v3393_v33 = vadd.f32 1e-12, %v3383_v41 }
 0x6f4   : > { %3452 = vst [vmem:[%s5772_s29 + $0x8] sm:$0xff] %v3442_v62  ;;  %v3426_v56 = vmul.f32 %v5761_v13, %v3409_v48  ;;  %v3372_v18 = vpop.xlane.xlu1 %3371 }
 0x6f5   : > { %v4385_v24 = vpop.eup %4384  ;;  %4390 = vrsqrt.f32 %v3393_v33  ;;  %v3384_v49 = vmul.f32 0.0078125, %v3372_v18 }
 0x6f6   : > { %v3443_v46 = vadd.f32 %v5767_v22, %v3426_v56  ;;  %v3410_v45 = vmul.f32 %v4385_v24, %v5725_v32 }
 0x6f7   : > { %v3394_v44 = vadd.f32 1e-12, %v3384_v49 }
 0x6f8   : > { %3453 = vst [vmem:[%s5772_s29 + $0x10] sm:$0xff] %v3443_v46  ;;  %v3427_v35 = vmul.f32 %v5761_v13, %v3410_v45 }
 0x6f9   : > { %4392 = vrsqrt.f32 %v3394_v44  ;;  %v3374_v61 = vpop.xlane.xlu0 %3373 }
 0x6fa   : > { %v4387_v6 = vpop.eup %4386  ;;  %v3444_v19 = vadd.f32 %v5767_v22, %v3427_v35  ;;  %v3385_v5 = vmul.f32 0.0078125, %v3374_v61 }
 0x6fb   : > { %v3411_v42 = vmul.f32 %v4387_v6, %v5730_v38 }
 0x6fc   : > { %3454 = vst [vmem:[%s5772_s29 + $0x18] sm:$0xff] %v3444_v19  ;;  %v3395_v43 = vadd.f32 1e-12, %v3385_v5 }
 0x6fd   : > { %v3428_v59 = vmul.f32 %v5761_v13, %v3411_v42  ;;  %v3376_v39 = vpop.xlane.xlu1 %3375 }
 0x6fe   : > { %v4389_v32 = vpop.eup %4388  ;;  %4394 = vrsqrt.f32 %v3395_v43  ;;  %v3386_v30 = vmul.f32 0.0078125, %v3376_v39 }
 0x6ff   : > { %v3445_v28 = vadd.f32 %v5767_v22, %v3428_v59  ;;  %v3412_v63 = vmul.f32 %v4389_v32, %v5735_v10 }
 0x700   : > { %v3396_v3 = vadd.f32 1e-12, %v3386_v30 }
 0x701   : > { %3455 = vst [vmem:[%s5772_s29 + $0x20] sm:$0xff] %v3445_v28  ;;  %v3429_v1 = vmul.f32 %v5761_v13, %v3412_v63 }
 0x702   : > { %v4391_v38 = vpop.eup %4390  ;;  %4396 = vrsqrt.f32 %v3396_v3 }
 0x703   : > { %v3446_v11 = vadd.f32 %v5767_v22, %v3429_v1  ;;  %v3413_v31 = vmul.f32 %v4391_v38, %v5739_v50 }
 0x705   : > { %3456 = vst [vmem:[%s5772_s29 + $0x28] sm:$0xff] %v3446_v11  ;;  %v3430_v23 = vmul.f32 %v5761_v13, %v3413_v31 }
 0x706   : > { %v4393_v21 = vpop.eup %4392 }
 0x707   : > { %v3447_v10 = vadd.f32 %v5767_v22, %v3430_v23  ;;  %v3414_v20 = vmul.f32 %v4393_v21, %v5743_v27 }
 0x709   : > { %3457 = vst [vmem:[%s5772_s29 + $0x30] sm:$0xff] %v3447_v10  ;;  %v3431_v0 = vmul.f32 %v5761_v13, %v3414_v20 }
 0x70b   : > { %v4395_v2 = vpop.eup %4394  ;;  %v3448_v7 = vadd.f32 %v5767_v22, %v3431_v0 }
 0x70c   : > { %v3415_v50 = vmul.f32 %v4395_v2, %v5747_v57 }
 0x70d   : > { %3458 = vst [vmem:[%s5772_s29 + $0x38] sm:$0xff] %v3448_v7 }
 0x70e   : > { %v3432_v4 = vmul.f32 %v5761_v13, %v3415_v50 }
 0x70f   : > { %v4397_v40 = vpop.eup %4396 }
 0x710   : > { %v3449_v16 = vadd.f32 %v5767_v22, %v3432_v4  ;;  %v3416_v27 = vmul.f32 %v4397_v40, %v5751_v47 }
 0x712   : > { %3459 = vst [vmem:[%s5772_s29 + $0x40] sm:$0xff] %v3449_v16  ;;  %v3433_v51 = vmul.f32 %v5761_v13, %v3416_v27 }
 0x714   : > { %v3450_v57 = vadd.f32 %v5767_v22, %v3433_v51 }
 0x716   : > { %3460 = vst [vmem:[%s5772_s29 + $0x48] sm:$0xff] %v3450_v57 }
 0x717   : > { %4567 = shalt.err (!%p4564_p10)
}
 0x718   : > { %s4568_s25 = scalar_lea.hbm %s5813_s22, 1280  ;;  %s4572_s29 = scalar_lea.hbm %s5919_s19, 2560 }
 0x719   : > { %p4569_p8 = scmp.ne.s32.totalorder %s5813_s22, %s4568_s25  ;;  %p4573_p0 = scmp.lt.s32.totalorder %s5813_s22, %s5919_s19 }
 0x71a   : > { %p4574_p1 = scmp.lt.s32.totalorder %s4572_s29, %s4568_s25 }
 0x71b   : > { %p4570_p11 = pnand %p4569_p8, %p5920_p5 }
 0x71c   : > { %p4575_p3 = por %p4574_p1, %p4573_p0 }
 0x71d   : > { %p4571_p12 = pneg %p4570_p11 }
 0x71f   : > { %p4576_p9 = pnand %p4575_p3, %p4571_p12 }
 0x721   : > { %4579 = shalt.err (!%p4576_p9)
}
 0x722   : > { %s4648_s20 = smov 128   ;;  %s4649_s21 = smov 8  }
 0x723   : > { %4111 = dma.vmem_to_hbm [thread:$0]  (%p5920_p5), %s5815_s16, 1280, %s5813_s22, %s5821_s17, %s4648_s20, %s4648_s20, %s4649_s21  }
 0x724 PF: > { %s5921_s28 = sld [smem:[#allocation21_spill]] }
 0x725   : > { %s5922_s15 = sld [smem:[#allocation19_spill]] }
 0x726   : > { %s5923_s27 = sld [smem:[#allocation24_spill]] }
 0x72a   : > { %p4148_p6 = scmp.ge.s32.totalorder %s5921_s28, 2 }
 0x72b   : > { %s3490_s18 = sand.u32 1, %s5922_s15  }
 0x72c   : > { %p5924_p2 = scmp.ne.s32.totalorder %s5923_s27, 0  ;;  %s3491_s25 = scalar_lea.sflag [#allocation4], %s3490_s18 }
 0x72e   : > { %p4133_p4 = pnand %p4148_p6, %p5924_p2 }
 0x730   : > { %p4134_p7 = pneg %p4133_p4 }
 0x732   : > { %4613 = dma.done.wait (%p4134_p7), %s3491_s25, 1280  }
 0x733   : > { %4615 = vsyncadd (%p4134_p7), %s3491_s25, 4294966016  ;;  %s5925_s16 = sld [smem:[#allocation22_spill]]  ;;  %s5928_s29 = smov %s4622_s30 }
 0x734   : > { %s5926_s14 = sld [smem:[#allocation20_spill]] }
 0x735   : > { %s5927_s15 = sld [smem:[#allocation23_spill]] }
 0x739   : > { %p28_p13 = scmp.ge.s32.totalorder %s5925_s16, 4  }
 0x73a   : > { %s5929_s30 = smov %s5926_s14 }
 0x73b   :  { %30 = sbr.rel (!%p28_p13) target bundleno = 9 (0x9), region = 141 }
 0x740   :  { %3496 = vsyncpa [#allocation3], 1 }
 0x741   :  { %3498 = vsyncpa [#allocation3 + $0x1], 1 }
 0x742   :  { %3499 = vsyncpa [#allocation6], 1 }
 0x743   :  { %3500 = vsyncpa [#allocation9], 1 }
 0x744   :  { %3501 = vsyncpa [#allocation12], 1 }
 0x745   :  { %3502 = vsyncpa [#allocation4], 1 }
 0x746   :  { %3504 = vsyncpa [#allocation4 + $0x1], 1 }

</bundles_post_ra>
